<compile_context>
chip_gen: v6e
topology: v6e:2x2x1
jax: 0.10.0
libtpu: 0.0.40
codegen_flags: <defaults>
</compile_context>

<pallas_src>
import functools
import math

import jax
import jax.numpy as jnp
from jax import lax
from jax.experimental import pallas as pl
from jax.experimental.pallas import tpu as pltpu

EPS = 1e-5
LANE = 128


def _round_up(x, m):
    return (x + m - 1) // m * m


def _pick_image_block(n, cout):
    """Largest divisor of n with <= 8 images and <= 64 accumulator rows per step."""
    best = 1
    for d in range(1, n + 1):
        if n % d == 0 and d <= 8 and d * cout <= 64:
            best = d
    return best


# ---------------------------------------------------------------------------
# Fused Pallas kernel: implicit-im2col conv + BatchNorm(batch stats) + ReLU
# ---------------------------------------------------------------------------

def _conv_bn_relu_kernel(x0_ref, x1_ref, w_ref, g_ref, b_ref, m_ref,
                         o_ref, y_ref, s_ref, ss_ref,
                         *, plan, lc, inv_count, imgs, front):
    """Grid = (phase, image_block); `imgs` images are processed per grid step.

    phase 0: per image b: y = sum_t W[t] @ x_flat[:, off_t : off_t + lc] (MXU, f32
             acc), y kept resident in VMEM scratch, per-channel sum / sumsq
             accumulated over the valid (masked) wide columns only.
    phase 1: out = relu(y * scale + shift) * mask, stored at lane offset `front`
             of a zeroed, lane-dense output block.
    """
    p = pl.program_id(0)
    nb = pl.program_id(1)
    cout = w_ref.shape[1]
    ltot = o_ref.shape[-1]

    @pl.when((p == 0) & (nb == 0))
    def _init():
        s_ref[...] = jnp.zeros_like(s_ref)
        ss_ref[...] = jnp.zeros_like(ss_ref)

    @pl.when(p == 0)
    def _conv_and_stats():
        mask = m_ref[...]                                    # (1, lc) f32
        s_acc = jnp.zeros((cout, 1), jnp.float32)
        ss_acc = jnp.zeros((cout, 1), jnp.float32)
        for b in range(imgs):                                # static unroll over images
            xb = (x0_ref[b], x1_ref[b])                      # (C_i, L_i) bf16 values
            acc = jnp.zeros((cout, lc), jnp.float32)
            # TODO(synk): fold the tap loop into a single (Cout, T*C)x(T*C, lc)
            # MXU contraction when Cout/Cin are production-sized (K is 4/8 here).
            for t, (r, off) in enumerate(plan):              # static tap loop (9 / 18)
                acc = acc + jnp.dot(w_ref[t], xb[r][:, off:off + lc],
                                    preferred_element_type=jnp.float32)
            # TODO(synk): E[y^2]-E[y]^2 is cancellation-prone at very large N*H*W;
            # switch to a shifted / Welford accumulation if this is scaled up.
            ym = acc * mask
            s_acc = s_acc + jnp.sum(ym, axis=1, keepdims=True)
            ss_acc = ss_acc + jnp.sum(ym * acc, axis=1, keepdims=True)
            y_ref[nb * imgs + b] = acc.astype(y_ref.dtype)
        s_ref[...] += s_acc
        ss_ref[...] += ss_acc

    @pl.when(p == 1)
    def _bn_relu():
        # BN scale/shift hoisted: computed once (first phase-1 step); the raw
        # sum/sumsq scratch is then reused to hold (scale, shift).
        @pl.when(nb == 0)
        def _finalize_stats():
            mean = s_ref[...] * inv_count
            var = ss_ref[...] * inv_count - mean * mean       # biased variance
            scale = lax.rsqrt(var + EPS) * g_ref[...]
            s_ref[...] = scale
            ss_ref[...] = b_ref[...] - mean * scale
        scale = s_ref[...]                                    # (Cout, 1)
        shift = ss_ref[...]
        mask = m_ref[...]
        dense = (front == 0) and (lc == ltot)
        if not dense:
            o_ref[...] = jnp.zeros_like(o_ref)                # halo / tail lanes
        for b in range(imgs):
            y = y_ref[nb * imgs + b].astype(jnp.float32)      # (Cout, lc)
            res = (jnp.maximum(y * scale + shift, 0.0) * mask).astype(o_ref.dtype)
            if dense:
                o_ref[b] = res
            else:
                o_ref[b, :, front:front + lc] = res


# ---------------------------------------------------------------------------
# Wrapper around the fused kernel
# ---------------------------------------------------------------------------

def _fused_conv_bn_relu(xs, plan, wmat, gamma, beta, *,
                        lc, mask_valid, count, out_lanes, front, out_dtype):
    """xs: two channel-major flat operands, each (N, C_i, L_i) bf16, zero-padded so
    every tap slice [off, off + lc) is in range.
    plan: static tuple of (operand_index, lane_offset), one entry per wmat[t].
    wmat: (T, Cout, C) bf16 tap weights.
    Returns (N, Cout, out_lanes): relu(BN(conv)) written at lane offset `front`
    of each (otherwise zero) image-channel row; masked wide columns are zero."""
    N = xs[0].shape[0]
    Cout = wmat.shape[1]
    B = _pick_image_block(N, Cout)
    NB = N // B

    mask = mask_valid.astype(jnp.float32).reshape(1, lc)
    gamma = gamma.astype(jnp.float32).reshape(Cout, 1)
    beta = beta.astype(jnp.float32).reshape(Cout, 1)
    inv_count = 1.0 / float(count)
    # bf16 raw-conv scratch when the consumer is bf16 anyway (halves resident VMEM).
    y_dtype = (jnp.bfloat16 if jnp.dtype(out_dtype) == jnp.dtype(jnp.bfloat16)
               else jnp.float32)

    # Phase 1 keeps the last phase-0 input block resident -> no extra input DMA.
    x_map = lambda p, nb: ((1 - p) * nb + p * (NB - 1), 0, 0)

    # Explicit VMEM budget: resident y scratch + double-buffered in/out blocks.
    isz = lambda dt: jnp.dtype(dt).itemsize
    need = N * Cout * lc * isz(y_dtype)                               # resident scratch
    need += sum(2 * B * x.shape[1] * x.shape[2] * isz(x.dtype) for x in xs)
    need += 2 * B * Cout * out_lanes * isz(out_dtype)
    need += 2 * math.prod(wmat.shape) * isz(wmat.dtype)
    need += 2 * (lc + 4 * Cout) * 4
    vmem_limit = int(min(64 << 20, max(32 << 20, (need * 3) // 2)))

    return pl.pallas_call(
        functools.partial(_conv_bn_relu_kernel, plan=tuple(plan), lc=lc,
                          inv_count=inv_count, imgs=B, front=front),
        out_shape=jax.ShapeDtypeStruct((N, Cout, out_lanes), out_dtype),
        grid_spec=pltpu.PrefetchScalarGridSpec(
            num_scalar_prefetch=0,
            grid=(2, NB),                                     # (phase, image block)
            in_specs=[
                pl.BlockSpec((B,) + xs[0].shape[1:], x_map),
                pl.BlockSpec((B,) + xs[1].shape[1:], x_map),
                pl.BlockSpec(wmat.shape, lambda p, nb: (0, 0, 0)),
                pl.BlockSpec((Cout, 1), lambda p, nb: (0, 0)),
                pl.BlockSpec((Cout, 1), lambda p, nb: (0, 0)),
                pl.BlockSpec((1, lc), lambda p, nb: (0, 0)),
            ],
            # Output block stays resident through phase 0 (never written there),
            # then is written exactly once per image block in phase 1.
            out_specs=pl.BlockSpec((B, Cout, out_lanes), lambda p, nb: (p * nb, 0, 0)),
            scratch_shapes=[
                pltpu.VMEM((N, Cout, lc), y_dtype),           # raw conv output (resident)
                pltpu.VMEM((Cout, 1), jnp.float32),           # per-channel sum  -> BN scale
                pltpu.VMEM((Cout, 1), jnp.float32),           # per-channel sum2 -> BN shift
            ],
        ),
        compiler_params=pltpu.CompilerParams(
            # TODO(synk): v7x -- per-core partial stats so this can be "parallel".
            dimension_semantics=("arbitrary", "arbitrary"),
            vmem_limit_bytes=vmem_limit),
    )(xs[0], xs[1], wmat, gamma, beta, mask)


# ---------------------------------------------------------------------------
# Conv2x forward (NCHW in / NCHW out, matches PyTorch)
# ---------------------------------------------------------------------------

def _tap_weights(w_oihw):
    """(Cout, Cin, 3, 3) -> (9, Cout, Cin), tap-major (dy, dx)."""
    Cout, Cin, kh, kw = w_oihw.shape
    return jnp.transpose(w_oihw, (2, 3, 0, 1)).reshape(kh * kw, Cout, Cin)


def conv2x_forward(x_nchw, rem_nchw, params):
    N, Cin, H, W = x_nchw.shape
    Cout = params["w1"].shape[0]
    assert H % 2 == 0 and W % 2 == 0
    Ho, Wo = H // 2, W // 2
    # Mirrors the module's `assert x.size() == rem.size()` after conv1.
    assert rem_nchw.shape == (N, Cout, Ho, Wo), rem_nchw.shape

    Wp, Hp = W + 2, H + 2            # padded input width == wide-output row stride
    lc = _round_up(Ho * Wp, LANE)    # lane-dense wide compute width (both convs)
    # Wide column j is a real output pixel iff j < Ho*Wp and j % Wp < Wo.
    j = jnp.arange(lc)
    mask_valid = (j < Ho * Wp) & ((j % Wp) < Wo)
    count = N * Ho * Wo

    off2_max = 2 * Wp + 2            # largest conv2 tap offset (stride 1, row stride Wp)
    front1 = Wp + 1                  # conv1 data offset == zero-padded flat layout for conv2
    l1_lanes = _round_up(max(front1 + lc, off2_max + lc), LANE)

    # --- conv1: 3x3 / stride 2 / pad 1 + BN + ReLU --------------------------
    xf = jnp.pad(x_nchw.astype(jnp.bfloat16), ((0, 0), (0, 0), (1, 1), (1, 1)))
    xf = xf.reshape(N, Cin, Hp * Wp)
    # Even/odd lane phases turn the stride-2 taps into contiguous slices.
    x_even, x_odd = xf[:, :, 0::2], xf[:, :, 1::2]
    l_in1 = _round_up(off2_max // 2 + lc, LANE)
    pad1 = l_in1 - x_even.shape[-1]
    x_even = jnp.pad(x_even, ((0, 0), (0, 0), (0, pad1)))
    x_odd = jnp.pad(x_odd, ((0, 0), (0, 0), (0, pad1)))
    plan1 = []
    for dy in range(3):
        for dx in range(3):
            off = dy * Wp + dx
            plan1.append((off % 2, off // 2))
    w1m = _tap_weights(params["w1"]).astype(jnp.bfloat16)
    y1 = _fused_conv_bn_relu(
        [x_even, x_odd], plan1, w1m, params["g1"], params["b1"],
        lc=lc, mask_valid=mask_valid, count=count,
        out_lanes=l1_lanes, front=front1, out_dtype=jnp.bfloat16)
    # y1 is already the zero-padded flat (row stride Wp, pad=1) image that conv2
    # reads: no un-widen slice / re-pad HBM round trips between the two convs.

    # --- conv2: 3x3 / stride 1 / pad 1 on concat([y1, rem]) + BN + ReLU -----
    # The concat is never materialized: two channel-group operands + split weights.
    rem_f = jnp.pad(rem_nchw.astype(jnp.bfloat16),
                    ((0, 0), (0, 0), (1, 1), (1, Wp - 1 - Wo)))   # rows of width Wp
    rem_f = rem_f.reshape(N, Cout, (Ho + 2) * Wp)
    l_in2 = _round_up(off2_max + lc, LANE)
    rem_f = jnp.pad(rem_f, ((0, 0), (0, 0), (0, l_in2 - rem_f.shape[-1])))
    plan2 = []
    for dy in range(3):
        for dx in range(3):
            off = dy * Wp + dx
            plan2 += [(0, off), (1, off)]
    w2a = _tap_weights(params["w2"][:, :Cout])    # acts on the conv1 channels
    w2b = _tap_weights(params["w2"][:, Cout:])    # acts on the rem channels
    w2m = jnp.stack([w2a, w2b], axis=1).reshape(18, Cout, Cout).astype(jnp.bfloat16)
    out = _fused_conv_bn_relu(
        [y1, rem_f], plan2, w2m, params["g2"], params["b2"],
        lc=lc, mask_valid=mask_valid, count=count,
        out_lanes=lc, front=0, out_dtype=jnp.float32)
    # Un-widen only the final result: (N, Cout, lc) -> NCHW.
    return out[:, :, :Ho * Wp].reshape(N, Cout, Ho, Wp)[:, :, :, :Wo]


# ---------------------------------------------------------------------------
# Pure-JAX f32 reference (verification only)
# ---------------------------------------------------------------------------

def _ref_conv_bn_relu(x_nchw, w, gamma, beta, stride):
    y = lax.conv_general_dilated(
        x_nchw, w, (stride, stride), [(1, 1), (1, 1)],
        dimension_numbers=("NCHW", "OIHW", "NCHW"))
    mean = y.mean(axis=(0, 2, 3), keepdims=True)
    var = ((y - mean) ** 2).mean(axis=(0, 2, 3), keepdims=True)
    yn = (y - mean) / jnp.sqrt(var + EPS)
    yn = yn * gamma.reshape(1, -1, 1, 1) + beta.reshape(1, -1, 1, 1)
    return jnp.maximum(yn, 0.0)


def _ref_conv2x(x, rem, params):
    y1 = _ref_conv_bn_relu(x, params["w1"], params["g1"], params["b1"], 2)
    cat = jnp.concatenate([y1, rem], axis=1)
    return _ref_conv_bn_relu(cat, params["w2"], params["g2"], params["b2"], 1)


# ---------------------------------------------------------------------------
# Main
# ---------------------------------------------------------------------------

if __name__ == "__main__":
    in_channels, out_channels = 4, 8
    N, H, W = 2, 16, 16

    key = jax.random.PRNGKey(0)
    kx, kr, kw1, kw2, kg1, kb1, kg2, kb2 = jax.random.split(key, 8)

    x = jax.random.normal(kx, (N, in_channels, H, W), jnp.float32)
    rem = jax.random.normal(kr, (N, out_channels, H // 2, W // 2), jnp.float32)

    params = {
        # conv1: Conv2d(in, out, 3, stride=2, pad=1, bias=False)
        "w1": jax.random.normal(kw1, (out_channels, in_channels, 3, 3), jnp.float32) * 0.1,
        "g1": 1.0 + 0.1 * jax.random.normal(kg1, (out_channels,), jnp.float32),
        "b1": 0.1 * jax.random.normal(kb1, (out_channels,), jnp.float32),
        # conv2: Conv2d(2*out, out, 3, stride=1, pad=1, bias=False)
        "w2": jax.random.normal(kw2, (out_channels, 2 * out_channels, 3, 3), jnp.float32) * 0.1,
        "g2": 1.0 + 0.1 * jax.random.normal(kg2, (out_channels,), jnp.float32),
        "b2": 0.1 * jax.random.normal(kb2, (out_channels,), jnp.float32),
    }

    out = jax.jit(conv2x_forward)(x, rem, params)
    out = jax.block_until_ready(out)

    ref = jax.block_until_ready(_ref_conv2x(x, rem, params))
    assert out.shape == (N, out_channels, H // 2, W // 2), out.shape
    # bf16 matmul operands / bf16 intermediate -> relaxed tolerance vs f32 reference.
    max_err = float(jnp.max(jnp.abs(out - ref)))
    assert jnp.allclose(out, ref, atol=5e-2, rtol=5e-2), max_err

    print("KERNEL_OK")
</pallas_src>

<mosaic_0001>
module attributes {stable_mosaic.version = 11 : i64} {
  func.func @_conv_bn_relu_kernel(%arg0: i32, %arg1: i32, %arg2: memref<2x4x384xbf16, #tpu.memory_space<vmem>>, %arg3: memref<2x4x384xbf16, #tpu.memory_space<vmem>>, %arg4: memref<9x8x4xbf16, #tpu.memory_space<vmem>>, %arg5: memref<8x1xf32, #tpu.memory_space<vmem>>, %arg6: memref<8x1xf32, #tpu.memory_space<vmem>>, %arg7: memref<1x256xf32, #tpu.memory_space<vmem>>, %arg8: memref<2x8x384xbf16, #tpu.memory_space<vmem>>, %arg9: memref<2x8x256xbf16, #tpu.memory_space<vmem>>, %arg10: memref<8x1xf32, #tpu.memory_space<vmem>>, %arg11: memref<8x1xf32, #tpu.memory_space<vmem>>) attributes {dimension_semantics = [#tpu.dimension_semantics<arbitrary>, #tpu.dimension_semantics<arbitrary>], iteration_bounds = array<i64: 2, 1>, scalar_prefetch = 0 : i64, scratch_operands = 3 : i64, tpu.core_type = #tpu.core_type<tc>, window_params = [{transform_indices = @transform_0, window_bounds = array<i64: 2, 4, 384>}, {transform_indices = @transform_1, window_bounds = array<i64: 2, 4, 384>}, {pipeline_mode = #tpu.pipeline_mode<synchronous>, transform_indices = @transform_2, window_bounds = array<i64: 9, 8, 4>}, {pipeline_mode = #tpu.pipeline_mode<synchronous>, transform_indices = @transform_3, window_bounds = array<i64: 8, 1>}, {pipeline_mode = #tpu.pipeline_mode<synchronous>, transform_indices = @transform_4, window_bounds = array<i64: 8, 1>}, {pipeline_mode = #tpu.pipeline_mode<synchronous>, transform_indices = @transform_5, window_bounds = array<i64: 1, 256>}, {transform_indices = @transform_6, window_bounds = array<i64: 2, 8, 384>}]} {
    %c0_i32 = arith.constant 0 : i32
    %0 = arith.cmpi eq, %arg0, %c0_i32 : i32
    %c0_i32_0 = arith.constant 0 : i32
    %1 = arith.cmpi eq, %arg1, %c0_i32_0 : i32
    %2 = arith.andi %0, %1 : i1
    %3 = arith.extui %2 : i1 to i32
    %c0_i32_1 = arith.constant 0 : i32
    %4 = arith.cmpi ne, %3, %c0_i32_1 : i32
    scf.if %4 {
      %cst = arith.constant 0.000000e+00 : f32
      %11 = vector.broadcast %cst : f32 to vector<8x1xf32>
      %c0 = arith.constant 0 : index
      %c0_5 = arith.constant 0 : index
      %12 = vector.load %arg10[%c0, %c0_5] : memref<8x1xf32, #tpu.memory_space<vmem>>, vector<8x1xf32>
      tpu.vector_store %arg10[%c0, %c0_5], %11 {strides = array<i32>} : memref<8x1xf32, #tpu.memory_space<vmem>>, vector<8x1xf32>,
      %cst_6 = arith.constant 0.000000e+00 : f32
      %13 = vector.broadcast %cst_6 : f32 to vector<8x1xf32>
      %c0_7 = arith.constant 0 : index
      %c0_8 = arith.constant 0 : index
      %14 = vector.load %arg11[%c0_7, %c0_8] : memref<8x1xf32, #tpu.memory_space<vmem>>, vector<8x1xf32>
      tpu.vector_store %arg11[%c0_7, %c0_8], %13 {strides = array<i32>} : memref<8x1xf32, #tpu.memory_space<vmem>>, vector<8x1xf32>,
    } else {
    }
    %c0_i32_2 = arith.constant 0 : i32
    %5 = arith.cmpi eq, %arg0, %c0_i32_2 : i32
    %6 = arith.extui %5 : i1 to i32
    %c0_i32_3 = arith.constant 0 : i32
    %7 = arith.cmpi ne, %6, %c0_i32_3 : i32
    scf.if %7 {
      %c0 = arith.constant 0 : index
      %c0_5 = arith.constant 0 : index
      %11 = vector.load %arg7[%c0, %c0_5] : memref<1x256xf32, #tpu.memory_space<vmem>>, vector<1x256xf32>
      %cst = arith.constant 0.000000e+00 : f32
      %12 = vector.broadcast %cst : f32 to vector<8x1xf32>
      %cst_6 = arith.constant 0.000000e+00 : f32
      %13 = vector.broadcast %cst_6 : f32 to vector<8x1xf32>
      %c0_7 = arith.constant 0 : index
      %c0_8 = arith.constant 0 : index
      %c0_9 = arith.constant 0 : index
      %14 = vector.load %arg2[%c0_7, %c0_8, %c0_9] : memref<2x4x384xbf16, #tpu.memory_space<vmem>>, vector<1x4x384xbf16>
      %15 = vector.shape_cast %14 : vector<1x4x384xbf16> to vector<4x384xbf16>
      %c0_10 = arith.constant 0 : index
      %c0_11 = arith.constant 0 : index
      %c0_12 = arith.constant 0 : index
      %16 = vector.load %arg3[%c0_10, %c0_11, %c0_12] : memref<2x4x384xbf16, #tpu.memory_space<vmem>>, vector<1x4x384xbf16>
      %17 = vector.shape_cast %16 : vector<1x4x384xbf16> to vector<4x384xbf16>
      %cst_13 = arith.constant 0.000000e+00 : f32
      %18 = vector.broadcast %cst_13 : f32 to vector<8x256xf32>
      %c0_14 = arith.constant 0 : index
      %c0_15 = arith.constant 0 : index
      %c0_16 = arith.constant 0 : index
      %19 = vector.load %arg4[%c0_14, %c0_15, %c0_16] : memref<9x8x4xbf16, #tpu.memory_space<vmem>>, vector<1x8x4xbf16>
      %20 = vector.shape_cast %19 : vector<1x8x4xbf16> to vector<8x4xbf16>
      %21 = vector.extract_strided_slice %15 {offsets = [0, 0], sizes = [4, 256], strides = [1, 1]} : vector<4x384xbf16> to vector<4x256xbf16>
      %cst_17 = arith.constant dense<0.000000e+00> : vector<8x256xf32>
      %22 = tpu.matmul %20, %21, %cst_17 {dimension_numbers = #tpu.dot_dimension_numbers<[1], [0], [0], [1], [0, 0, 1, 1], [], []>} : vector<8x4xbf16>, vector<4x256xbf16>, vector<8x256xf32> -> vector<8x256xf32>
      %23 = arith.addf %18, %22 : vector<8x256xf32>
      %c1 = arith.constant 1 : index
      %c0_18 = arith.constant 0 : index
      %c0_19 = arith.constant 0 : index
      %24 = vector.load %arg4[%c1, %c0_18, %c0_19] : memref<9x8x4xbf16, #tpu.memory_space<vmem>>, vector<1x8x4xbf16>
      %25 = vector.shape_cast %24 : vector<1x8x4xbf16> to vector<8x4xbf16>
      %26 = vector.extract_strided_slice %17 {offsets = [0, 0], sizes = [4, 256], strides = [1, 1]} : vector<4x384xbf16> to vector<4x256xbf16>
      %cst_20 = arith.constant dense<0.000000e+00> : vector<8x256xf32>
      %27 = tpu.matmul %25, %26, %cst_20 {dimension_numbers = #tpu.dot_dimension_numbers<[1], [0], [0], [1], [0, 0, 1, 1], [], []>} : vector<8x4xbf16>, vector<4x256xbf16>, vector<8x256xf32> -> vector<8x256xf32>
      %28 = arith.addf %23, %27 : vector<8x256xf32>
      %c2 = arith.constant 2 : index
      %c0_21 = arith.constant 0 : index
      %c0_22 = arith.constant 0 : index
      %29 = vector.load %arg4[%c2, %c0_21, %c0_22] : memref<9x8x4xbf16, #tpu.memory_space<vmem>>, vector<1x8x4xbf16>
      %30 = vector.shape_cast %29 : vector<1x8x4xbf16> to vector<8x4xbf16>
      %31 = vector.extract_strided_slice %15 {offsets = [0, 1], sizes = [4, 256], strides = [1, 1]} : vector<4x384xbf16> to vector<4x256xbf16>
      %cst_23 = arith.constant dense<0.000000e+00> : vector<8x256xf32>
      %32 = tpu.matmul %30, %31, %cst_23 {dimension_numbers = #tpu.dot_dimension_numbers<[1], [0], [0], [1], [0, 0, 1, 1], [], []>} : vector<8x4xbf16>, vector<4x256xbf16>, vector<8x256xf32> -> vector<8x256xf32>
      %33 = arith.addf %28, %32 : vector<8x256xf32>
      %c3 = arith.constant 3 : index
      %c0_24 = arith.constant 0 : index
      %c0_25 = arith.constant 0 : index
      %34 = vector.load %arg4[%c3, %c0_24, %c0_25] : memref<9x8x4xbf16, #tpu.memory_space<vmem>>, vector<1x8x4xbf16>
      %35 = vector.shape_cast %34 : vector<1x8x4xbf16> to vector<8x4xbf16>
      %36 = vector.extract_strided_slice %15 {offsets = [0, 9], sizes = [4, 256], strides = [1, 1]} : vector<4x384xbf16> to vector<4x256xbf16>
      %cst_26 = arith.constant dense<0.000000e+00> : vector<8x256xf32>
      %37 = tpu.matmul %35, %36, %cst_26 {dimension_numbers = #tpu.dot_dimension_numbers<[1], [0], [0], [1], [0, 0, 1, 1], [], []>} : vector<8x4xbf16>, vector<4x256xbf16>, vector<8x256xf32> -> vector<8x256xf32>
      %38 = arith.addf %33, %37 : vector<8x256xf32>
      %c4 = arith.constant 4 : index
      %c0_27 = arith.constant 0 : index
      %c0_28 = arith.constant 0 : index
      %39 = vector.load %arg4[%c4, %c0_27, %c0_28] : memref<9x8x4xbf16, #tpu.memory_space<vmem>>, vector<1x8x4xbf16>
      %40 = vector.shape_cast %39 : vector<1x8x4xbf16> to vector<8x4xbf16>
      %41 = vector.extract_strided_slice %17 {offsets = [0, 9], sizes = [4, 256], strides = [1, 1]} : vector<4x384xbf16> to vector<4x256xbf16>
      %cst_29 = arith.constant dense<0.000000e+00> : vector<8x256xf32>
      %42 = tpu.matmul %40, %41, %cst_29 {dimension_numbers = #tpu.dot_dimension_numbers<[1], [0], [0], [1], [0, 0, 1, 1], [], []>} : vector<8x4xbf16>, vector<4x256xbf16>, vector<8x256xf32> -> vector<8x256xf32>
      %43 = arith.addf %38, %42 : vector<8x256xf32>
      %c5 = arith.constant 5 : index
      %c0_30 = arith.constant 0 : index
      %c0_31 = arith.constant 0 : index
      %44 = vector.load %arg4[%c5, %c0_30, %c0_31] : memref<9x8x4xbf16, #tpu.memory_space<vmem>>, vector<1x8x4xbf16>
      %45 = vector.shape_cast %44 : vector<1x8x4xbf16> to vector<8x4xbf16>
      %46 = vector.extract_strided_slice %15 {offsets = [0, 10], sizes = [4, 256], strides = [1, 1]} : vector<4x384xbf16> to vector<4x256xbf16>
      %cst_32 = arith.constant dense<0.000000e+00> : vector<8x256xf32>
      %47 = tpu.matmul %45, %46, %cst_32 {dimension_numbers = #tpu.dot_dimension_numbers<[1], [0], [0], [1], [0, 0, 1, 1], [], []>} : vector<8x4xbf16>, vector<4x256xbf16>, vector<8x256xf32> -> vector<8x256xf32>
      %48 = arith.addf %43, %47 : vector<8x256xf32>
      %c6 = arith.constant 6 : index
      %c0_33 = arith.constant 0 : index
      %c0_34 = arith.constant 0 : index
      %49 = vector.load %arg4[%c6, %c0_33, %c0_34] : memref<9x8x4xbf16, #tpu.memory_space<vmem>>, vector<1x8x4xbf16>
      %50 = vector.shape_cast %49 : vector<1x8x4xbf16> to vector<8x4xbf16>
      %51 = vector.extract_strided_slice %15 {offsets = [0, 18], sizes = [4, 256], strides = [1, 1]} : vector<4x384xbf16> to vector<4x256xbf16>
      %cst_35 = arith.constant dense<0.000000e+00> : vector<8x256xf32>
      %52 = tpu.matmul %50, %51, %cst_35 {dimension_numbers = #tpu.dot_dimension_numbers<[1], [0], [0], [1], [0, 0, 1, 1], [], []>} : vector<8x4xbf16>, vector<4x256xbf16>, vector<8x256xf32> -> vector<8x256xf32>
      %53 = arith.addf %48, %52 : vector<8x256xf32>
      %c7 = arith.constant 7 : index
      %c0_36 = arith.constant 0 : index
      %c0_37 = arith.constant 0 : index
      %54 = vector.load %arg4[%c7, %c0_36, %c0_37] : memref<9x8x4xbf16, #tpu.memory_space<vmem>>, vector<1x8x4xbf16>
      %55 = vector.shape_cast %54 : vector<1x8x4xbf16> to vector<8x4xbf16>
      %56 = vector.extract_strided_slice %17 {offsets = [0, 18], sizes = [4, 256], strides = [1, 1]} : vector<4x384xbf16> to vector<4x256xbf16>
      %cst_38 = arith.constant dense<0.000000e+00> : vector<8x256xf32>
      %57 = tpu.matmul %55, %56, %cst_38 {dimension_numbers = #tpu.dot_dimension_numbers<[1], [0], [0], [1], [0, 0, 1, 1], [], []>} : vector<8x4xbf16>, vector<4x256xbf16>, vector<8x256xf32> -> vector<8x256xf32>
      %58 = arith.addf %53, %57 : vector<8x256xf32>
      %c8 = arith.constant 8 : index
      %c0_39 = arith.constant 0 : index
      %c0_40 = arith.constant 0 : index
      %59 = vector.load %arg4[%c8, %c0_39, %c0_40] : memref<9x8x4xbf16, #tpu.memory_space<vmem>>, vector<1x8x4xbf16>
      %60 = vector.shape_cast %59 : vector<1x8x4xbf16> to vector<8x4xbf16>
      %61 = vector.extract_strided_slice %15 {offsets = [0, 19], sizes = [4, 256], strides = [1, 1]} : vector<4x384xbf16> to vector<4x256xbf16>
      %cst_41 = arith.constant dense<0.000000e+00> : vector<8x256xf32>
      %62 = tpu.matmul %60, %61, %cst_41 {dimension_numbers = #tpu.dot_dimension_numbers<[1], [0], [0], [1], [0, 0, 1, 1], [], []>} : vector<8x4xbf16>, vector<4x256xbf16>, vector<8x256xf32> -> vector<8x256xf32>
      %63 = arith.addf %58, %62 : vector<8x256xf32>
      %64 = vector.broadcast %11 : vector<1x256xf32> to vector<8x256xf32>
      %65 = arith.mulf %63, %64 : vector<8x256xf32>
      %cst_42 = arith.constant dense<0.000000e+00> : vector<8xf32>
      %66 = vector.multi_reduction <add>, %65, %cst_42 [1] : vector<8x256xf32> to vector<8xf32>
      %67 = vector.shape_cast %66 : vector<8xf32> to vector<8x1xf32>
      %68 = arith.addf %12, %67 : vector<8x1xf32>
      %69 = arith.mulf %65, %63 : vector<8x256xf32>
      %cst_43 = arith.constant dense<0.000000e+00> : vector<8xf32>
      %70 = vector.multi_reduction <add>, %69, %cst_43 [1] : vector<8x256xf32> to vector<8xf32>
      %71 = vector.shape_cast %70 : vector<8xf32> to vector<8x1xf32>
      %72 = arith.addf %13, %71 : vector<8x1xf32>
      %73 = arith.truncf %63 : vector<8x256xf32> to vector<8x256xbf16>
      %c2_i32 = arith.constant 2 : i32
      %74 = arith.muli %arg1, %c2_i32 : i32
      %c0_i32_44 = arith.constant 0 : i32
      %75 = arith.addi %74, %c0_i32_44 : i32
      %76 = arith.index_cast %75 : i32 to index
      %c0_45 = arith.constant 0 : index
      %c0_46 = arith.constant 0 : index
      %77 = vector.load %arg9[%76, %c0_45, %c0_46] : memref<2x8x256xbf16, #tpu.memory_space<vmem>>, vector<1x8x256xbf16>
      %78 = vector.shape_cast %77 : vector<1x8x256xbf16> to vector<8x256xbf16>
      %79 = vector.shape_cast %73 : vector<8x256xbf16> to vector<1x8x256xbf16>
      tpu.vector_store %arg9[%76, %c0_45, %c0_46], %79 {strides = array<i32>} : memref<2x8x256xbf16, #tpu.memory_space<vmem>>, vector<1x8x256xbf16>,
      %c1_47 = arith.constant 1 : index
      %c0_48 = arith.constant 0 : index
      %c0_49 = arith.constant 0 : index
      %80 = vector.load %arg2[%c1_47, %c0_48, %c0_49] : memref<2x4x384xbf16, #tpu.memory_space<vmem>>, vector<1x4x384xbf16>
      %81 = vector.shape_cast %80 : vector<1x4x384xbf16> to vector<4x384xbf16>
      %c1_50 = arith.constant 1 : index
      %c0_51 = arith.constant 0 : index
      %c0_52 = arith.constant 0 : index
      %82 = vector.load %arg3[%c1_50, %c0_51, %c0_52] : memref<2x4x384xbf16, #tpu.memory_space<vmem>>, vector<1x4x384xbf16>
      %83 = vector.shape_cast %82 : vector<1x4x384xbf16> to vector<4x384xbf16>
      %cst_53 = arith.constant 0.000000e+00 : f32
      %84 = vector.broadcast %cst_53 : f32 to vector<8x256xf32>
      %c0_54 = arith.constant 0 : index
      %c0_55 = arith.constant 0 : index
      %c0_56 = arith.constant 0 : index
      %85 = vector.load %arg4[%c0_54, %c0_55, %c0_56] : memref<9x8x4xbf16, #tpu.memory_space<vmem>>, vector<1x8x4xbf16>
      %86 = vector.shape_cast %85 : vector<1x8x4xbf16> to vector<8x4xbf16>
      %87 = vector.extract_strided_slice %81 {offsets = [0, 0], sizes = [4, 256], strides = [1, 1]} : vector<4x384xbf16> to vector<4x256xbf16>
      %cst_57 = arith.constant dense<0.000000e+00> : vector<8x256xf32>
      %88 = tpu.matmul %86, %87, %cst_57 {dimension_numbers = #tpu.dot_dimension_numbers<[1], [0], [0], [1], [0, 0, 1, 1], [], []>} : vector<8x4xbf16>, vector<4x256xbf16>, vector<8x256xf32> -> vector<8x256xf32>
      %89 = arith.addf %84, %88 : vector<8x256xf32>
      %c1_58 = arith.constant 1 : index
      %c0_59 = arith.constant 0 : index
      %c0_60 = arith.constant 0 : index
      %90 = vector.load %arg4[%c1_58, %c0_59, %c0_60] : memref<9x8x4xbf16, #tpu.memory_space<vmem>>, vector<1x8x4xbf16>
      %91 = vector.shape_cast %90 : vector<1x8x4xbf16> to vector<8x4xbf16>
      %92 = vector.extract_strided_slice %83 {offsets = [0, 0], sizes = [4, 256], strides = [1, 1]} : vector<4x384xbf16> to vector<4x256xbf16>
      %cst_61 = arith.constant dense<0.000000e+00> : vector<8x256xf32>
      %93 = tpu.matmul %91, %92, %cst_61 {dimension_numbers = #tpu.dot_dimension_numbers<[1], [0], [0], [1], [0, 0, 1, 1], [], []>} : vector<8x4xbf16>, vector<4x256xbf16>, vector<8x256xf32> -> vector<8x256xf32>
      %94 = arith.addf %89, %93 : vector<8x256xf32>
      %c2_62 = arith.constant 2 : index
      %c0_63 = arith.constant 0 : index
      %c0_64 = arith.constant 0 : index
      %95 = vector.load %arg4[%c2_62, %c0_63, %c0_64] : memref<9x8x4xbf16, #tpu.memory_space<vmem>>, vector<1x8x4xbf16>
      %96 = vector.shape_cast %95 : vector<1x8x4xbf16> to vector<8x4xbf16>
      %97 = vector.extract_strided_slice %81 {offsets = [0, 1], sizes = [4, 256], strides = [1, 1]} : vector<4x384xbf16> to vector<4x256xbf16>
      %cst_65 = arith.constant dense<0.000000e+00> : vector<8x256xf32>
      %98 = tpu.matmul %96, %97, %cst_65 {dimension_numbers = #tpu.dot_dimension_numbers<[1], [0], [0], [1], [0, 0, 1, 1], [], []>} : vector<8x4xbf16>, vector<4x256xbf16>, vector<8x256xf32> -> vector<8x256xf32>
      %99 = arith.addf %94, %98 : vector<8x256xf32>
      %c3_66 = arith.constant 3 : index
      %c0_67 = arith.constant 0 : index
      %c0_68 = arith.constant 0 : index
      %100 = vector.load %arg4[%c3_66, %c0_67, %c0_68] : memref<9x8x4xbf16, #tpu.memory_space<vmem>>, vector<1x8x4xbf16>
      %101 = vector.shape_cast %100 : vector<1x8x4xbf16> to vector<8x4xbf16>
      %102 = vector.extract_strided_slice %81 {offsets = [0, 9], sizes = [4, 256], strides = [1, 1]} : vector<4x384xbf16> to vector<4x256xbf16>
      %cst_69 = arith.constant dense<0.000000e+00> : vector<8x256xf32>
      %103 = tpu.matmul %101, %102, %cst_69 {dimension_numbers = #tpu.dot_dimension_numbers<[1], [0], [0], [1], [0, 0, 1, 1], [], []>} : vector<8x4xbf16>, vector<4x256xbf16>, vector<8x256xf32> -> vector<8x256xf32>
      %104 = arith.addf %99, %103 : vector<8x256xf32>
      %c4_70 = arith.constant 4 : index
      %c0_71 = arith.constant 0 : index
      %c0_72 = arith.constant 0 : index
      %105 = vector.load %arg4[%c4_70, %c0_71, %c0_72] : memref<9x8x4xbf16, #tpu.memory_space<vmem>>, vector<1x8x4xbf16>
      %106 = vector.shape_cast %105 : vector<1x8x4xbf16> to vector<8x4xbf16>
      %107 = vector.extract_strided_slice %83 {offsets = [0, 9], sizes = [4, 256], strides = [1, 1]} : vector<4x384xbf16> to vector<4x256xbf16>
      %cst_73 = arith.constant dense<0.000000e+00> : vector<8x256xf32>
      %108 = tpu.matmul %106, %107, %cst_73 {dimension_numbers = #tpu.dot_dimension_numbers<[1], [0], [0], [1], [0, 0, 1, 1], [], []>} : vector<8x4xbf16>, vector<4x256xbf16>, vector<8x256xf32> -> vector<8x256xf32>
      %109 = arith.addf %104, %108 : vector<8x256xf32>
      %c5_74 = arith.constant 5 : index
      %c0_75 = arith.constant 0 : index
      %c0_76 = arith.constant 0 : index
      %110 = vector.load %arg4[%c5_74, %c0_75, %c0_76] : memref<9x8x4xbf16, #tpu.memory_space<vmem>>, vector<1x8x4xbf16>
      %111 = vector.shape_cast %110 : vector<1x8x4xbf16> to vector<8x4xbf16>
      %112 = vector.extract_strided_slice %81 {offsets = [0, 10], sizes = [4, 256], strides = [1, 1]} : vector<4x384xbf16> to vector<4x256xbf16>
      %cst_77 = arith.constant dense<0.000000e+00> : vector<8x256xf32>
      %113 = tpu.matmul %111, %112, %cst_77 {dimension_numbers = #tpu.dot_dimension_numbers<[1], [0], [0], [1], [0, 0, 1, 1], [], []>} : vector<8x4xbf16>, vector<4x256xbf16>, vector<8x256xf32> -> vector<8x256xf32>
      %114 = arith.addf %109, %113 : vector<8x256xf32>
      %c6_78 = arith.constant 6 : index
      %c0_79 = arith.constant 0 : index
      %c0_80 = arith.constant 0 : index
      %115 = vector.load %arg4[%c6_78, %c0_79, %c0_80] : memref<9x8x4xbf16, #tpu.memory_space<vmem>>, vector<1x8x4xbf16>
      %116 = vector.shape_cast %115 : vector<1x8x4xbf16> to vector<8x4xbf16>
      %117 = vector.extract_strided_slice %81 {offsets = [0, 18], sizes = [4, 256], strides = [1, 1]} : vector<4x384xbf16> to vector<4x256xbf16>
      %cst_81 = arith.constant dense<0.000000e+00> : vector<8x256xf32>
      %118 = tpu.matmul %116, %117, %cst_81 {dimension_numbers = #tpu.dot_dimension_numbers<[1], [0], [0], [1], [0, 0, 1, 1], [], []>} : vector<8x4xbf16>, vector<4x256xbf16>, vector<8x256xf32> -> vector<8x256xf32>
      %119 = arith.addf %114, %118 : vector<8x256xf32>
      %c7_82 = arith.constant 7 : index
      %c0_83 = arith.constant 0 : index
      %c0_84 = arith.constant 0 : index
      %120 = vector.load %arg4[%c7_82, %c0_83, %c0_84] : memref<9x8x4xbf16, #tpu.memory_space<vmem>>, vector<1x8x4xbf16>
      %121 = vector.shape_cast %120 : vector<1x8x4xbf16> to vector<8x4xbf16>
      %122 = vector.extract_strided_slice %83 {offsets = [0, 18], sizes = [4, 256], strides = [1, 1]} : vector<4x384xbf16> to vector<4x256xbf16>
      %cst_85 = arith.constant dense<0.000000e+00> : vector<8x256xf32>
      %123 = tpu.matmul %121, %122, %cst_85 {dimension_numbers = #tpu.dot_dimension_numbers<[1], [0], [0], [1], [0, 0, 1, 1], [], []>} : vector<8x4xbf16>, vector<4x256xbf16>, vector<8x256xf32> -> vector<8x256xf32>
      %124 = arith.addf %119, %123 : vector<8x256xf32>
      %c8_86 = arith.constant 8 : index
      %c0_87 = arith.constant 0 : index
      %c0_88 = arith.constant 0 : index
      %125 = vector.load %arg4[%c8_86, %c0_87, %c0_88] : memref<9x8x4xbf16, #tpu.memory_space<vmem>>, vector<1x8x4xbf16>
      %126 = vector.shape_cast %125 : vector<1x8x4xbf16> to vector<8x4xbf16>
      %127 = vector.extract_strided_slice %81 {offsets = [0, 19], sizes = [4, 256], strides = [1, 1]} : vector<4x384xbf16> to vector<4x256xbf16>
      %cst_89 = arith.constant dense<0.000000e+00> : vector<8x256xf32>
      %128 = tpu.matmul %126, %127, %cst_89 {dimension_numbers = #tpu.dot_dimension_numbers<[1], [0], [0], [1], [0, 0, 1, 1], [], []>} : vector<8x4xbf16>, vector<4x256xbf16>, vector<8x256xf32> -> vector<8x256xf32>
      %129 = arith.addf %124, %128 : vector<8x256xf32>
      %130 = vector.broadcast %11 : vector<1x256xf32> to vector<8x256xf32>
      %131 = arith.mulf %129, %130 : vector<8x256xf32>
      %cst_90 = arith.constant dense<0.000000e+00> : vector<8xf32>
      %132 = vector.multi_reduction <add>, %131, %cst_90 [1] : vector<8x256xf32> to vector<8xf32>
      %133 = vector.shape_cast %132 : vector<8xf32> to vector<8x1xf32>
      %134 = arith.addf %68, %133 : vector<8x1xf32>
      %135 = arith.mulf %131, %129 : vector<8x256xf32>
      %cst_91 = arith.constant dense<0.000000e+00> : vector<8xf32>
      %136 = vector.multi_reduction <add>, %135, %cst_91 [1] : vector<8x256xf32> to vector<8xf32>
      %137 = vector.shape_cast %136 : vector<8xf32> to vector<8x1xf32>
      %138 = arith.addf %72, %137 : vector<8x1xf32>
      %139 = arith.truncf %129 : vector<8x256xf32> to vector<8x256xbf16>
      %c2_i32_92 = arith.constant 2 : i32
      %140 = arith.muli %arg1, %c2_i32_92 : i32
      %c1_i32_93 = arith.constant 1 : i32
      %141 = arith.addi %140, %c1_i32_93 : i32
      %142 = arith.index_cast %141 : i32 to index
      %c0_94 = arith.constant 0 : index
      %c0_95 = arith.constant 0 : index
      %143 = vector.load %arg9[%142, %c0_94, %c0_95] : memref<2x8x256xbf16, #tpu.memory_space<vmem>>, vector<1x8x256xbf16>
      %144 = vector.shape_cast %143 : vector<1x8x256xbf16> to vector<8x256xbf16>
      %145 = vector.shape_cast %139 : vector<8x256xbf16> to vector<1x8x256xbf16>
      tpu.vector_store %arg9[%142, %c0_94, %c0_95], %145 {strides = array<i32>} : memref<2x8x256xbf16, #tpu.memory_space<vmem>>, vector<1x8x256xbf16>,
      %c0_96 = arith.constant 0 : index
      %c0_97 = arith.constant 0 : index
      %146 = vector.load %arg10[%c0_96, %c0_97] : memref<8x1xf32, #tpu.memory_space<vmem>>, vector<8x1xf32>
      %147 = arith.addf %146, %134 : vector<8x1xf32>
      %c0_98 = arith.constant 0 : index
      %c0_99 = arith.constant 0 : index
      %148 = vector.load %arg10[%c0_98, %c0_99] : memref<8x1xf32, #tpu.memory_space<vmem>>, vector<8x1xf32>
      tpu.vector_store %arg10[%c0_98, %c0_99], %147 {strides = array<i32>} : memref<8x1xf32, #tpu.memory_space<vmem>>, vector<8x1xf32>,
      %c0_100 = arith.constant 0 : index
      %c0_101 = arith.constant 0 : index
      %149 = vector.load %arg11[%c0_100, %c0_101] : memref<8x1xf32, #tpu.memory_space<vmem>>, vector<8x1xf32>
      %150 = arith.addf %149, %138 : vector<8x1xf32>
      %c0_102 = arith.constant 0 : index
      %c0_103 = arith.constant 0 : index
      %151 = vector.load %arg11[%c0_102, %c0_103] : memref<8x1xf32, #tpu.memory_space<vmem>>, vector<8x1xf32>
      tpu.vector_store %arg11[%c0_102, %c0_103], %150 {strides = array<i32>} : memref<8x1xf32, #tpu.memory_space<vmem>>, vector<8x1xf32>,
    } else {
    }
    %c1_i32 = arith.constant 1 : i32
    %8 = arith.cmpi eq, %arg0, %c1_i32 : i32
    %9 = arith.extui %8 : i1 to i32
    %c0_i32_4 = arith.constant 0 : i32
    %10 = arith.cmpi ne, %9, %c0_i32_4 : i32
    scf.if %10 {
      %c0_i32_5 = arith.constant 0 : i32
      %11 = arith.cmpi eq, %arg1, %c0_i32_5 : i32
      %12 = arith.extui %11 : i1 to i32
      %c0_i32_6 = arith.constant 0 : i32
      %13 = arith.cmpi ne, %12, %c0_i32_6 : i32
      scf.if %13 {
        %c0_28 = arith.constant 0 : index
        %c0_29 = arith.constant 0 : index
        %55 = vector.load %arg10[%c0_28, %c0_29] : memref<8x1xf32, #tpu.memory_space<vmem>>, vector<8x1xf32>
        %cst_30 = arith.constant 7.812500e-03 : f32
        %56 = vector.broadcast %cst_30 : f32 to vector<8x1xf32>
        %57 = arith.mulf %55, %56 : vector<8x1xf32>
        %c0_31 = arith.constant 0 : index
        %c0_32 = arith.constant 0 : index
        %58 = vector.load %arg11[%c0_31, %c0_32] : memref<8x1xf32, #tpu.memory_space<vmem>>, vector<8x1xf32>
        %cst_33 = arith.constant 7.812500e-03 : f32
        %59 = vector.broadcast %cst_33 : f32 to vector<8x1xf32>
        %60 = arith.mulf %58, %59 : vector<8x1xf32>
        %61 = arith.mulf %57, %57 : vector<8x1xf32>
        %62 = arith.subf %60, %61 : vector<8x1xf32>
        %cst_34 = arith.constant 9.99999974E-6 : f32
        %63 = vector.broadcast %cst_34 : f32 to vector<8x1xf32>
        %64 = arith.addf %62, %63 : vector<8x1xf32>
        %65 = math.rsqrt %64 : vector<8x1xf32>
        %c0_35 = arith.constant 0 : index
        %c0_36 = arith.constant 0 : index
        %66 = vector.load %arg5[%c0_35, %c0_36] : memref<8x1xf32, #tpu.memory_space<vmem>>, vector<8x1xf32>
        %67 = arith.mulf %65, %66 : vector<8x1xf32>
        %c0_37 = arith.constant 0 : index
        %c0_38 = arith.constant 0 : index
        %68 = vector.load %arg10[%c0_37, %c0_38] : memref<8x1xf32, #tpu.memory_space<vmem>>, vector<8x1xf32>
        tpu.vector_store %arg10[%c0_37, %c0_38], %67 {strides = array<i32>} : memref<8x1xf32, #tpu.memory_space<vmem>>, vector<8x1xf32>,
        %c0_39 = arith.constant 0 : index
        %c0_40 = arith.constant 0 : index
        %69 = vector.load %arg6[%c0_39, %c0_40] : memref<8x1xf32, #tpu.memory_space<vmem>>, vector<8x1xf32>
        %70 = arith.mulf %57, %67 : vector<8x1xf32>
        %71 = arith.subf %69, %70 : vector<8x1xf32>
        %c0_41 = arith.constant 0 : index
        %c0_42 = arith.constant 0 : index
        %72 = vector.load %arg11[%c0_41, %c0_42] : memref<8x1xf32, #tpu.memory_space<vmem>>, vector<8x1xf32>
        tpu.vector_store %arg11[%c0_41, %c0_42], %71 {strides = array<i32>} : memref<8x1xf32, #tpu.memory_space<vmem>>, vector<8x1xf32>,
      } else {
      }
      %c0 = arith.constant 0 : index
      %c0_7 = arith.constant 0 : index
      %14 = vector.load %arg10[%c0, %c0_7] : memref<8x1xf32, #tpu.memory_space<vmem>>, vector<8x1xf32>
      %c0_8 = arith.constant 0 : index
      %c0_9 = arith.constant 0 : index
      %15 = vector.load %arg11[%c0_8, %c0_9] : memref<8x1xf32, #tpu.memory_space<vmem>>, vector<8x1xf32>
      %c0_10 = arith.constant 0 : index
      %c0_11 = arith.constant 0 : index
      %16 = vector.load %arg7[%c0_10, %c0_11] : memref<1x256xf32, #tpu.memory_space<vmem>>, vector<1x256xf32>
      %cst = arith.constant 0.000000e+00 : bf16
      %17 = vector.broadcast %cst : bf16 to vector<2x8x384xbf16>
      %c0_12 = arith.constant 0 : index
      %c0_13 = arith.constant 0 : index
      %c0_14 = arith.constant 0 : index
      %18 = vector.load %arg8[%c0_12, %c0_13, %c0_14] : memref<2x8x384xbf16, #tpu.memory_space<vmem>>, vector<2x8x384xbf16>
      tpu.vector_store %arg8[%c0_12, %c0_13, %c0_14], %17 {strides = array<i32>} : memref<2x8x384xbf16, #tpu.memory_space<vmem>>, vector<2x8x384xbf16>,
      %c2_i32 = arith.constant 2 : i32
      %19 = arith.muli %arg1, %c2_i32 : i32
      %c0_i32_15 = arith.constant 0 : i32
      %20 = arith.addi %19, %c0_i32_15 : i32
      %21 = arith.index_cast %20 : i32 to index
      %c0_16 = arith.constant 0 : index
      %c0_17 = arith.constant 0 : index
      %22 = vector.load %arg9[%21, %c0_16, %c0_17] : memref<2x8x256xbf16, #tpu.memory_space<vmem>>, vector<1x8x256xbf16>
      %23 = vector.shape_cast %22 : vector<1x8x256xbf16> to vector<8x256xbf16>
      %24 = arith.extf %23 : vector<8x256xbf16> to vector<8x256xf32>
      %25 = vector.broadcast %14 : vector<8x1xf32> to vector<8x256xf32>
      %26 = arith.mulf %24, %25 : vector<8x256xf32>
      %27 = vector.broadcast %15 : vector<8x1xf32> to vector<8x256xf32>
      %28 = arith.addf %26, %27 : vector<8x256xf32>
      %cst_18 = arith.constant 0.000000e+00 : f32
      %29 = vector.broadcast %cst_18 : f32 to vector<8x256xf32>
      %30 = arith.maximumf %28, %29 : vector<8x256xf32>
      %31 = vector.broadcast %16 : vector<1x256xf32> to vector<8x256xf32>
      %32 = arith.mulf %30, %31 : vector<8x256xf32>
      %33 = arith.truncf %32 : vector<8x256xf32> to vector<8x256xbf16>
      %c0_19 = arith.constant 0 : index
      %c0_20 = arith.constant 0 : index
      %c19 = arith.constant 19 : index
      %34 = vector.load %arg8[%c0_19, %c0_20, %c19] : memref<2x8x384xbf16, #tpu.memory_space<vmem>>, vector<1x8x256xbf16>
      %35 = vector.shape_cast %34 : vector<1x8x256xbf16> to vector<8x256xbf16>
      %36 = vector.shape_cast %33 : vector<8x256xbf16> to vector<1x8x256xbf16>
      tpu.vector_store %arg8[%c0_19, %c0_20, %c19], %36 {strides = array<i32>} : memref<2x8x384xbf16, #tpu.memory_space<vmem>>, vector<1x8x256xbf16>,
      %c2_i32_21 = arith.constant 2 : i32
      %37 = arith.muli %arg1, %c2_i32_21 : i32
      %c1_i32_22 = arith.constant 1 : i32
      %38 = arith.addi %37, %c1_i32_22 : i32
      %39 = arith.index_cast %38 : i32 to index
      %c0_23 = arith.constant 0 : index
      %c0_24 = arith.constant 0 : index
      %40 = vector.load %arg9[%39, %c0_23, %c0_24] : memref<2x8x256xbf16, #tpu.memory_space<vmem>>, vector<1x8x256xbf16>
      %41 = vector.shape_cast %40 : vector<1x8x256xbf16> to vector<8x256xbf16>
      %42 = arith.extf %41 : vector<8x256xbf16> to vector<8x256xf32>
      %43 = vector.broadcast %14 : vector<8x1xf32> to vector<8x256xf32>
      %44 = arith.mulf %42, %43 : vector<8x256xf32>
      %45 = vector.broadcast %15 : vector<8x1xf32> to vector<8x256xf32>
      %46 = arith.addf %44, %45 : vector<8x256xf32>
      %cst_25 = arith.constant 0.000000e+00 : f32
      %47 = vector.broadcast %cst_25 : f32 to vector<8x256xf32>
      %48 = arith.maximumf %46, %47 : vector<8x256xf32>
      %49 = vector.broadcast %16 : vector<1x256xf32> to vector<8x256xf32>
      %50 = arith.mulf %48, %49 : vector<8x256xf32>
      %51 = arith.truncf %50 : vector<8x256xf32> to vector<8x256xbf16>
      %c1 = arith.constant 1 : index
      %c0_26 = arith.constant 0 : index
      %c19_27 = arith.constant 19 : index
      %52 = vector.load %arg8[%c1, %c0_26, %c19_27] : memref<2x8x384xbf16, #tpu.memory_space<vmem>>, vector<1x8x256xbf16>
      %53 = vector.shape_cast %52 : vector<1x8x256xbf16> to vector<8x256xbf16>
      %54 = vector.shape_cast %51 : vector<8x256xbf16> to vector<1x8x256xbf16>
      tpu.vector_store %arg8[%c1, %c0_26, %c19_27], %54 {strides = array<i32>} : memref<2x8x384xbf16, #tpu.memory_space<vmem>>, vector<1x8x256xbf16>,
    } else {
    }
    return
  }
  func.func @transform_0(%arg0: i32, %arg1: i32) -> (i32, i32, i32) {
    %c1_i32 = arith.constant 1 : i32
    %0 = arith.subi %c1_i32, %arg0 : i32
    %1 = arith.muli %0, %arg1 : i32
    %c0_i32 = arith.constant 0 : i32
    %2 = arith.muli %arg0, %c0_i32 : i32
    %3 = arith.addi %1, %2 : i32
    %c0_i32_0 = arith.constant 0 : i32
    %c0_i32_1 = arith.constant 0 : i32
    %c0_i32_2 = arith.constant 0 : i32
    return %3, %c0_i32_0, %c0_i32_1 : i32, i32, i32
  }
  func.func @transform_1(%arg0: i32, %arg1: i32) -> (i32, i32, i32) {
    %c1_i32 = arith.constant 1 : i32
    %0 = arith.subi %c1_i32, %arg0 : i32
    %1 = arith.muli %0, %arg1 : i32
    %c0_i32 = arith.constant 0 : i32
    %2 = arith.muli %arg0, %c0_i32 : i32
    %3 = arith.addi %1, %2 : i32
    %c0_i32_0 = arith.constant 0 : i32
    %c0_i32_1 = arith.constant 0 : i32
    %c0_i32_2 = arith.constant 0 : i32
    return %3, %c0_i32_0, %c0_i32_1 : i32, i32, i32
  }
  func.func @transform_2(%arg0: i32, %arg1: i32) -> (i32, i32, i32) {
    %c0_i32 = arith.constant 0 : i32
    %c0_i32_0 = arith.constant 0 : i32
    %c0_i32_1 = arith.constant 0 : i32
    %c0_i32_2 = arith.constant 0 : i32
    return %c0_i32, %c0_i32_0, %c0_i32_1 : i32, i32, i32
  }
  func.func @transform_3(%arg0: i32, %arg1: i32) -> (i32, i32) {
    %c0_i32 = arith.constant 0 : i32
    %c0_i32_0 = arith.constant 0 : i32
    %c0_i32_1 = arith.constant 0 : i32
    return %c0_i32, %c0_i32_0 : i32, i32
  }
  func.func @transform_4(%arg0: i32, %arg1: i32) -> (i32, i32) {
    %c0_i32 = arith.constant 0 : i32
    %c0_i32_0 = arith.constant 0 : i32
    %c0_i32_1 = arith.constant 0 : i32
    return %c0_i32, %c0_i32_0 : i32, i32
  }
  func.func @transform_5(%arg0: i32, %arg1: i32) -> (i32, i32) {
    %c0_i32 = arith.constant 0 : i32
    %c0_i32_0 = arith.constant 0 : i32
    %c0_i32_1 = arith.constant 0 : i32
    return %c0_i32, %c0_i32_0 : i32, i32
  }
  func.func @transform_6(%arg0: i32, %arg1: i32) -> (i32, i32, i32) {
    %0 = arith.muli %arg0, %arg1 : i32
    %c0_i32 = arith.constant 0 : i32
    %c0_i32_0 = arith.constant 0 : i32
    %c0_i32_1 = arith.constant 0 : i32
    return %0, %c0_i32, %c0_i32_0 : i32, i32, i32
  }
}

module attributes {stable_mosaic.version = 11 : i64} {
  func.func @_conv_bn_relu_kernel(%arg0: i32, %arg1: i32, %arg2: memref<2x8x384xbf16, #tpu.memory_space<vmem>>, %arg3: memref<2x8x384xbf16, #tpu.memory_space<vmem>>, %arg4: memref<18x8x8xbf16, #tpu.memory_space<vmem>>, %arg5: memref<8x1xf32, #tpu.memory_space<vmem>>, %arg6: memref<8x1xf32, #tpu.memory_space<vmem>>, %arg7: memref<1x256xf32, #tpu.memory_space<vmem>>, %arg8: memref<2x8x256xf32, #tpu.memory_space<vmem>>, %arg9: memref<2x8x256xf32, #tpu.memory_space<vmem>>, %arg10: memref<8x1xf32, #tpu.memory_space<vmem>>, %arg11: memref<8x1xf32, #tpu.memory_space<vmem>>) attributes {dimension_semantics = [#tpu.dimension_semantics<arbitrary>, #tpu.dimension_semantics<arbitrary>], iteration_bounds = array<i64: 2, 1>, scalar_prefetch = 0 : i64, scratch_operands = 3 : i64, tpu.core_type = #tpu.core_type<tc>, window_params = [{transform_indices = @transform_0, window_bounds = array<i64: 2, 8, 384>}, {transform_indices = @transform_1, window_bounds = array<i64: 2, 8, 384>}, {pipeline_mode = #tpu.pipeline_mode<synchronous>, transform_indices = @transform_2, window_bounds = array<i64: 18, 8, 8>}, {pipeline_mode = #tpu.pipeline_mode<synchronous>, transform_indices = @transform_3, window_bounds = array<i64: 8, 1>}, {pipeline_mode = #tpu.pipeline_mode<synchronous>, transform_indices = @transform_4, window_bounds = array<i64: 8, 1>}, {pipeline_mode = #tpu.pipeline_mode<synchronous>, transform_indices = @transform_5, window_bounds = array<i64: 1, 256>}, {transform_indices = @transform_6, window_bounds = array<i64: 2, 8, 256>}]} {
    %c0_i32 = arith.constant 0 : i32
    %0 = arith.cmpi eq, %arg0, %c0_i32 : i32
    %c0_i32_0 = arith.constant 0 : i32
    %1 = arith.cmpi eq, %arg1, %c0_i32_0 : i32
    %2 = arith.andi %0, %1 : i1
    %3 = arith.extui %2 : i1 to i32
    %c0_i32_1 = arith.constant 0 : i32
    %4 = arith.cmpi ne, %3, %c0_i32_1 : i32
    scf.if %4 {
      %cst = arith.constant 0.000000e+00 : f32
      %11 = vector.broadcast %cst : f32 to vector<8x1xf32>
      %c0 = arith.constant 0 : index
      %c0_5 = arith.constant 0 : index
      %12 = vector.load %arg10[%c0, %c0_5] : memref<8x1xf32, #tpu.memory_space<vmem>>, vector<8x1xf32>
      tpu.vector_store %arg10[%c0, %c0_5], %11 {strides = array<i32>} : memref<8x1xf32, #tpu.memory_space<vmem>>, vector<8x1xf32>,
      %cst_6 = arith.constant 0.000000e+00 : f32
      %13 = vector.broadcast %cst_6 : f32 to vector<8x1xf32>
      %c0_7 = arith.constant 0 : index
      %c0_8 = arith.constant 0 : index
      %14 = vector.load %arg11[%c0_7, %c0_8] : memref<8x1xf32, #tpu.memory_space<vmem>>, vector<8x1xf32>
      tpu.vector_store %arg11[%c0_7, %c0_8], %13 {strides = array<i32>} : memref<8x1xf32, #tpu.memory_space<vmem>>, vector<8x1xf32>,
    } else {
    }
    %c0_i32_2 = arith.constant 0 : i32
    %5 = arith.cmpi eq, %arg0, %c0_i32_2 : i32
    %6 = arith.extui %5 : i1 to i32
    %c0_i32_3 = arith.constant 0 : i32
    %7 = arith.cmpi ne, %6, %c0_i32_3 : i32
    scf.if %7 {
      %c0 = arith.constant 0 : index
      %c0_5 = arith.constant 0 : index
      %11 = vector.load %arg7[%c0, %c0_5] : memref<1x256xf32, #tpu.memory_space<vmem>>, vector<1x256xf32>
      %cst = arith.constant 0.000000e+00 : f32
      %12 = vector.broadcast %cst : f32 to vector<8x1xf32>
      %cst_6 = arith.constant 0.000000e+00 : f32
      %13 = vector.broadcast %cst_6 : f32 to vector<8x1xf32>
      %c0_7 = arith.constant 0 : index
      %c0_8 = arith.constant 0 : index
      %c0_9 = arith.constant 0 : index
      %14 = vector.load %arg2[%c0_7, %c0_8, %c0_9] : memref<2x8x384xbf16, #tpu.memory_space<vmem>>, vector<1x8x384xbf16>
      %15 = vector.shape_cast %14 : vector<1x8x384xbf16> to vector<8x384xbf16>
      %c0_10 = arith.constant 0 : index
      %c0_11 = arith.constant 0 : index
      %c0_12 = arith.constant 0 : index
      %16 = vector.load %arg3[%c0_10, %c0_11, %c0_12] : memref<2x8x384xbf16, #tpu.memory_space<vmem>>, vector<1x8x384xbf16>
      %17 = vector.shape_cast %16 : vector<1x8x384xbf16> to vector<8x384xbf16>
      %cst_13 = arith.constant 0.000000e+00 : f32
      %18 = vector.broadcast %cst_13 : f32 to vector<8x256xf32>
      %c0_14 = arith.constant 0 : index
      %c0_15 = arith.constant 0 : index
      %c0_16 = arith.constant 0 : index
      %19 = vector.load %arg4[%c0_14, %c0_15, %c0_16] : memref<18x8x8xbf16, #tpu.memory_space<vmem>>, vector<1x8x8xbf16>
      %20 = vector.shape_cast %19 : vector<1x8x8xbf16> to vector<8x8xbf16>
      %21 = vector.extract_strided_slice %15 {offsets = [0, 0], sizes = [8, 256], strides = [1, 1]} : vector<8x384xbf16> to vector<8x256xbf16>
      %cst_17 = arith.constant dense<0.000000e+00> : vector<8x256xf32>
      %22 = tpu.matmul %20, %21, %cst_17 {dimension_numbers = #tpu.dot_dimension_numbers<[1], [0], [0], [1], [0, 0, 1, 1], [], []>} : vector<8x8xbf16>, vector<8x256xbf16>, vector<8x256xf32> -> vector<8x256xf32>
      %23 = arith.addf %18, %22 : vector<8x256xf32>
      %c1 = arith.constant 1 : index
      %c0_18 = arith.constant 0 : index
      %c0_19 = arith.constant 0 : index
      %24 = vector.load %arg4[%c1, %c0_18, %c0_19] : memref<18x8x8xbf16, #tpu.memory_space<vmem>>, vector<1x8x8xbf16>
      %25 = vector.shape_cast %24 : vector<1x8x8xbf16> to vector<8x8xbf16>
      %26 = vector.extract_strided_slice %17 {offsets = [0, 0], sizes = [8, 256], strides = [1, 1]} : vector<8x384xbf16> to vector<8x256xbf16>
      %cst_20 = arith.constant dense<0.000000e+00> : vector<8x256xf32>
      %27 = tpu.matmul %25, %26, %cst_20 {dimension_numbers = #tpu.dot_dimension_numbers<[1], [0], [0], [1], [0, 0, 1, 1], [], []>} : vector<8x8xbf16>, vector<8x256xbf16>, vector<8x256xf32> -> vector<8x256xf32>
      %28 = arith.addf %23, %27 : vector<8x256xf32>
      %c2 = arith.constant 2 : index
      %c0_21 = arith.constant 0 : index
      %c0_22 = arith.constant 0 : index
      %29 = vector.load %arg4[%c2, %c0_21, %c0_22] : memref<18x8x8xbf16, #tpu.memory_space<vmem>>, vector<1x8x8xbf16>
      %30 = vector.shape_cast %29 : vector<1x8x8xbf16> to vector<8x8xbf16>
      %31 = vector.extract_strided_slice %15 {offsets = [0, 1], sizes = [8, 256], strides = [1, 1]} : vector<8x384xbf16> to vector<8x256xbf16>
      %cst_23 = arith.constant dense<0.000000e+00> : vector<8x256xf32>
      %32 = tpu.matmul %30, %31, %cst_23 {dimension_numbers = #tpu.dot_dimension_numbers<[1], [0], [0], [1], [0, 0, 1, 1], [], []>} : vector<8x8xbf16>, vector<8x256xbf16>, vector<8x256xf32> -> vector<8x256xf32>
      %33 = arith.addf %28, %32 : vector<8x256xf32>
      %c3 = arith.constant 3 : index
      %c0_24 = arith.constant 0 : index
      %c0_25 = arith.constant 0 : index
      %34 = vector.load %arg4[%c3, %c0_24, %c0_25] : memref<18x8x8xbf16, #tpu.memory_space<vmem>>, vector<1x8x8xbf16>
      %35 = vector.shape_cast %34 : vector<1x8x8xbf16> to vector<8x8xbf16>
      %36 = vector.extract_strided_slice %17 {offsets = [0, 1], sizes = [8, 256], strides = [1, 1]} : vector<8x384xbf16> to vector<8x256xbf16>
      %cst_26 = arith.constant dense<0.000000e+00> : vector<8x256xf32>
      %37 = tpu.matmul %35, %36, %cst_26 {dimension_numbers = #tpu.dot_dimension_numbers<[1], [0], [0], [1], [0, 0, 1, 1], [], []>} : vector<8x8xbf16>, vector<8x256xbf16>, vector<8x256xf32> -> vector<8x256xf32>
      %38 = arith.addf %33, %37 : vector<8x256xf32>
      %c4 = arith.constant 4 : index
      %c0_27 = arith.constant 0 : index
      %c0_28 = arith.constant 0 : index
      %39 = vector.load %arg4[%c4, %c0_27, %c0_28] : memref<18x8x8xbf16, #tpu.memory_space<vmem>>, vector<1x8x8xbf16>
      %40 = vector.shape_cast %39 : vector<1x8x8xbf16> to vector<8x8xbf16>
      %41 = vector.extract_strided_slice %15 {offsets = [0, 2], sizes = [8, 256], strides = [1, 1]} : vector<8x384xbf16> to vector<8x256xbf16>
      %cst_29 = arith.constant dense<0.000000e+00> : vector<8x256xf32>
      %42 = tpu.matmul %40, %41, %cst_29 {dimension_numbers = #tpu.dot_dimension_numbers<[1], [0], [0], [1], [0, 0, 1, 1], [], []>} : vector<8x8xbf16>, vector<8x256xbf16>, vector<8x256xf32> -> vector<8x256xf32>
      %43 = arith.addf %38, %42 : vector<8x256xf32>
      %c5 = arith.constant 5 : index
      %c0_30 = arith.constant 0 : index
      %c0_31 = arith.constant 0 : index
      %44 = vector.load %arg4[%c5, %c0_30, %c0_31] : memref<18x8x8xbf16, #tpu.memory_space<vmem>>, vector<1x8x8xbf16>
      %45 = vector.shape_cast %44 : vector<1x8x8xbf16> to vector<8x8xbf16>
      %46 = vector.extract_strided_slice %17 {offsets = [0, 2], sizes = [8, 256], strides = [1, 1]} : vector<8x384xbf16> to vector<8x256xbf16>
      %cst_32 = arith.constant dense<0.000000e+00> : vector<8x256xf32>
      %47 = tpu.matmul %45, %46, %cst_32 {dimension_numbers = #tpu.dot_dimension_numbers<[1], [0], [0], [1], [0, 0, 1, 1], [], []>} : vector<8x8xbf16>, vector<8x256xbf16>, vector<8x256xf32> -> vector<8x256xf32>
      %48 = arith.addf %43, %47 : vector<8x256xf32>
      %c6 = arith.constant 6 : index
      %c0_33 = arith.constant 0 : index
      %c0_34 = arith.constant 0 : index
      %49 = vector.load %arg4[%c6, %c0_33, %c0_34] : memref<18x8x8xbf16, #tpu.memory_space<vmem>>, vector<1x8x8xbf16>
      %50 = vector.shape_cast %49 : vector<1x8x8xbf16> to vector<8x8xbf16>
      %51 = vector.extract_strided_slice %15 {offsets = [0, 18], sizes = [8, 256], strides = [1, 1]} : vector<8x384xbf16> to vector<8x256xbf16>
      %cst_35 = arith.constant dense<0.000000e+00> : vector<8x256xf32>
      %52 = tpu.matmul %50, %51, %cst_35 {dimension_numbers = #tpu.dot_dimension_numbers<[1], [0], [0], [1], [0, 0, 1, 1], [], []>} : vector<8x8xbf16>, vector<8x256xbf16>, vector<8x256xf32> -> vector<8x256xf32>
      %53 = arith.addf %48, %52 : vector<8x256xf32>
      %c7 = arith.constant 7 : index
      %c0_36 = arith.constant 0 : index
      %c0_37 = arith.constant 0 : index
      %54 = vector.load %arg4[%c7, %c0_36, %c0_37] : memref<18x8x8xbf16, #tpu.memory_space<vmem>>, vector<1x8x8xbf16>
      %55 = vector.shape_cast %54 : vector<1x8x8xbf16> to vector<8x8xbf16>
      %56 = vector.extract_strided_slice %17 {offsets = [0, 18], sizes = [8, 256], strides = [1, 1]} : vector<8x384xbf16> to vector<8x256xbf16>
      %cst_38 = arith.constant dense<0.000000e+00> : vector<8x256xf32>
      %57 = tpu.matmul %55, %56, %cst_38 {dimension_numbers = #tpu.dot_dimension_numbers<[1], [0], [0], [1], [0, 0, 1, 1], [], []>} : vector<8x8xbf16>, vector<8x256xbf16>, vector<8x256xf32> -> vector<8x256xf32>
      %58 = arith.addf %53, %57 : vector<8x256xf32>
      %c8 = arith.constant 8 : index
      %c0_39 = arith.constant 0 : index
      %c0_40 = arith.constant 0 : index
      %59 = vector.load %arg4[%c8, %c0_39, %c0_40] : memref<18x8x8xbf16, #tpu.memory_space<vmem>>, vector<1x8x8xbf16>
      %60 = vector.shape_cast %59 : vector<1x8x8xbf16> to vector<8x8xbf16>
      %61 = vector.extract_strided_slice %15 {offsets = [0, 19], sizes = [8, 256], strides = [1, 1]} : vector<8x384xbf16> to vector<8x256xbf16>
      %cst_41 = arith.constant dense<0.000000e+00> : vector<8x256xf32>
      %62 = tpu.matmul %60, %61, %cst_41 {dimension_numbers = #tpu.dot_dimension_numbers<[1], [0], [0], [1], [0, 0, 1, 1], [], []>} : vector<8x8xbf16>, vector<8x256xbf16>, vector<8x256xf32> -> vector<8x256xf32>
      %63 = arith.addf %58, %62 : vector<8x256xf32>
      %c9 = arith.constant 9 : index
      %c0_42 = arith.constant 0 : index
      %c0_43 = arith.constant 0 : index
      %64 = vector.load %arg4[%c9, %c0_42, %c0_43] : memref<18x8x8xbf16, #tpu.memory_space<vmem>>, vector<1x8x8xbf16>
      %65 = vector.shape_cast %64 : vector<1x8x8xbf16> to vector<8x8xbf16>
      %66 = vector.extract_strided_slice %17 {offsets = [0, 19], sizes = [8, 256], strides = [1, 1]} : vector<8x384xbf16> to vector<8x256xbf16>
      %cst_44 = arith.constant dense<0.000000e+00> : vector<8x256xf32>
      %67 = tpu.matmul %65, %66, %cst_44 {dimension_numbers = #tpu.dot_dimension_numbers<[1], [0], [0], [1], [0, 0, 1, 1], [], []>} : vector<8x8xbf16>, vector<8x256xbf16>, vector<8x256xf32> -> vector<8x256xf32>
      %68 = arith.addf %63, %67 : vector<8x256xf32>
      %c10 = arith.constant 10 : index
      %c0_45 = arith.constant 0 : index
      %c0_46 = arith.constant 0 : index
      %69 = vector.load %arg4[%c10, %c0_45, %c0_46] : memref<18x8x8xbf16, #tpu.memory_space<vmem>>, vector<1x8x8xbf16>
      %70 = vector.shape_cast %69 : vector<1x8x8xbf16> to vector<8x8xbf16>
      %71 = vector.extract_strided_slice %15 {offsets = [0, 20], sizes = [8, 256], strides = [1, 1]} : vector<8x384xbf16> to vector<8x256xbf16>
      %cst_47 = arith.constant dense<0.000000e+00> : vector<8x256xf32>
      %72 = tpu.matmul %70, %71, %cst_47 {dimension_numbers = #tpu.dot_dimension_numbers<[1], [0], [0], [1], [0, 0, 1, 1], [], []>} : vector<8x8xbf16>, vector<8x256xbf16>, vector<8x256xf32> -> vector<8x256xf32>
      %73 = arith.addf %68, %72 : vector<8x256xf32>
      %c11 = arith.constant 11 : index
      %c0_48 = arith.constant 0 : index
      %c0_49 = arith.constant 0 : index
      %74 = vector.load %arg4[%c11, %c0_48, %c0_49] : memref<18x8x8xbf16, #tpu.memory_space<vmem>>, vector<1x8x8xbf16>
      %75 = vector.shape_cast %74 : vector<1x8x8xbf16> to vector<8x8xbf16>
      %76 = vector.extract_strided_slice %17 {offsets = [0, 20], sizes = [8, 256], strides = [1, 1]} : vector<8x384xbf16> to vector<8x256xbf16>
      %cst_50 = arith.constant dense<0.000000e+00> : vector<8x256xf32>
      %77 = tpu.matmul %75, %76, %cst_50 {dimension_numbers = #tpu.dot_dimension_numbers<[1], [0], [0], [1], [0, 0, 1, 1], [], []>} : vector<8x8xbf16>, vector<8x256xbf16>, vector<8x256xf32> -> vector<8x256xf32>
      %78 = arith.addf %73, %77 : vector<8x256xf32>
      %c12 = arith.constant 12 : index
      %c0_51 = arith.constant 0 : index
      %c0_52 = arith.constant 0 : index
      %79 = vector.load %arg4[%c12, %c0_51, %c0_52] : memref<18x8x8xbf16, #tpu.memory_space<vmem>>, vector<1x8x8xbf16>
      %80 = vector.shape_cast %79 : vector<1x8x8xbf16> to vector<8x8xbf16>
      %81 = vector.extract_strided_slice %15 {offsets = [0, 36], sizes = [8, 256], strides = [1, 1]} : vector<8x384xbf16> to vector<8x256xbf16>
      %cst_53 = arith.constant dense<0.000000e+00> : vector<8x256xf32>
      %82 = tpu.matmul %80, %81, %cst_53 {dimension_numbers = #tpu.dot_dimension_numbers<[1], [0], [0], [1], [0, 0, 1, 1], [], []>} : vector<8x8xbf16>, vector<8x256xbf16>, vector<8x256xf32> -> vector<8x256xf32>
      %83 = arith.addf %78, %82 : vector<8x256xf32>
      %c13 = arith.constant 13 : index
      %c0_54 = arith.constant 0 : index
      %c0_55 = arith.constant 0 : index
      %84 = vector.load %arg4[%c13, %c0_54, %c0_55] : memref<18x8x8xbf16, #tpu.memory_space<vmem>>, vector<1x8x8xbf16>
      %85 = vector.shape_cast %84 : vector<1x8x8xbf16> to vector<8x8xbf16>
      %86 = vector.extract_strided_slice %17 {offsets = [0, 36], sizes = [8, 256], strides = [1, 1]} : vector<8x384xbf16> to vector<8x256xbf16>
      %cst_56 = arith.constant dense<0.000000e+00> : vector<8x256xf32>
      %87 = tpu.matmul %85, %86, %cst_56 {dimension_numbers = #tpu.dot_dimension_numbers<[1], [0], [0], [1], [0, 0, 1, 1], [], []>} : vector<8x8xbf16>, vector<8x256xbf16>, vector<8x256xf32> -> vector<8x256xf32>
      %88 = arith.addf %83, %87 : vector<8x256xf32>
      %c14 = arith.constant 14 : index
      %c0_57 = arith.constant 0 : index
      %c0_58 = arith.constant 0 : index
      %89 = vector.load %arg4[%c14, %c0_57, %c0_58] : memref<18x8x8xbf16, #tpu.memory_space<vmem>>, vector<1x8x8xbf16>
      %90 = vector.shape_cast %89 : vector<1x8x8xbf16> to vector<8x8xbf16>
      %91 = vector.extract_strided_slice %15 {offsets = [0, 37], sizes = [8, 256], strides = [1, 1]} : vector<8x384xbf16> to vector<8x256xbf16>
      %cst_59 = arith.constant dense<0.000000e+00> : vector<8x256xf32>
      %92 = tpu.matmul %90, %91, %cst_59 {dimension_numbers = #tpu.dot_dimension_numbers<[1], [0], [0], [1], [0, 0, 1, 1], [], []>} : vector<8x8xbf16>, vector<8x256xbf16>, vector<8x256xf32> -> vector<8x256xf32>
      %93 = arith.addf %88, %92 : vector<8x256xf32>
      %c15 = arith.constant 15 : index
      %c0_60 = arith.constant 0 : index
      %c0_61 = arith.constant 0 : index
      %94 = vector.load %arg4[%c15, %c0_60, %c0_61] : memref<18x8x8xbf16, #tpu.memory_space<vmem>>, vector<1x8x8xbf16>
      %95 = vector.shape_cast %94 : vector<1x8x8xbf16> to vector<8x8xbf16>
      %96 = vector.extract_strided_slice %17 {offsets = [0, 37], sizes = [8, 256], strides = [1, 1]} : vector<8x384xbf16> to vector<8x256xbf16>
      %cst_62 = arith.constant dense<0.000000e+00> : vector<8x256xf32>
      %97 = tpu.matmul %95, %96, %cst_62 {dimension_numbers = #tpu.dot_dimension_numbers<[1], [0], [0], [1], [0, 0, 1, 1], [], []>} : vector<8x8xbf16>, vector<8x256xbf16>, vector<8x256xf32> -> vector<8x256xf32>
      %98 = arith.addf %93, %97 : vector<8x256xf32>
      %c16 = arith.constant 16 : index
      %c0_63 = arith.constant 0 : index
      %c0_64 = arith.constant 0 : index
      %99 = vector.load %arg4[%c16, %c0_63, %c0_64] : memref<18x8x8xbf16, #tpu.memory_space<vmem>>, vector<1x8x8xbf16>
      %100 = vector.shape_cast %99 : vector<1x8x8xbf16> to vector<8x8xbf16>
      %101 = vector.extract_strided_slice %15 {offsets = [0, 38], sizes = [8, 256], strides = [1, 1]} : vector<8x384xbf16> to vector<8x256xbf16>
      %cst_65 = arith.constant dense<0.000000e+00> : vector<8x256xf32>
      %102 = tpu.matmul %100, %101, %cst_65 {dimension_numbers = #tpu.dot_dimension_numbers<[1], [0], [0], [1], [0, 0, 1, 1], [], []>} : vector<8x8xbf16>, vector<8x256xbf16>, vector<8x256xf32> -> vector<8x256xf32>
      %103 = arith.addf %98, %102 : vector<8x256xf32>
      %c17 = arith.constant 17 : index
      %c0_66 = arith.constant 0 : index
      %c0_67 = arith.constant 0 : index
      %104 = vector.load %arg4[%c17, %c0_66, %c0_67] : memref<18x8x8xbf16, #tpu.memory_space<vmem>>, vector<1x8x8xbf16>
      %105 = vector.shape_cast %104 : vector<1x8x8xbf16> to vector<8x8xbf16>
      %106 = vector.extract_strided_slice %17 {offsets = [0, 38], sizes = [8, 256], strides = [1, 1]} : vector<8x384xbf16> to vector<8x256xbf16>
      %cst_68 = arith.constant dense<0.000000e+00> : vector<8x256xf32>
      %107 = tpu.matmul %105, %106, %cst_68 {dimension_numbers = #tpu.dot_dimension_numbers<[1], [0], [0], [1], [0, 0, 1, 1], [], []>} : vector<8x8xbf16>, vector<8x256xbf16>, vector<8x256xf32> -> vector<8x256xf32>
      %108 = arith.addf %103, %107 : vector<8x256xf32>
      %109 = vector.broadcast %11 : vector<1x256xf32> to vector<8x256xf32>
      %110 = arith.mulf %108, %109 : vector<8x256xf32>
      %cst_69 = arith.constant dense<0.000000e+00> : vector<8xf32>
      %111 = vector.multi_reduction <add>, %110, %cst_69 [1] : vector<8x256xf32> to vector<8xf32>
      %112 = vector.shape_cast %111 : vector<8xf32> to vector<8x1xf32>
      %113 = arith.addf %12, %112 : vector<8x1xf32>
      %114 = arith.mulf %110, %108 : vector<8x256xf32>
      %cst_70 = arith.constant dense<0.000000e+00> : vector<8xf32>
      %115 = vector.multi_reduction <add>, %114, %cst_70 [1] : vector<8x256xf32> to vector<8xf32>
      %116 = vector.shape_cast %115 : vector<8xf32> to vector<8x1xf32>
      %117 = arith.addf %13, %116 : vector<8x1xf32>
      %c2_i32 = arith.constant 2 : i32
      %118 = arith.muli %arg1, %c2_i32 : i32
      %c0_i32_71 = arith.constant 0 : i32
      %119 = arith.addi %118, %c0_i32_71 : i32
      %120 = arith.index_cast %119 : i32 to index
      %c0_72 = arith.constant 0 : index
      %c0_73 = arith.constant 0 : index
      %121 = vector.load %arg9[%120, %c0_72, %c0_73] : memref<2x8x256xf32, #tpu.memory_space<vmem>>, vector<1x8x256xf32>
      %122 = vector.shape_cast %121 : vector<1x8x256xf32> to vector<8x256xf32>
      %123 = vector.shape_cast %108 : vector<8x256xf32> to vector<1x8x256xf32>
      tpu.vector_store %arg9[%120, %c0_72, %c0_73], %123 {strides = array<i32>} : memref<2x8x256xf32, #tpu.memory_space<vmem>>, vector<1x8x256xf32>,
      %c1_74 = arith.constant 1 : index
      %c0_75 = arith.constant 0 : index
      %c0_76 = arith.constant 0 : index
      %124 = vector.load %arg2[%c1_74, %c0_75, %c0_76] : memref<2x8x384xbf16, #tpu.memory_space<vmem>>, vector<1x8x384xbf16>
      %125 = vector.shape_cast %124 : vector<1x8x384xbf16> to vector<8x384xbf16>
      %c1_77 = arith.constant 1 : index
      %c0_78 = arith.constant 0 : index
      %c0_79 = arith.constant 0 : index
      %126 = vector.load %arg3[%c1_77, %c0_78, %c0_79] : memref<2x8x384xbf16, #tpu.memory_space<vmem>>, vector<1x8x384xbf16>
      %127 = vector.shape_cast %126 : vector<1x8x384xbf16> to vector<8x384xbf16>
      %cst_80 = arith.constant 0.000000e+00 : f32
      %128 = vector.broadcast %cst_80 : f32 to vector<8x256xf32>
      %c0_81 = arith.constant 0 : index
      %c0_82 = arith.constant 0 : index
      %c0_83 = arith.constant 0 : index
      %129 = vector.load %arg4[%c0_81, %c0_82, %c0_83] : memref<18x8x8xbf16, #tpu.memory_space<vmem>>, vector<1x8x8xbf16>
      %130 = vector.shape_cast %129 : vector<1x8x8xbf16> to vector<8x8xbf16>
      %131 = vector.extract_strided_slice %125 {offsets = [0, 0], sizes = [8, 256], strides = [1, 1]} : vector<8x384xbf16> to vector<8x256xbf16>
      %cst_84 = arith.constant dense<0.000000e+00> : vector<8x256xf32>
      %132 = tpu.matmul %130, %131, %cst_84 {dimension_numbers = #tpu.dot_dimension_numbers<[1], [0], [0], [1], [0, 0, 1, 1], [], []>} : vector<8x8xbf16>, vector<8x256xbf16>, vector<8x256xf32> -> vector<8x256xf32>
      %133 = arith.addf %128, %132 : vector<8x256xf32>
      %c1_85 = arith.constant 1 : index
      %c0_86 = arith.constant 0 : index
      %c0_87 = arith.constant 0 : index
      %134 = vector.load %arg4[%c1_85, %c0_86, %c0_87] : memref<18x8x8xbf16, #tpu.memory_space<vmem>>, vector<1x8x8xbf16>
      %135 = vector.shape_cast %134 : vector<1x8x8xbf16> to vector<8x8xbf16>
      %136 = vector.extract_strided_slice %127 {offsets = [0, 0], sizes = [8, 256], strides = [1, 1]} : vector<8x384xbf16> to vector<8x256xbf16>
      %cst_88 = arith.constant dense<0.000000e+00> : vector<8x256xf32>
      %137 = tpu.matmul %135, %136, %cst_88 {dimension_numbers = #tpu.dot_dimension_numbers<[1], [0], [0], [1], [0, 0, 1, 1], [], []>} : vector<8x8xbf16>, vector<8x256xbf16>, vector<8x256xf32> -> vector<8x256xf32>
      %138 = arith.addf %133, %137 : vector<8x256xf32>
      %c2_89 = arith.constant 2 : index
      %c0_90 = arith.constant 0 : index
      %c0_91 = arith.constant 0 : index
      %139 = vector.load %arg4[%c2_89, %c0_90, %c0_91] : memref<18x8x8xbf16, #tpu.memory_space<vmem>>, vector<1x8x8xbf16>
      %140 = vector.shape_cast %139 : vector<1x8x8xbf16> to vector<8x8xbf16>
      %141 = vector.extract_strided_slice %125 {offsets = [0, 1], sizes = [8, 256], strides = [1, 1]} : vector<8x384xbf16> to vector<8x256xbf16>
      %cst_92 = arith.constant dense<0.000000e+00> : vector<8x256xf32>
      %142 = tpu.matmul %140, %141, %cst_92 {dimension_numbers = #tpu.dot_dimension_numbers<[1], [0], [0], [1], [0, 0, 1, 1], [], []>} : vector<8x8xbf16>, vector<8x256xbf16>, vector<8x256xf32> -> vector<8x256xf32>
      %143 = arith.addf %138, %142 : vector<8x256xf32>
      %c3_93 = arith.constant 3 : index
      %c0_94 = arith.constant 0 : index
      %c0_95 = arith.constant 0 : index
      %144 = vector.load %arg4[%c3_93, %c0_94, %c0_95] : memref<18x8x8xbf16, #tpu.memory_space<vmem>>, vector<1x8x8xbf16>
      %145 = vector.shape_cast %144 : vector<1x8x8xbf16> to vector<8x8xbf16>
      %146 = vector.extract_strided_slice %127 {offsets = [0, 1], sizes = [8, 256], strides = [1, 1]} : vector<8x384xbf16> to vector<8x256xbf16>
      %cst_96 = arith.constant dense<0.000000e+00> : vector<8x256xf32>
      %147 = tpu.matmul %145, %146, %cst_96 {dimension_numbers = #tpu.dot_dimension_numbers<[1], [0], [0], [1], [0, 0, 1, 1], [], []>} : vector<8x8xbf16>, vector<8x256xbf16>, vector<8x256xf32> -> vector<8x256xf32>
      %148 = arith.addf %143, %147 : vector<8x256xf32>
      %c4_97 = arith.constant 4 : index
      %c0_98 = arith.constant 0 : index
      %c0_99 = arith.constant 0 : index
      %149 = vector.load %arg4[%c4_97, %c0_98, %c0_99] : memref<18x8x8xbf16, #tpu.memory_space<vmem>>, vector<1x8x8xbf16>
      %150 = vector.shape_cast %149 : vector<1x8x8xbf16> to vector<8x8xbf16>
      %151 = vector.extract_strided_slice %125 {offsets = [0, 2], sizes = [8, 256], strides = [1, 1]} : vector<8x384xbf16> to vector<8x256xbf16>
      %cst_100 = arith.constant dense<0.000000e+00> : vector<8x256xf32>
      %152 = tpu.matmul %150, %151, %cst_100 {dimension_numbers = #tpu.dot_dimension_numbers<[1], [0], [0], [1], [0, 0, 1, 1], [], []>} : vector<8x8xbf16>, vector<8x256xbf16>, vector<8x256xf32> -> vector<8x256xf32>
      %153 = arith.addf %148, %152 : vector<8x256xf32>
      %c5_101 = arith.constant 5 : index
      %c0_102 = arith.constant 0 : index
      %c0_103 = arith.constant 0 : index
      %154 = vector.load %arg4[%c5_101, %c0_102, %c0_103] : memref<18x8x8xbf16, #tpu.memory_space<vmem>>, vector<1x8x8xbf16>
      %155 = vector.shape_cast %154 : vector<1x8x8xbf16> to vector<8x8xbf16>
      %156 = vector.extract_strided_slice %127 {offsets = [0, 2], sizes = [8, 256], strides = [1, 1]} : vector<8x384xbf16> to vector<8x256xbf16>
      %cst_104 = arith.constant dense<0.000000e+00> : vector<8x256xf32>
      %157 = tpu.matmul %155, %156, %cst_104 {dimension_numbers = #tpu.dot_dimension_numbers<[1], [0], [0], [1], [0, 0, 1, 1], [], []>} : vector<8x8xbf16>, vector<8x256xbf16>, vector<8x256xf32> -> vector<8x256xf32>
      %158 = arith.addf %153, %157 : vector<8x256xf32>
      %c6_105 = arith.constant 6 : index
      %c0_106 = arith.constant 0 : index
      %c0_107 = arith.constant 0 : index
      %159 = vector.load %arg4[%c6_105, %c0_106, %c0_107] : memref<18x8x8xbf16, #tpu.memory_space<vmem>>, vector<1x8x8xbf16>
      %160 = vector.shape_cast %159 : vector<1x8x8xbf16> to vector<8x8xbf16>
      %161 = vector.extract_strided_slice %125 {offsets = [0, 18], sizes = [8, 256], strides = [1, 1]} : vector<8x384xbf16> to vector<8x256xbf16>
      %cst_108 = arith.constant dense<0.000000e+00> : vector<8x256xf32>
      %162 = tpu.matmul %160, %161, %cst_108 {dimension_numbers = #tpu.dot_dimension_numbers<[1], [0], [0], [1], [0, 0, 1, 1], [], []>} : vector<8x8xbf16>, vector<8x256xbf16>, vector<8x256xf32> -> vector<8x256xf32>
      %163 = arith.addf %158, %162 : vector<8x256xf32>
      %c7_109 = arith.constant 7 : index
      %c0_110 = arith.constant 0 : index
      %c0_111 = arith.constant 0 : index
      %164 = vector.load %arg4[%c7_109, %c0_110, %c0_111] : memref<18x8x8xbf16, #tpu.memory_space<vmem>>, vector<1x8x8xbf16>
      %165 = vector.shape_cast %164 : vector<1x8x8xbf16> to vector<8x8xbf16>
      %166 = vector.extract_strided_slice %127 {offsets = [0, 18], sizes = [8, 256], strides = [1, 1]} : vector<8x384xbf16> to vector<8x256xbf16>
      %cst_112 = arith.constant dense<0.000000e+00> : vector<8x256xf32>
      %167 = tpu.matmul %165, %166, %cst_112 {dimension_numbers = #tpu.dot_dimension_numbers<[1], [0], [0], [1], [0, 0, 1, 1], [], []>} : vector<8x8xbf16>, vector<8x256xbf16>, vector<8x256xf32> -> vector<8x256xf32>
      %168 = arith.addf %163, %167 : vector<8x256xf32>
      %c8_113 = arith.constant 8 : index
      %c0_114 = arith.constant 0 : index
      %c0_115 = arith.constant 0 : index
      %169 = vector.load %arg4[%c8_113, %c0_114, %c0_115] : memref<18x8x8xbf16, #tpu.memory_space<vmem>>, vector<1x8x8xbf16>
      %170 = vector.shape_cast %169 : vector<1x8x8xbf16> to vector<8x8xbf16>
      %171 = vector.extract_strided_slice %125 {offsets = [0, 19], sizes = [8, 256], strides = [1, 1]} : vector<8x384xbf16> to vector<8x256xbf16>
      %cst_116 = arith.constant dense<0.000000e+00> : vector<8x256xf32>
      %172 = tpu.matmul %170, %171, %cst_116 {dimension_numbers = #tpu.dot_dimension_numbers<[1], [0], [0], [1], [0, 0, 1, 1], [], []>} : vector<8x8xbf16>, vector<8x256xbf16>, vector<8x256xf32> -> vector<8x256xf32>
      %173 = arith.addf %168, %172 : vector<8x256xf32>
      %c9_117 = arith.constant 9 : index
      %c0_118 = arith.constant 0 : index
      %c0_119 = arith.constant 0 : index
      %174 = vector.load %arg4[%c9_117, %c0_118, %c0_119] : memref<18x8x8xbf16, #tpu.memory_space<vmem>>, vector<1x8x8xbf16>
      %175 = vector.shape_cast %174 : vector<1x8x8xbf16> to vector<8x8xbf16>
      %176 = vector.extract_strided_slice %127 {offsets = [0, 19], sizes = [8, 256], strides = [1, 1]} : vector<8x384xbf16> to vector<8x256xbf16>
      %cst_120 = arith.constant dense<0.000000e+00> : vector<8x256xf32>
      %177 = tpu.matmul %175, %176, %cst_120 {dimension_numbers = #tpu.dot_dimension_numbers<[1], [0], [0], [1], [0, 0, 1, 1], [], []>} : vector<8x8xbf16>, vector<8x256xbf16>, vector<8x256xf32> -> vector<8x256xf32>
      %178 = arith.addf %173, %177 : vector<8x256xf32>
      %c10_121 = arith.constant 10 : index
      %c0_122 = arith.constant 0 : index
      %c0_123 = arith.constant 0 : index
      %179 = vector.load %arg4[%c10_121, %c0_122, %c0_123] : memref<18x8x8xbf16, #tpu.memory_space<vmem>>, vector<1x8x8xbf16>
      %180 = vector.shape_cast %179 : vector<1x8x8xbf16> to vector<8x8xbf16>
      %181 = vector.extract_strided_slice %125 {offsets = [0, 20], sizes = [8, 256], strides = [1, 1]} : vector<8x384xbf16> to vector<8x256xbf16>
      %cst_124 = arith.constant dense<0.000000e+00> : vector<8x256xf32>
      %182 = tpu.matmul %180, %181, %cst_124 {dimension_numbers = #tpu.dot_dimension_numbers<[1], [0], [0], [1], [0, 0, 1, 1], [], []>} : vector<8x8xbf16>, vector<8x256xbf16>, vector<8x256xf32> -> vector<8x256xf32>
      %183 = arith.addf %178, %182 : vector<8x256xf32>
      %c11_125 = arith.constant 11 : index
      %c0_126 = arith.constant 0 : index
      %c0_127 = arith.constant 0 : index
      %184 = vector.load %arg4[%c11_125, %c0_126, %c0_127] : memref<18x8x8xbf16, #tpu.memory_space<vmem>>, vector<1x8x8xbf16>
      %185 = vector.shape_cast %184 : vector<1x8x8xbf16> to vector<8x8xbf16>
      %186 = vector.extract_strided_slice %127 {offsets = [0, 20], sizes = [8, 256], strides = [1, 1]} : vector<8x384xbf16> to vector<8x256xbf16>
      %cst_128 = arith.constant dense<0.000000e+00> : vector<8x256xf32>
      %187 = tpu.matmul %185, %186, %cst_128 {dimension_numbers = #tpu.dot_dimension_numbers<[1], [0], [0], [1], [0, 0, 1, 1], [], []>} : vector<8x8xbf16>, vector<8x256xbf16>, vector<8x256xf32> -> vector<8x256xf32>
      %188 = arith.addf %183, %187 : vector<8x256xf32>
      %c12_129 = arith.constant 12 : index
      %c0_130 = arith.constant 0 : index
      %c0_131 = arith.constant 0 : index
      %189 = vector.load %arg4[%c12_129, %c0_130, %c0_131] : memref<18x8x8xbf16, #tpu.memory_space<vmem>>, vector<1x8x8xbf16>
      %190 = vector.shape_cast %189 : vector<1x8x8xbf16> to vector<8x8xbf16>
      %191 = vector.extract_strided_slice %125 {offsets = [0, 36], sizes = [8, 256], strides = [1, 1]} : vector<8x384xbf16> to vector<8x256xbf16>
      %cst_132 = arith.constant dense<0.000000e+00> : vector<8x256xf32>
      %192 = tpu.matmul %190, %191, %cst_132 {dimension_numbers = #tpu.dot_dimension_numbers<[1], [0], [0], [1], [0, 0, 1, 1], [], []>} : vector<8x8xbf16>, vector<8x256xbf16>, vector<8x256xf32> -> vector<8x256xf32>
      %193 = arith.addf %188, %192 : vector<8x256xf32>
      %c13_133 = arith.constant 13 : index
      %c0_134 = arith.constant 0 : index
      %c0_135 = arith.constant 0 : index
      %194 = vector.load %arg4[%c13_133, %c0_134, %c0_135] : memref<18x8x8xbf16, #tpu.memory_space<vmem>>, vector<1x8x8xbf16>
      %195 = vector.shape_cast %194 : vector<1x8x8xbf16> to vector<8x8xbf16>
      %196 = vector.extract_strided_slice %127 {offsets = [0, 36], sizes = [8, 256], strides = [1, 1]} : vector<8x384xbf16> to vector<8x256xbf16>
      %cst_136 = arith.constant dense<0.000000e+00> : vector<8x256xf32>
      %197 = tpu.matmul %195, %196, %cst_136 {dimension_numbers = #tpu.dot_dimension_numbers<[1], [0], [0], [1], [0, 0, 1, 1], [], []>} : vector<8x8xbf16>, vector<8x256xbf16>, vector<8x256xf32> -> vector<8x256xf32>
      %198 = arith.addf %193, %197 : vector<8x256xf32>
      %c14_137 = arith.constant 14 : index
      %c0_138 = arith.constant 0 : index
      %c0_139 = arith.constant 0 : index
      %199 = vector.load %arg4[%c14_137, %c0_138, %c0_139] : memref<18x8x8xbf16, #tpu.memory_space<vmem>>, vector<1x8x8xbf16>
      %200 = vector.shape_cast %199 : vector<1x8x8xbf16> to vector<8x8xbf16>
      %201 = vector.extract_strided_slice %125 {offsets = [0, 37], sizes = [8, 256], strides = [1, 1]} : vector<8x384xbf16> to vector<8x256xbf16>
      %cst_140 = arith.constant dense<0.000000e+00> : vector<8x256xf32>
      %202 = tpu.matmul %200, %201, %cst_140 {dimension_numbers = #tpu.dot_dimension_numbers<[1], [0], [0], [1], [0, 0, 1, 1], [], []>} : vector<8x8xbf16>, vector<8x256xbf16>, vector<8x256xf32> -> vector<8x256xf32>
      %203 = arith.addf %198, %202 : vector<8x256xf32>
      %c15_141 = arith.constant 15 : index
      %c0_142 = arith.constant 0 : index
      %c0_143 = arith.constant 0 : index
      %204 = vector.load %arg4[%c15_141, %c0_142, %c0_143] : memref<18x8x8xbf16, #tpu.memory_space<vmem>>, vector<1x8x8xbf16>
      %205 = vector.shape_cast %204 : vector<1x8x8xbf16> to vector<8x8xbf16>
      %206 = vector.extract_strided_slice %127 {offsets = [0, 37], sizes = [8, 256], strides = [1, 1]} : vector<8x384xbf16> to vector<8x256xbf16>
      %cst_144 = arith.constant dense<0.000000e+00> : vector<8x256xf32>
      %207 = tpu.matmul %205, %206, %cst_144 {dimension_numbers = #tpu.dot_dimension_numbers<[1], [0], [0], [1], [0, 0, 1, 1], [], []>} : vector<8x8xbf16>, vector<8x256xbf16>, vector<8x256xf32> -> vector<8x256xf32>
      %208 = arith.addf %203, %207 : vector<8x256xf32>
      %c16_145 = arith.constant 16 : index
      %c0_146 = arith.constant 0 : index
      %c0_147 = arith.constant 0 : index
      %209 = vector.load %arg4[%c16_145, %c0_146, %c0_147] : memref<18x8x8xbf16, #tpu.memory_space<vmem>>, vector<1x8x8xbf16>
      %210 = vector.shape_cast %209 : vector<1x8x8xbf16> to vector<8x8xbf16>
      %211 = vector.extract_strided_slice %125 {offsets = [0, 38], sizes = [8, 256], strides = [1, 1]} : vector<8x384xbf16> to vector<8x256xbf16>
      %cst_148 = arith.constant dense<0.000000e+00> : vector<8x256xf32>
      %212 = tpu.matmul %210, %211, %cst_148 {dimension_numbers = #tpu.dot_dimension_numbers<[1], [0], [0], [1], [0, 0, 1, 1], [], []>} : vector<8x8xbf16>, vector<8x256xbf16>, vector<8x256xf32> -> vector<8x256xf32>
      %213 = arith.addf %208, %212 : vector<8x256xf32>
      %c17_149 = arith.constant 17 : index
      %c0_150 = arith.constant 0 : index
      %c0_151 = arith.constant 0 : index
      %214 = vector.load %arg4[%c17_149, %c0_150, %c0_151] : memref<18x8x8xbf16, #tpu.memory_space<vmem>>, vector<1x8x8xbf16>
      %215 = vector.shape_cast %214 : vector<1x8x8xbf16> to vector<8x8xbf16>
      %216 = vector.extract_strided_slice %127 {offsets = [0, 38], sizes = [8, 256], strides = [1, 1]} : vector<8x384xbf16> to vector<8x256xbf16>
      %cst_152 = arith.constant dense<0.000000e+00> : vector<8x256xf32>
      %217 = tpu.matmul %215, %216, %cst_152 {dimension_numbers = #tpu.dot_dimension_numbers<[1], [0], [0], [1], [0, 0, 1, 1], [], []>} : vector<8x8xbf16>, vector<8x256xbf16>, vector<8x256xf32> -> vector<8x256xf32>
      %218 = arith.addf %213, %217 : vector<8x256xf32>
      %219 = vector.broadcast %11 : vector<1x256xf32> to vector<8x256xf32>
      %220 = arith.mulf %218, %219 : vector<8x256xf32>
      %cst_153 = arith.constant dense<0.000000e+00> : vector<8xf32>
      %221 = vector.multi_reduction <add>, %220, %cst_153 [1] : vector<8x256xf32> to vector<8xf32>
      %222 = vector.shape_cast %221 : vector<8xf32> to vector<8x1xf32>
      %223 = arith.addf %113, %222 : vector<8x1xf32>
      %224 = arith.mulf %220, %218 : vector<8x256xf32>
      %cst_154 = arith.constant dense<0.000000e+00> : vector<8xf32>
      %225 = vector.multi_reduction <add>, %224, %cst_154 [1] : vector<8x256xf32> to vector<8xf32>
      %226 = vector.shape_cast %225 : vector<8xf32> to vector<8x1xf32>
      %227 = arith.addf %117, %226 : vector<8x1xf32>
      %c2_i32_155 = arith.constant 2 : i32
      %228 = arith.muli %arg1, %c2_i32_155 : i32
      %c1_i32_156 = arith.constant 1 : i32
      %229 = arith.addi %228, %c1_i32_156 : i32
      %230 = arith.index_cast %229 : i32 to index
      %c0_157 = arith.constant 0 : index
      %c0_158 = arith.constant 0 : index
      %231 = vector.load %arg9[%230, %c0_157, %c0_158] : memref<2x8x256xf32, #tpu.memory_space<vmem>>, vector<1x8x256xf32>
      %232 = vector.shape_cast %231 : vector<1x8x256xf32> to vector<8x256xf32>
      %233 = vector.shape_cast %218 : vector<8x256xf32> to vector<1x8x256xf32>
      tpu.vector_store %arg9[%230, %c0_157, %c0_158], %233 {strides = array<i32>} : memref<2x8x256xf32, #tpu.memory_space<vmem>>, vector<1x8x256xf32>,
      %c0_159 = arith.constant 0 : index
      %c0_160 = arith.constant 0 : index
      %234 = vector.load %arg10[%c0_159, %c0_160] : memref<8x1xf32, #tpu.memory_space<vmem>>, vector<8x1xf32>
      %235 = arith.addf %234, %223 : vector<8x1xf32>
      %c0_161 = arith.constant 0 : index
      %c0_162 = arith.constant 0 : index
      %236 = vector.load %arg10[%c0_161, %c0_162] : memref<8x1xf32, #tpu.memory_space<vmem>>, vector<8x1xf32>
      tpu.vector_store %arg10[%c0_161, %c0_162], %235 {strides = array<i32>} : memref<8x1xf32, #tpu.memory_space<vmem>>, vector<8x1xf32>,
      %c0_163 = arith.constant 0 : index
      %c0_164 = arith.constant 0 : index
      %237 = vector.load %arg11[%c0_163, %c0_164] : memref<8x1xf32, #tpu.memory_space<vmem>>, vector<8x1xf32>
      %238 = arith.addf %237, %227 : vector<8x1xf32>
      %c0_165 = arith.constant 0 : index
      %c0_166 = arith.constant 0 : index
      %239 = vector.load %arg11[%c0_165, %c0_166] : memref<8x1xf32, #tpu.memory_space<vmem>>, vector<8x1xf32>
      tpu.vector_store %arg11[%c0_165, %c0_166], %238 {strides = array<i32>} : memref<8x1xf32, #tpu.memory_space<vmem>>, vector<8x1xf32>,
    } else {
    }
    %c1_i32 = arith.constant 1 : i32
    %8 = arith.cmpi eq, %arg0, %c1_i32 : i32
    %9 = arith.extui %8 : i1 to i32
    %c0_i32_4 = arith.constant 0 : i32
    %10 = arith.cmpi ne, %9, %c0_i32_4 : i32
    scf.if %10 {
      %c0_i32_5 = arith.constant 0 : i32
      %11 = arith.cmpi eq, %arg1, %c0_i32_5 : i32
      %12 = arith.extui %11 : i1 to i32
      %c0_i32_6 = arith.constant 0 : i32
      %13 = arith.cmpi ne, %12, %c0_i32_6 : i32
      scf.if %13 {
        %c0_25 = arith.constant 0 : index
        %c0_26 = arith.constant 0 : index
        %49 = vector.load %arg10[%c0_25, %c0_26] : memref<8x1xf32, #tpu.memory_space<vmem>>, vector<8x1xf32>
        %cst_27 = arith.constant 7.812500e-03 : f32
        %50 = vector.broadcast %cst_27 : f32 to vector<8x1xf32>
        %51 = arith.mulf %49, %50 : vector<8x1xf32>
        %c0_28 = arith.constant 0 : index
        %c0_29 = arith.constant 0 : index
        %52 = vector.load %arg11[%c0_28, %c0_29] : memref<8x1xf32, #tpu.memory_space<vmem>>, vector<8x1xf32>
        %cst_30 = arith.constant 7.812500e-03 : f32
        %53 = vector.broadcast %cst_30 : f32 to vector<8x1xf32>
        %54 = arith.mulf %52, %53 : vector<8x1xf32>
        %55 = arith.mulf %51, %51 : vector<8x1xf32>
        %56 = arith.subf %54, %55 : vector<8x1xf32>
        %cst_31 = arith.constant 9.99999974E-6 : f32
        %57 = vector.broadcast %cst_31 : f32 to vector<8x1xf32>
        %58 = arith.addf %56, %57 : vector<8x1xf32>
        %59 = math.rsqrt %58 : vector<8x1xf32>
        %c0_32 = arith.constant 0 : index
        %c0_33 = arith.constant 0 : index
        %60 = vector.load %arg5[%c0_32, %c0_33] : memref<8x1xf32, #tpu.memory_space<vmem>>, vector<8x1xf32>
        %61 = arith.mulf %59, %60 : vector<8x1xf32>
        %c0_34 = arith.constant 0 : index
        %c0_35 = arith.constant 0 : index
        %62 = vector.load %arg10[%c0_34, %c0_35] : memref<8x1xf32, #tpu.memory_space<vmem>>, vector<8x1xf32>
        tpu.vector_store %arg10[%c0_34, %c0_35], %61 {strides = array<i32>} : memref<8x1xf32, #tpu.memory_space<vmem>>, vector<8x1xf32>,
        %c0_36 = arith.constant 0 : index
        %c0_37 = arith.constant 0 : index
        %63 = vector.load %arg6[%c0_36, %c0_37] : memref<8x1xf32, #tpu.memory_space<vmem>>, vector<8x1xf32>
        %64 = arith.mulf %51, %61 : vector<8x1xf32>
        %65 = arith.subf %63, %64 : vector<8x1xf32>
        %c0_38 = arith.constant 0 : index
        %c0_39 = arith.constant 0 : index
        %66 = vector.load %arg11[%c0_38, %c0_39] : memref<8x1xf32, #tpu.memory_space<vmem>>, vector<8x1xf32>
        tpu.vector_store %arg11[%c0_38, %c0_39], %65 {strides = array<i32>} : memref<8x1xf32, #tpu.memory_space<vmem>>, vector<8x1xf32>,
      } else {
      }
      %c0 = arith.constant 0 : index
      %c0_7 = arith.constant 0 : index
      %14 = vector.load %arg10[%c0, %c0_7] : memref<8x1xf32, #tpu.memory_space<vmem>>, vector<8x1xf32>
      %c0_8 = arith.constant 0 : index
      %c0_9 = arith.constant 0 : index
      %15 = vector.load %arg11[%c0_8, %c0_9] : memref<8x1xf32, #tpu.memory_space<vmem>>, vector<8x1xf32>
      %c0_10 = arith.constant 0 : index
      %c0_11 = arith.constant 0 : index
      %16 = vector.load %arg7[%c0_10, %c0_11] : memref<1x256xf32, #tpu.memory_space<vmem>>, vector<1x256xf32>
      %c2_i32 = arith.constant 2 : i32
      %17 = arith.muli %arg1, %c2_i32 : i32
      %c0_i32_12 = arith.constant 0 : i32
      %18 = arith.addi %17, %c0_i32_12 : i32
      %19 = arith.index_cast %18 : i32 to index
      %c0_13 = arith.constant 0 : index
      %c0_14 = arith.constant 0 : index
      %20 = vector.load %arg9[%19, %c0_13, %c0_14] : memref<2x8x256xf32, #tpu.memory_space<vmem>>, vector<1x8x256xf32>
      %21 = vector.shape_cast %20 : vector<1x8x256xf32> to vector<8x256xf32>
      %22 = vector.broadcast %14 : vector<8x1xf32> to vector<8x256xf32>
      %23 = arith.mulf %21, %22 : vector<8x256xf32>
      %24 = vector.broadcast %15 : vector<8x1xf32> to vector<8x256xf32>
      %25 = arith.addf %23, %24 : vector<8x256xf32>
      %cst = arith.constant 0.000000e+00 : f32
      %26 = vector.broadcast %cst : f32 to vector<8x256xf32>
      %27 = arith.maximumf %25, %26 : vector<8x256xf32>
      %28 = vector.broadcast %16 : vector<1x256xf32> to vector<8x256xf32>
      %29 = arith.mulf %27, %28 : vector<8x256xf32>
      %c0_15 = arith.constant 0 : index
      %c0_16 = arith.constant 0 : index
      %c0_17 = arith.constant 0 : index
      %30 = vector.load %arg8[%c0_15, %c0_16, %c0_17] : memref<2x8x256xf32, #tpu.memory_space<vmem>>, vector<1x8x256xf32>
      %31 = vector.shape_cast %30 : vector<1x8x256xf32> to vector<8x256xf32>
      %32 = vector.shape_cast %29 : vector<8x256xf32> to vector<1x8x256xf32>
      tpu.vector_store %arg8[%c0_15, %c0_16, %c0_17], %32 {strides = array<i32>} : memref<2x8x256xf32, #tpu.memory_space<vmem>>, vector<1x8x256xf32>,
      %c2_i32_18 = arith.constant 2 : i32
      %33 = arith.muli %arg1, %c2_i32_18 : i32
      %c1_i32_19 = arith.constant 1 : i32
      %34 = arith.addi %33, %c1_i32_19 : i32
      %35 = arith.index_cast %34 : i32 to index
      %c0_20 = arith.constant 0 : index
      %c0_21 = arith.constant 0 : index
      %36 = vector.load %arg9[%35, %c0_20, %c0_21] : memref<2x8x256xf32, #tpu.memory_space<vmem>>, vector<1x8x256xf32>
      %37 = vector.shape_cast %36 : vector<1x8x256xf32> to vector<8x256xf32>
      %38 = vector.broadcast %14 : vector<8x1xf32> to vector<8x256xf32>
      %39 = arith.mulf %37, %38 : vector<8x256xf32>
      %40 = vector.broadcast %15 : vector<8x1xf32> to vector<8x256xf32>
      %41 = arith.addf %39, %40 : vector<8x256xf32>
      %cst_22 = arith.constant 0.000000e+00 : f32
      %42 = vector.broadcast %cst_22 : f32 to vector<8x256xf32>
      %43 = arith.maximumf %41, %42 : vector<8x256xf32>
      %44 = vector.broadcast %16 : vector<1x256xf32> to vector<8x256xf32>
      %45 = arith.mulf %43, %44 : vector<8x256xf32>
      %c1 = arith.constant 1 : index
      %c0_23 = arith.constant 0 : index
      %c0_24 = arith.constant 0 : index
      %46 = vector.load %arg8[%c1, %c0_23, %c0_24] : memref<2x8x256xf32, #tpu.memory_space<vmem>>, vector<1x8x256xf32>
      %47 = vector.shape_cast %46 : vector<1x8x256xf32> to vector<8x256xf32>
      %48 = vector.shape_cast %45 : vector<8x256xf32> to vector<1x8x256xf32>
      tpu.vector_store %arg8[%c1, %c0_23, %c0_24], %48 {strides = array<i32>} : memref<2x8x256xf32, #tpu.memory_space<vmem>>, vector<1x8x256xf32>,
    } else {
    }
    return
  }
  func.func @transform_0(%arg0: i32, %arg1: i32) -> (i32, i32, i32) {
    %c1_i32 = arith.constant 1 : i32
    %0 = arith.subi %c1_i32, %arg0 : i32
    %1 = arith.muli %0, %arg1 : i32
    %c0_i32 = arith.constant 0 : i32
    %2 = arith.muli %arg0, %c0_i32 : i32
    %3 = arith.addi %1, %2 : i32
    %c0_i32_0 = arith.constant 0 : i32
    %c0_i32_1 = arith.constant 0 : i32
    %c0_i32_2 = arith.constant 0 : i32
    return %3, %c0_i32_0, %c0_i32_1 : i32, i32, i32
  }
  func.func @transform_1(%arg0: i32, %arg1: i32) -> (i32, i32, i32) {
    %c1_i32 = arith.constant 1 : i32
    %0 = arith.subi %c1_i32, %arg0 : i32
    %1 = arith.muli %0, %arg1 : i32
    %c0_i32 = arith.constant 0 : i32
    %2 = arith.muli %arg0, %c0_i32 : i32
    %3 = arith.addi %1, %2 : i32
    %c0_i32_0 = arith.constant 0 : i32
    %c0_i32_1 = arith.constant 0 : i32
    %c0_i32_2 = arith.constant 0 : i32
    return %3, %c0_i32_0, %c0_i32_1 : i32, i32, i32
  }
  func.func @transform_2(%arg0: i32, %arg1: i32) -> (i32, i32, i32) {
    %c0_i32 = arith.constant 0 : i32
    %c0_i32_0 = arith.constant 0 : i32
    %c0_i32_1 = arith.constant 0 : i32
    %c0_i32_2 = arith.constant 0 : i32
    return %c0_i32, %c0_i32_0, %c0_i32_1 : i32, i32, i32
  }
  func.func @transform_3(%arg0: i32, %arg1: i32) -> (i32, i32) {
    %c0_i32 = arith.constant 0 : i32
    %c0_i32_0 = arith.constant 0 : i32
    %c0_i32_1 = arith.constant 0 : i32
    return %c0_i32, %c0_i32_0 : i32, i32
  }
  func.func @transform_4(%arg0: i32, %arg1: i32) -> (i32, i32) {
    %c0_i32 = arith.constant 0 : i32
    %c0_i32_0 = arith.constant 0 : i32
    %c0_i32_1 = arith.constant 0 : i32
    return %c0_i32, %c0_i32_0 : i32, i32
  }
  func.func @transform_5(%arg0: i32, %arg1: i32) -> (i32, i32) {
    %c0_i32 = arith.constant 0 : i32
    %c0_i32_0 = arith.constant 0 : i32
    %c0_i32_1 = arith.constant 0 : i32
    return %c0_i32, %c0_i32_0 : i32, i32
  }
  func.func @transform_6(%arg0: i32, %arg1: i32) -> (i32, i32, i32) {
    %0 = arith.muli %arg0, %arg1 : i32
    %c0_i32 = arith.constant 0 : i32
    %c0_i32_0 = arith.constant 0 : i32
    %c0_i32_1 = arith.constant 0 : i32
    return %0, %c0_i32, %c0_i32_0 : i32, i32, i32
  }
}

</mosaic_0001>

<bundles_post_ra>
// kernel: conv2x_forward.2
= control target key start
LH: loop header
LB: loop body
LE: loop exit
PB: predicated region body
PF: predicated region fallthrough
CT: control target
= control target key end

     0   :  { %s1961_s21 = smov 0   ;;  %s1963_s22 = smov 0   ;;  %s2290_s0 = inlined_call_operand.vmem [shape: bf16[2,4,384], index: 0, kind: input, shape index: {}]   ;;  %s2291_s1 = inlined_call_operand.vmem [shape: bf16[2,4,384], index: 1, kind: input, shape index: {}]   ;;  %s2292_s2 = inlined_call_operand.vmem [shape: bf16[9,8,4], index: 2, kind: input, shape index: {}]   ;;  %s2293_s3 = inlined_call_operand.vmem [shape: f32[8,1], index: 3, kind: input, shape index: {}]   ;;  %s2294_s4 = inlined_call_operand.vmem [shape: f32[8,1], index: 4, kind: input, shape index: {}]   ;;  %s2295_s5 = inlined_call_operand.vmem [shape: f32[1,256], index: 5, kind: input, shape index: {}]   ;;  %s2296_s6 = inlined_call_operand.vmem [shape: bf16[2,8,384], index: 6, kind: output, shape index: {}]  }
   0x1   :  { %s1965_s23 = smov 0  }
   0x2 LB: > { %s28_s24 = sadd.s32 1, %s1910_s22  ;;  %p1776_p0 = scmp.ge.s32.totalorder %s1914_s23, 1  ;;  %s1914_s23 = sphi %s1965_s23, %s16_s23   ;;  %s1910_s22 = sphi %s1963_s22, %s2298_s22   ;;  %s1906_s21 = sphi %s1961_s21, %s2297_s21  }
   0x3   : > { %p30_p1 = scmp.ge.s32.totalorder %s28_s24, 2  ;;  %p256_p2 = scmp.lt.s32.totalorder %s1914_s23, 3 }
   0x5   : > { %s2300_s24 = smov (%p30_p1, %s28_s24), 0  ;;  %p257_p3 = pnand %p1776_p0, %p256_p2 }
   0x6   : > { %p331_p4 = scmp.eq.s32.totalorder (!%p257_p3), %s1906_s21, 0 }
   0x7   : > { %260 = sbr.rel (%p257_p3) target bundleno = 880 (0x370), region = 44 }
   0xc   : > { %336 = sbr.rel (!%p331_p4) target bundleno = 17 (0x11), region = 48  ;;  %vm337_vm0 = vcmask (%p331_p4), 7168   ;;  %v1916_v0 = vmov (%p331_p4), 0.0  }
   0xd   : > { %338 = vst.msk [vmem:[#allocation3] sm:$0xff] (%p331_p4), %vm337_vm0, %v1916_v0  ;;  %339 = vst.msk [vmem:[#allocation4] sm:$0xff] (%p331_p4), %vm337_vm0, %v1916_v0 }
  0x11 PF: > { %p1778_p5 = scmp.ne.s32.totalorder %s1906_s21, 0 }
  0x12   : > { %s1919_s29 = smov (!%p1778_p5), 127   ;;  %s1920_s10 = smov (!%p1778_p5), 119  }
  0x13   : > { %342 = sbr.rel (%p1778_p5) target bundleno = 581 (0x245), region = 52  ;;  %s1921_s11 = smov (!%p1778_p5), 118  }
  0x14   : > { %s1922_s12 = smov (!%p1778_p5), 110   ;;  %s1923_s15 = smov (!%p1778_p5), 109  }
  0x18   : > { %v344_v1 = vld [vmem:[%s2290_s0] sm:$0x3f]  ;;  %v353_v2 = vlaneseq  ;;  %v1917_v3 = vmov 1983009808   ;;  %v1918_v9 = vmov 0   ;;  %vm362_vm1 = vcmask 1041408  }
  0x19   : > { %v351_v4 = vunpack.c.l.s4 %v1917_v3  ;;  %v471_v7 = vcombine.high %v344_v1, %v344_v1  ;;  %v345_v8 = vld [vmem:[%s2291_s1] sm:$0x3f]  ;;  %401 = vmatprep.mubr.bf16.mxu0 %v1918_v9  ;;  %460 = vmatprep.mubr.bf16.mxu1 %v1918_v9  ;;  %vm358_vm2 = vcmask 31744   ;;  %v1806_v22 = vld [vmem:[%s2290_s0 + $0x6] sm:$0x3f]  ;;  %vm485_vm3 = vcmask 1039360  }
  0x1a   : > { %v1986_v5 = vshrl.u32 %v353_v2, 7  ;;  %v1779_v18 = vld [vmem:[%s2292_s2 + $0x4] sm:$0xf]  ;;  %v346_v19 = vld [vmem:[%s2292_s2] sm:$0xf]  ;;  %v605_v20 = vcombine.high %v345_v8, %v345_v8  ;;  %v1085_v24 = vcombine.high %v1806_v22, %v1806_v22  ;;  %vm548_vm4 = vcmask 973824  }
  0x1b   : > { %v352_v6 = vunpack.c.0.s8 %v351_v4  ;;  %v1807_v27 = vld [vmem:[%s2291_s1 + $0x6] sm:$0x3f]  ;;  %v1787_v45 = vld [vmem:[%s2292_s2 + $0xc] sm:$0xf]  ;;  %vm681_vm5 = vcmask 965632   ;;  %vm744_vm6 = vcmask 900096  }
  0x1c   : > { %v1215_v29 = vcombine.high %v1807_v27, %v1807_v27  ;;  %v1784_v39 = vld [vmem:[%s2292_s2 + $0x8] sm:$0xf]  ;;  %v1790_v53 = vld [vmem:[%s2292_s2 + $0x10] sm:$0xf]  ;;  %v1793_v59 = vld [vmem:[%s2292_s2 + $0x14] sm:$0xf] }
  0x1d   : > { %v1994_v10 = vsub.s32 %v352_v6, %v1986_v5  ;;  %v1796_v3 = vld [vmem:[%s2292_s2 + $0x18] sm:$0xf]  ;;  %vm869_vm7 = vcmask 891904   ;;  %vm1554_vm8 = vcmask 7168  }
  0x1f   : > { %v478_v11 = vrot.slane %v471_v7, %v1994_v10  ;;  %v417_v12 = vrot.slane %v344_v1, %v1994_v10  ;;  %v356_v13 = vrot.slane %v345_v8, %v1994_v10  ;;  %v612_v21 = vrot.slane %v605_v20, %v1994_v10  ;;  %v1802_v20 = vld [vmem:[%s2292_s2 + $0x20] sm:$0xf] }
  0x20   : > { %v2038_v23 = vrot.slane %v1806_v22, %v1994_v10  ;;  %v1092_v25 = vrot.slane %v1085_v24, %v1994_v10  ;;  %v2059_v28 = vrot.slane %v1807_v27, %v1994_v10  ;;  %v1222_v30 = vrot.slane %v1215_v29, %v1994_v10  ;;  %v1808_v24 = vld [vmem:[%s2292_s2 + $0x4] sm:$0xf] }
  0x21   : > { %483 = vrot.lane.b32.xlu1 %v478_v11, %s1919_s29  ;;  %479 = vrot.lane.b32.xlu0 %v417_v12, %s1919_s29  ;;  %v418_v14 = vcombine.high %v417_v12, %v417_v12  ;;  %v357_v15 = vcombine.high %v356_v13, %v356_v13  ;;  %v364_v16 = vsel %vm362_vm1, %v356_v13, 0  ;;  %v423_v17 = vsel %vm362_vm1, %v417_v12, 0 }
  0x22   : > { %v2046_v26 = vcombine.high %v2038_v23, %v2038_v23  ;;  %v2067_v31 = vcombine.high %v2059_v28, %v2059_v28 }
  0x23   : > { %1780 = vmatprep.subr.msk.bf16.mxu0 %vm362_vm1, %v357_v15  ;;  %1782 = vmatprep.subr.msk.bf16.mxu1 %vm362_vm1, %v418_v14 }
  0x24   : > { %384 = vmatpush1.bf16.msra.mxu0 %v364_v16  ;;  %443 = vmatpush1.bf16.msra.mxu1 %v423_v17 }
  0x25   : > { %542 = vrot.lane.b32.xlu1 %v417_v12, %s1920_s10  ;;  %481 = vrot.lane.b32.xlu0 %v418_v14, %s1919_s29 }
  0x27   : > { %1781 = vmatmul.mubr.msk.bf16.vlgmr.msra.gmra.mxu0 %vm358_vm2, %v1779_v18  ;;  %1783 = vmatmul.mubr.msk.bf16.vlgmr.msra.gmra.mxu1 %vm358_vm2, %v346_v19 }
  0x28   : > { %529 = vmatprep.mubr.bf16.mxu0 %v1918_v9  ;;  %592 = vmatprep.mubr.bf16.mxu1 %v1918_v9 }
  0x29   : > { %546 = vrot.lane.b32.xlu1 %v478_v11, %s1920_s10  ;;  %544 = vrot.lane.b32.xlu0 %v418_v14, %s1920_s10 }
  0x2d   : > { %615 = vrot.lane.b32.xlu1 %v357_v15, %s1920_s10  ;;  %613 = vrot.lane.b32.xlu0 %v356_v13, %s1920_s10 }
  0x31   : > { %675 = vrot.lane.b32.xlu1 %v417_v12, %s1921_s11  ;;  %617 = vrot.lane.b32.xlu0 %v612_v21, %s1920_s10 }
  0x35   : > { %679 = vrot.lane.b32.xlu1 %v478_v11, %s1921_s11  ;;  %677 = vrot.lane.b32.xlu0 %v418_v14, %s1921_s11 }
  0x39   : > { %740 = vrot.lane.b32.xlu1 %v418_v14, %s1922_s12  ;;  %738 = vrot.lane.b32.xlu0 %v417_v12, %s1922_s12 }
  0x3d   : > { %801 = vrot.lane.b32.xlu1 %v356_v13, %s1922_s12  ;;  %742 = vrot.lane.b32.xlu0 %v478_v11, %s1922_s12 }
  0x41   : > { %805 = vrot.lane.b32.xlu1 %v612_v21, %s1922_s12  ;;  %803 = vrot.lane.b32.xlu0 %v357_v15, %s1922_s12 }
  0x45   : > { %865 = vrot.lane.b32.xlu1 %v418_v14, %s1923_s15  ;;  %863 = vrot.lane.b32.xlu0 %v417_v12, %s1923_s15  ;;  %v979_v14 = vsel %vm362_vm1, %v2059_v28, 0 }
  0x49   : > { %1093 = vrot.lane.b32.xlu1 %v2038_v23, %s1919_s29  ;;  %867 = vrot.lane.b32.xlu0 %v478_v11, %s1923_s15  ;;  %v1799_v11 = vld [vmem:[%s2292_s2 + $0x1c] sm:$0xf] }
  0x4d   : > { %1097 = vrot.lane.b32.xlu1 %v1092_v25, %s1919_s29  ;;  %1095 = vrot.lane.b32.xlu0 %v2046_v26, %s1919_s29 }
  0x51   : > { %1156 = vrot.lane.b32.xlu1 %v2046_v26, %s1920_s10  ;;  %1154 = vrot.lane.b32.xlu0 %v2038_v23, %s1920_s10 }
  0x55   : > { %1223 = vrot.lane.b32.xlu1 %v2059_v28, %s1920_s10  ;;  %1158 = vrot.lane.b32.xlu0 %v1092_v25, %s1920_s10 }
  0x59   : > { %1227 = vrot.lane.b32.xlu1 %v1222_v30, %s1920_s10  ;;  %1225 = vrot.lane.b32.xlu0 %v2067_v31, %s1920_s10 }
  0x5d   : > { %1286 = vrot.lane.b32.xlu1 %v2046_v26, %s1921_s11  ;;  %1284 = vrot.lane.b32.xlu0 %v2038_v23, %s1921_s11 }
  0x61   : > { %1345 = vrot.lane.b32.xlu1 %v2038_v23, %s1922_s12  ;;  %1288 = vrot.lane.b32.xlu0 %v1092_v25, %s1921_s11 }
  0x65   : > { %1349 = vrot.lane.b32.xlu1 %v1092_v25, %s1922_s12  ;;  %1347 = vrot.lane.b32.xlu0 %v2046_v26, %s1922_s12 }
  0x69   : > { %1408 = vrot.lane.b32.xlu1 %v2067_v31, %s1922_s12  ;;  %1406 = vrot.lane.b32.xlu0 %v2059_v28, %s1922_s12 }
  0x6d   : > { %1467 = vrot.lane.b32.xlu1 %v2038_v23, %s1923_s15  ;;  %1410 = vrot.lane.b32.xlu0 %v1222_v30, %s1922_s12 }
  0x71   : > { %1471 = vrot.lane.b32.xlu1 %v1092_v25, %s1923_s15  ;;  %1469 = vrot.lane.b32.xlu0 %v2046_v26, %s1923_s15  ;;  %v1038_v25 = vsel %vm362_vm1, %v2038_v23, 0 }
  0x93   : > { %v484_v32 = vpop.permute.xlu1 %483  ;;  %v480_v33 = vpop.permute.xlu0 %479 }
  0x97   : > { %v543_v34 = vpop.permute.xlu1 %542  ;;  %v482_v35 = vpop.permute.xlu0 %481 }
  0x98   : > { %v486_v36 = vsel %vm485_vm3, %v480_v33, %v482_v35  ;;  %v487_v37 = vsel %vm485_vm3, %v482_v35, %v484_v32 }
  0x99   : > { %v492_v38 = vsel %vm362_vm1, %v486_v36, 0  ;;  %1785 = vmatprep.subr.msk.bf16.mxu0 %vm362_vm1, %v487_v37 }
  0x9a   : > { %512 = vmatpush1.bf16.msra.mxu0 %v492_v38 }
  0x9b   : > { %v547_v40 = vpop.permute.xlu1 %546  ;;  %v545_v41 = vpop.permute.xlu0 %544 }
  0x9c   : > { %v549_v42 = vsel %vm548_vm4, %v543_v34, %v545_v41  ;;  %v550_v43 = vsel %vm548_vm4, %v545_v41, %v547_v40  ;;  %v1813_v34 = vld [vmem:[%s2292_s2 + $0x8] sm:$0xf] }
  0x9d   : > { %v555_v44 = vsel %vm362_vm1, %v549_v42, 0  ;;  %1788 = vmatprep.subr.msk.bf16.mxu1 %vm362_vm1, %v550_v43  ;;  %1786 = vmatmul.mubr.msk.bf16.vlgmr.msra.gmra.mxu0 %vm358_vm2, %v1784_v39  ;;  %v1816_v42 = vld [vmem:[%s2292_s2 + $0xc] sm:$0xf] }
  0x9e   : > { %575 = vmatpush1.bf16.msra.mxu1 %v555_v44  ;;  %662 = vmatprep.mubr.bf16.mxu0 %v1918_v9 }
  0x9f   : > { %v616_v46 = vpop.permute.xlu1 %615  ;;  %v614_v47 = vpop.permute.xlu0 %613 }
  0xa0   : > { %v619_v48 = vsel %vm548_vm4, %v614_v47, %v616_v46 }
  0xa1   : > { %1789 = vmatmul.mubr.msk.bf16.vlgmr.msra.gmra.mxu1 %vm358_vm2, %v1787_v45  ;;  %v625_v52 = vsel %vm362_vm1, %v619_v48, 0  ;;  %v1819_v45 = vld [vmem:[%s2292_s2 + $0x10] sm:$0xf] }
  0xa2   : > { %725 = vmatprep.mubr.bf16.mxu1 %v1918_v9 }
  0xa3   : > { %v676_v49 = vpop.permute.xlu1 %675  ;;  %v618_v50 = vpop.permute.xlu0 %617 }
  0xa4   : > { %v620_v51 = vsel %vm548_vm4, %v616_v46, %v618_v50 }
  0xa5   : > { %1791 = vmatprep.subr.msk.bf16.mxu0 %vm362_vm1, %v620_v51  ;;  %v1822_v51 = vld [vmem:[%s2292_s2 + $0x14] sm:$0xf] }
  0xa6   : > { %645 = vmatpush1.bf16.msra.mxu0 %v625_v52 }
  0xa7   : > { %v680_v54 = vpop.permute.xlu1 %679  ;;  %v678_v55 = vpop.permute.xlu0 %677 }
  0xa8   : > { %v682_v56 = vsel %vm681_vm5, %v676_v49, %v678_v55  ;;  %v683_v57 = vsel %vm681_vm5, %v678_v55, %v680_v54 }
  0xa9   : > { %v688_v58 = vsel %vm362_vm1, %v682_v56, 0  ;;  %1794 = vmatprep.subr.msk.bf16.mxu1 %vm362_vm1, %v683_v57  ;;  %1792 = vmatmul.mubr.msk.bf16.vlgmr.msra.gmra.mxu0 %vm358_vm2, %v1790_v53  ;;  %v1825_v57 = vld [vmem:[%s2292_s2 + $0x18] sm:$0xf] }
  0xaa   : > { %708 = vmatpush1.bf16.msra.mxu1 %v688_v58  ;;  %788 = vmatprep.mubr.bf16.mxu0 %v1918_v9 }
  0xab   : > { %v741_v60 = vpop.permute.xlu1 %740  ;;  %v739_v61 = vpop.permute.xlu0 %738 }
  0xac   : > { %v745_v62 = vsel %vm744_vm6, %v739_v61, %v741_v60 }
  0xad   : > { %1795 = vmatmul.mubr.msk.bf16.vlgmr.msra.gmra.mxu1 %vm358_vm2, %v1793_v59  ;;  %v751_v2 = vsel %vm362_vm1, %v745_v62, 0 }
  0xae   : > { %850 = vmatprep.mubr.bf16.mxu1 %v1918_v9 }
  0xaf   : > { %v802_v63 = vpop.permute.xlu1 %801  ;;  %v743_v0 = vpop.permute.xlu0 %742 }
  0xb0   : > { %v746_v1 = vsel %vm744_vm6, %v741_v60, %v743_v0 }
  0xb1   : > { %1797 = vmatprep.subr.msk.bf16.mxu0 %vm362_vm1, %v746_v1  ;;  %v1828_v1 = vld [vmem:[%s2292_s2 + $0x1c] sm:$0xf] }
  0xb2   : > { %771 = vmatpush1.bf16.msra.mxu0 %v751_v2 }
  0xb3   : > { %v806_v4 = vpop.permute.xlu1 %805  ;;  %v804_v6 = vpop.permute.xlu0 %803 }
  0xb4   : > { %v807_v7 = vsel %vm744_vm6, %v802_v63, %v804_v6  ;;  %v808_v8 = vsel %vm744_vm6, %v804_v6, %v806_v4 }
  0xb5   : > { %v813_v10 = vsel %vm362_vm1, %v807_v7, 0  ;;  %1798 = vmatmul.mubr.msk.bf16.vlgmr.msra.gmra.mxu0 %vm358_vm2, %v1796_v3  ;;  %1800 = vmatprep.subr.msk.bf16.mxu1 %vm362_vm1, %v808_v8  ;;  %v1831_v7 = vld [vmem:[%s2292_s2 + $0x20] sm:$0xf] }
  0xb6   : > { %833 = vmatpush1.bf16.msra.mxu1 %v813_v10  ;;  %913 = vmatprep.mubr.bf16.mxu0 %v1918_v9 }
  0xb7   : > { %v866_v12 = vpop.permute.xlu1 %865  ;;  %v864_v13 = vpop.permute.xlu0 %863  ;;  %1809 = vmatprep.subr.msk.bf16.mxu1 %vm362_vm1, %v2067_v31 }
  0xb8   : > { %v870_v15 = vsel %vm869_vm7, %v864_v13, %v866_v12 }
  0xb9   : > { %1801 = vmatmul.mubr.msk.bf16.vlgmr.msra.gmra.mxu1 %vm358_vm2, %v1799_v11  ;;  %v876_v19 = vsel %vm362_vm1, %v870_v15, 0 }
  0xba   : > { %999 = vmatpush1.bf16.msra.mxu1 %v979_v14  ;;  %1016 = vmatprep.mubr.bf16.mxu1 %v1918_v9 }
  0xbb   : > { %v1094_v16 = vpop.permute.xlu1 %1093  ;;  %v868_v17 = vpop.permute.xlu0 %867 }
  0xbc   : > { %v871_v18 = vsel %vm869_vm7, %v866_v12, %v868_v17 }
  0xbd   : > { %1803 = vmatprep.subr.msk.bf16.mxu0 %vm362_vm1, %v871_v18 }
  0xbe   : > { %896 = vmatpush1.bf16.msra.mxu0 %v876_v19 }
  0xbf   : > { %v1098_v21 = vpop.permute.xlu1 %1097  ;;  %v1096_v22 = vpop.permute.xlu0 %1095  ;;  %1811 = vmatprep.subr.msk.bf16.mxu0 %vm362_vm1, %v2046_v26  ;;  %v964_v26 = vld [vmem:[%s2292_s2] sm:$0xf] }
  0xc0   : > { %v1099_v27 = vsel %vm485_vm3, %v1094_v16, %v1096_v22  ;;  %v1100_v28 = vsel %vm485_vm3, %v1096_v22, %v1098_v21 }
  0xc1   : > { %v1105_v29 = vsel %vm362_vm1, %v1099_v27, 0  ;;  %1804 = vmatmul.mubr.msk.bf16.vlgmr.msra.gmra.mxu0 %vm358_vm2, %v1802_v20  ;;  %1814 = vmatprep.subr.msk.bf16.mxu1 %vm362_vm1, %v1100_v28 }
  0xc2   : > { %1810 = vmatmul.mubr.msk.bf16.vlgmr.msra.gmra.mxu1 %vm358_vm2, %v1808_v24  ;;  %1058 = vmatpush1.bf16.msra.mxu0 %v1038_v25 }
  0xc3   : > { %1125 = vmatpush1.bf16.msra.mxu1 %v1105_v29  ;;  %v1157_v30 = vpop.permute.xlu1 %1156  ;;  %v1155_v31 = vpop.permute.xlu0 %1154  ;;  %1075 = vmatprep.mubr.bf16.mxu0 %v1918_v9 }
  0xc4   : > { %1142 = vmatprep.mubr.bf16.mxu1 %v1918_v9  ;;  %v1160_v23 = vsel %vm548_vm4, %v1155_v31, %v1157_v30 }
  0xc5   : > { %v1166_v36 = vsel %vm362_vm1, %v1160_v23, 0 }
  0xc7   : > { %v1224_v32 = vpop.permute.xlu1 %1223  ;;  %v1159_v33 = vpop.permute.xlu0 %1158 }
  0xc8   : > { %v1161_v35 = vsel %vm548_vm4, %v1157_v30, %v1159_v33 }
  0xc9   : > { %1812 = vmatmul.mubr.msk.bf16.vlgmr.msra.gmra.mxu0 %vm358_vm2, %v964_v26  ;;  %1817 = vmatprep.subr.msk.bf16.mxu0 %vm362_vm1, %v1161_v35 }
  0xca   : > { %1186 = vmatpush1.bf16.msra.mxu0 %v1166_v36  ;;  %1815 = vmatmul.mubr.msk.bf16.vlgmr.msra.gmra.mxu1 %vm358_vm2, %v1813_v34 }
  0xcb   : > { %v1228_v37 = vpop.permute.xlu1 %1227  ;;  %v1226_v38 = vpop.permute.xlu0 %1225  ;;  %1203 = vmatprep.mubr.bf16.mxu0 %v1918_v9  ;;  %1272 = vmatprep.mubr.bf16.mxu1 %v1918_v9 }
  0xcc   : > { %v1229_v39 = vsel %vm548_vm4, %v1224_v32, %v1226_v38  ;;  %v1230_v40 = vsel %vm548_vm4, %v1226_v38, %v1228_v37 }
  0xcd   : > { %v1235_v41 = vsel %vm362_vm1, %v1229_v39, 0  ;;  %1820 = vmatprep.subr.msk.bf16.mxu1 %vm362_vm1, %v1230_v40 }
  0xce   : > { %1255 = vmatpush1.bf16.msra.mxu1 %v1235_v41 }
  0xcf   : > { %v1287_v43 = vpop.permute.xlu1 %1286  ;;  %v1285_v44 = vpop.permute.xlu0 %1284 }
  0xd0   : > { %v1290_v46 = vsel %vm681_vm5, %v1285_v44, %v1287_v43 }
  0xd1   : > { %1818 = vmatmul.mubr.msk.bf16.vlgmr.msra.gmra.mxu0 %vm358_vm2, %v1816_v42  ;;  %v1296_v50 = vsel %vm362_vm1, %v1290_v46, 0 }
  0xd2   : > { %1821 = vmatmul.mubr.msk.bf16.vlgmr.msra.gmra.mxu1 %vm358_vm2, %v1819_v45  ;;  %1333 = vmatprep.mubr.bf16.mxu0 %v1918_v9 }
  0xd3   : > { %v1346_v47 = vpop.permute.xlu1 %1345  ;;  %v1289_v48 = vpop.permute.xlu0 %1288  ;;  %1394 = vmatprep.mubr.bf16.mxu1 %v1918_v9 }
  0xd4   : > { %v1291_v49 = vsel %vm681_vm5, %v1287_v43, %v1289_v48  ;;  %v927_v48 = vsub.s32 0, %v1986_v5 }
  0xd5   : > { %1823 = vmatprep.subr.msk.bf16.mxu0 %vm362_vm1, %v1291_v49 }
  0xd6   : > { %1316 = vmatpush1.bf16.msra.mxu0 %v1296_v50  ;;  %v343_v50 = vld [vmem:[%s2295_s5] sm:$0x3] }
  0xd7   : > { %v1350_v52 = vpop.permute.xlu1 %1349  ;;  %v1348_v53 = vpop.permute.xlu0 %1347 }
  0xd8   : > { %v1351_v54 = vsel %vm744_vm6, %v1346_v47, %v1348_v53  ;;  %v1352_v55 = vsel %vm744_vm6, %v1348_v53, %v1350_v52  ;;  %v931_v53 = vsub.s32 1, %v1986_v5 }
  0xd9   : > { %v1357_v56 = vsel %vm362_vm1, %v1351_v54, 0  ;;  %1824 = vmatmul.mubr.msk.bf16.vlgmr.msra.gmra.mxu0 %vm358_vm2, %v1822_v51  ;;  %1826 = vmatprep.subr.msk.bf16.mxu1 %vm362_vm1, %v1352_v55 }
  0xda   : > { %1377 = vmatpush1.bf16.msra.mxu1 %v1357_v56  ;;  %1455 = vmatprep.mubr.bf16.mxu0 %v1918_v9 }
  0xdb   : > { %v1409_v58 = vpop.permute.xlu1 %1408  ;;  %v1407_v59 = vpop.permute.xlu0 %1406 }
  0xdc   : > { %v1412_v60 = vsel %vm744_vm6, %v1407_v59, %v1409_v58 }
  0xdd   : > { %1827 = vmatmul.mubr.msk.bf16.vlgmr.msra.gmra.mxu1 %vm358_vm2, %v1825_v57  ;;  %v1418_v0 = vsel %vm362_vm1, %v1412_v60, 0  ;;  %v2239_v57 = vrot.slane %v343_v50, %v927_v48 }
  0xde   : > { %1516 = vmatprep.mubr.bf16.mxu1 %v1918_v9 }
  0xdf   : > { %v1468_v61 = vpop.permute.xlu1 %1467  ;;  %v1411_v62 = vpop.permute.xlu0 %1410 }
  0xe0   : > { %v1413_v63 = vsel %vm744_vm6, %v1409_v58, %v1411_v62  ;;  %v2241_v62 = vrot.slane %v343_v50, %v931_v53 }
  0xe1   : > { %1829 = vmatprep.subr.msk.bf16.mxu0 %vm362_vm1, %v1413_v63 }
  0xe2   : > { %1438 = vmatpush1.bf16.msra.mxu0 %v1418_v0 }
  0xe3   : > { %v1472_v2 = vpop.permute.xlu1 %1471  ;;  %v1470_v3 = vpop.permute.xlu0 %1469 }
  0xe4   : > { %v1473_v4 = vsel %vm869_vm7, %v1468_v61, %v1470_v3  ;;  %v1474_v6 = vsel %vm869_vm7, %v1470_v3, %v1472_v2 }
  0xe5   : > { %v1479_v9 = vsel %vm362_vm1, %v1473_v4, 0  ;;  %1830 = vmatmul.mubr.msk.bf16.vlgmr.msra.gmra.mxu0 %vm358_vm2, %v1828_v1  ;;  %1832 = vmatprep.subr.msk.bf16.mxu1 %vm362_vm1, %v1474_v6 }
  0xe6   : > { %1499 = vmatpush1.bf16.msra.mxu1 %v1479_v9 }
  0xe7   : > { %v403_v8 = vpop.f32.mrf.mxu0  ;;  %v462_v10 = vpop.f32.mrf.mxu1 }
  0xe8   : > { %v463_v11 = vadd.f32 %v462_v10, %v403_v8 }
  0xe9   : > { %1833 = vmatmul.mubr.msk.bf16.vlgmr.msra.gmra.mxu1 %vm358_vm2, %v1831_v7  ;;  %v405_v12 = vpop.f32.mrf.mxu0  ;;  %v464_v13 = vpop.f32.mrf.mxu1 }
  0xea   : > { %v465_v14 = vadd.f32 %v464_v13, %v405_v12 }
  0xeb   : > { %v407_v15 = vpop.f32.mrf.mxu0  ;;  %v466_v16 = vpop.f32.mrf.mxu1 }
  0xed   : > { %v408_v17 = vpop.f32.mrf.mxu0  ;;  %v467_v18 = vpop.f32.mrf.mxu1 }
 0x15d   : > { %v531_v19 = vpop.f32.mrf.mxu0 }
 0x15e   : > { %v538_v33 = vadd.f32 %v531_v19, %v463_v11 }
 0x15f   : > { %v533_v20 = vpop.f32.mrf.mxu0 }
 0x160   : > { %v539_v35 = vadd.f32 %v533_v20, %v465_v14 }
 0x161   : > { %v535_v21 = vpop.f32.mrf.mxu0  ;;  %v594_v22 = vpop.f32.mrf.mxu1 }
 0x162   : > { %v601_v37 = vadd.f32 %v594_v22, %v538_v33 }
 0x163   : > { %v536_v24 = vpop.f32.mrf.mxu0  ;;  %v596_v25 = vpop.f32.mrf.mxu1 }
 0x164   : > { %v602_v39 = vadd.f32 %v596_v25, %v539_v35 }
 0x165   : > { %v598_v27 = vpop.f32.mrf.mxu1 }
 0x167   : > { %v599_v28 = vpop.f32.mrf.mxu1 }
 0x169   : > { %v664_v29 = vpop.f32.mrf.mxu0 }
 0x16a   : > { %v671_v41 = vadd.f32 %v664_v29, %v601_v37 }
 0x16b   : > { %v666_v30 = vpop.f32.mrf.mxu0 }
 0x16c   : > { %v672_v44 = vadd.f32 %v666_v30, %v602_v39 }
 0x16d   : > { %v668_v31 = vpop.f32.mrf.mxu0  ;;  %v727_v23 = vpop.f32.mrf.mxu1 }
 0x16e   : > { %v734_v47 = vadd.f32 %v727_v23, %v671_v41 }
 0x16f   : > { %v669_v26 = vpop.f32.mrf.mxu0  ;;  %v729_v32 = vpop.f32.mrf.mxu1 }
 0x170   : > { %v735_v51 = vadd.f32 %v729_v32, %v672_v44 }
 0x171   : > { %v731_v34 = vpop.f32.mrf.mxu1 }
 0x173   : > { %v732_v36 = vpop.f32.mrf.mxu1 }
 0x175   : > { %v790_v38 = vpop.f32.mrf.mxu0 }
 0x176   : > { %v797_v52 = vadd.f32 %v790_v38, %v734_v47 }
 0x177   : > { %v792_v40 = vpop.f32.mrf.mxu0 }
 0x178   : > { %v798_v55 = vadd.f32 %v792_v40, %v735_v51 }
 0x179   : > { %v852_v42 = vpop.f32.mrf.mxu1  ;;  %v794_v43 = vpop.f32.mrf.mxu0 }
 0x17a   : > { %v859_v56 = vadd.f32 %v852_v42, %v797_v52 }
 0x17b   : > { %v854_v45 = vpop.f32.mrf.mxu1  ;;  %v795_v46 = vpop.f32.mrf.mxu0 }
 0x17c   : > { %v860_v59 = vadd.f32 %v854_v45, %v798_v55 }
 0x17d   : > { %v856_v49 = vpop.f32.mrf.mxu1 }
 0x17f   : > { %v857_v54 = vpop.f32.mrf.mxu1 }
 0x181   : > { %v915_v58 = vpop.f32.mrf.mxu0 }
 0x182   : > { %v922_v60 = vadd.f32 %v915_v58, %v859_v56  ;;  %v1018_v61 = vpop.f32.mrf.mxu1 }
 0x183   : > { %v917_v63 = vpop.f32.mrf.mxu0 }
 0x184   : > { %v923_v0 = vadd.f32 %v917_v63, %v860_v59  ;;  %v1020_v1 = vpop.f32.mrf.mxu1  ;;  %v935_v2 = vmul.f32 %v2239_v57, %v922_v60 }
 0x185   : > { %v919_v3 = vpop.f32.mrf.mxu0 }
 0x186   : > { %v1847_v4 = vpack.c.bf16 %v923_v0, %v922_v60  ;;  %v1022_v6 = vpop.f32.mrf.mxu1  ;;  %v936_v5 = vmul.f32 %v2241_v62, %v923_v0  ;;  %v941_v10 = vmul.f32 %v935_v2, %v922_v60 }
 0x187   : > { %v920_v9 = vpop.f32.mrf.mxu0 }
 0x188   : > { %959 = vst [vmem:[#allocation2] sm:$0xff] %v1847_v4  ;;  %v1023_v7 = vpop.f32.mrf.mxu1  ;;  %v937_v8 = vadd.f32 %v936_v5, %v935_v2  ;;  %v942_v11 = vmul.f32 %v936_v5, %v923_v0  ;;  %v1552_v9 = vld [vmem:[#allocation3] sm:$0xff] }
 0x189   : > { %v1077_v12 = vpop.f32.mrf.mxu0 }
 0x18a   : > { %938 = vadd.xlane.f32.xlu0 %v937_v8  ;;  %v1144_v13 = vpop.f32.mrf.mxu1  ;;  %v943_v14 = vadd.f32 %v942_v11, %v941_v10  ;;  %v1078_v30 = vadd.f32 %v1077_v12, %v1018_v61  ;;  %v1556_v12 = vld [vmem:[#allocation4] sm:$0xff] }
 0x18b   : > { %v1079_v15 = vpop.f32.mrf.mxu0 }
 0x18c   : > { %944 = vadd.xlane.f32.xlu1 %v943_v14  ;;  %v1146_v16 = vpop.f32.mrf.mxu1  ;;  %v1080_v26 = vadd.f32 %v1079_v15, %v1020_v1  ;;  %v1151_v33 = vadd.f32 %v1144_v13, %v1078_v30 }
 0x18d   : > { %v1081_v17 = vpop.f32.mrf.mxu0 }
 0x18e   : > { %v1148_v18 = vpop.f32.mrf.mxu1  ;;  %v1152_v36 = vadd.f32 %v1146_v16, %v1080_v26 }
 0x18f   : > { %v1082_v19 = vpop.f32.mrf.mxu0 }
 0x190   : > { %v1149_v20 = vpop.f32.mrf.mxu1 }
 0x191   : > { %v1205_v21 = vpop.f32.mrf.mxu0 }
 0x192   : > { %v1274_v22 = vpop.f32.mrf.mxu1  ;;  %v1212_v37 = vadd.f32 %v1205_v21, %v1151_v33 }
 0x193   : > { %v1207_v24 = vpop.f32.mrf.mxu0 }
 0x194   : > { %v1276_v25 = vpop.f32.mrf.mxu1  ;;  %v1213_v40 = vadd.f32 %v1207_v24, %v1152_v36  ;;  %v1281_v42 = vadd.f32 %v1274_v22, %v1212_v37 }
 0x195   : > { %v1209_v27 = vpop.f32.mrf.mxu0 }
 0x196   : > { %v1278_v28 = vpop.f32.mrf.mxu1  ;;  %v1282_v44 = vadd.f32 %v1276_v25, %v1213_v40 }
 0x197   : > { %v1210_v29 = vpop.f32.mrf.mxu0 }
 0x198   : > { %v1279_v31 = vpop.f32.mrf.mxu1 }
 0x199   : > { %v1335_v23 = vpop.f32.mrf.mxu0 }
 0x19a   : > { %v1342_v45 = vadd.f32 %v1335_v23, %v1281_v42 }
 0x19b   : > { %v1337_v32 = vpop.f32.mrf.mxu0 }
 0x19c   : > { %v1343_v47 = vadd.f32 %v1337_v32, %v1282_v44 }
 0x19d   : > { %v1396_v34 = vpop.f32.mrf.mxu1  ;;  %v1339_v35 = vpop.f32.mrf.mxu0 }
 0x19e   : > { %v1403_v48 = vadd.f32 %v1396_v34, %v1342_v45 }
 0x19f   : > { %v1398_v38 = vpop.f32.mrf.mxu1  ;;  %v1340_v39 = vpop.f32.mrf.mxu0 }
 0x1a0   : > { %v1404_v50 = vadd.f32 %v1398_v38, %v1343_v47 }
 0x1a1   : > { %v1400_v41 = vpop.f32.mrf.mxu1 }
 0x1a3   : > { %v1401_v43 = vpop.f32.mrf.mxu1 }
 0x1a5   : > { %v1457_v46 = vpop.f32.mrf.mxu0 }
 0x1a6   : > { %v1464_v51 = vadd.f32 %v1457_v46, %v1403_v48 }
 0x1a7   : > { %v1459_v49 = vpop.f32.mrf.mxu0 }
 0x1a8   : > { %v1465_v54 = vadd.f32 %v1459_v49, %v1404_v50 }
 0x1a9   : > { %v1518_v52 = vpop.f32.mrf.mxu1  ;;  %v1461_v53 = vpop.f32.mrf.mxu0 }
 0x1aa   : > { %v1525_v55 = vadd.f32 %v1518_v52, %v1464_v51 }
 0x1ab   : > { %v1520_v56 = vpop.f32.mrf.mxu1  ;;  %v1462_v58 = vpop.f32.mrf.mxu0 }
 0x1ac   : > { %v1526_v59 = vadd.f32 %v1520_v56, %v1465_v54  ;;  %v1527_v63 = vmul.f32 %v1525_v55, %v2239_v57 }
 0x1ad   : > { %v1522_v60 = vpop.f32.mrf.mxu1 }
 0x1ae   : > { %v1848_v61 = vpack.c.bf16 %v1526_v59, %v1525_v55  ;;  %v1528_v0 = vmul.f32 %v1526_v59, %v2241_v62  ;;  %v1533_v4 = vmul.f32 %v1527_v63, %v1525_v55 }
 0x1af   : > { %v1523_v1 = vpop.f32.mrf.mxu1 }
 0x1b0   : > { %1835 = vst [vmem:[#allocation2 + $0x8] sm:$0xff] %v1848_v61  ;;  %v1529_v2 = vadd.f32 %v1528_v0, %v1527_v63  ;;  %v1534_v3 = vmul.f32 %v1528_v0, %v1526_v59 }
 0x1b2   : > { %1530 = vadd.xlane.f32.xlu0 %v1529_v2  ;;  %v1535_v6 = vadd.f32 %v1534_v3, %v1533_v4 }
 0x1b6   : > { %1536 = vadd.xlane.f32.xlu0 %v1535_v6 }
 0x213   : > { %v939_v5 = vpop.xlane.xlu0 %938 }
 0x215   : > { %v945_v11 = vpop.xlane.xlu1 %944 }
 0x23b   : > { %v1531_v7 = vpop.xlane.xlu0 %1530 }
 0x23c   : > { %v1532_v8 = vadd.f32 %v1531_v7, %v939_v5 }
 0x23e   : > { %v1553_v10 = vadd.f32 %v1552_v9, %v1532_v8 }
 0x23f   : > { %v1537_v13 = vpop.xlane.xlu0 %1536 }
 0x240   : > { %1555 = vst.msk [vmem:[#allocation3] sm:$0xff] %vm1554_vm8, %v1553_v10  ;;  %v1538_v57 = vadd.f32 %v1537_v13, %v945_v11 }
 0x242   : > { %v1557_v62 = vadd.f32 %v1556_v12, %v1538_v57 }
 0x244   : > { %1558 = vst.msk [vmem:[#allocation4] sm:$0xff] %vm1554_vm8, %v1557_v62 }
 0x245 PF: > { %p1836_p6 = scmp.ne.s32.totalorder %s1906_s21, 1 }
 0x246   : > { %s1925_s29 = smov (!%p1836_p6), 19  }
 0x247   : > { %1562 = sbr.rel (%p1836_p6) target bundleno = 880 (0x370), region = 56 }
 0x24c   : > { %v1566_v14 = vld [vmem:[#allocation3] sm:$0xff]  ;;  %v1568_v15 = vld [vmem:[#allocation4] sm:$0xff]  ;;  %v1924_v16 = vmov 0   ;;  %v1574_v22 = vld [vmem:[%s2293_s3] sm:$0xff]  ;;  %vm1576_vm9 = vcmask 7168   ;;  %v1613_v23 = vlaneseq  ;;  %vm1639_vm10 = vcmask 1043608  }
 0x24d   : > { %1889 = vset.pattern.permute.xlu0 %v1924_v16  ;;  %1585 = vst [vmem:[%s2296_s6] sm:$0xff] %v1924_v16  ;;  %1586 = vst [vmem:[%s2296_s6 + $0x8] sm:$0xf] %v1924_v16  ;;  %v1567_v17 = vmul.f32 0.0078125, %v1566_v14  ;;  %v1569_v18 = vmul.f32 0.0078125, %v1568_v15  ;;  %v1578_v27 = vld [vmem:[%s2294_s4] sm:$0xff]  ;;  %v1838_v32 = vld [vmem:[#allocation2 + $0x8] sm:$0xff] }
 0x24e   : > { %1587 = vst [vmem:[%s2296_s6 + $0xc] sm:$0xff] %v1924_v16  ;;  %1588 = vst [vmem:[%s2296_s6 + $0x14] sm:$0xf] %v1924_v16  ;;  %v1593_v26 = vld [vmem:[#allocation2] sm:$0xff]  ;;  %v1614_v33 = vshrl.u32 %v1613_v23, 7  ;;  %v1650_v36 = vunpack.c.l.bf16 %v1838_v32  ;;  %v1651_v37 = vunpack.c.h.bf16 %v1838_v32  ;;  %vm1640_vm11 = vcmask 1047556  }
 0x24f   : > { %v1570_v19 = vmul.f32 %v1567_v17, %v1567_v17  ;;  %v1594_v34 = vunpack.c.l.bf16 %v1593_v26  ;;  %v1595_v35 = vunpack.c.h.bf16 %v1593_v26  ;;  %v1584_v41 = vld [vmem:[%s2295_s5] sm:$0x3]  ;;  %vm1635_vm12 = vcmask 154624   ;;  %vm1641_vm14 = vmor %vm1640_vm11, %vm1639_vm10 }
 0x250   : > { %v1615_v39 = vsub.s32 0, %v1614_v33  ;;  %v1619_v40 = vsub.s32 1, %v1614_v33  ;;  %vm1643_vm13 = vcmask 150528  }
 0x251   : > { %v1571_v20 = vsub.f32 %v1569_v18, %v1570_v19 }
 0x252   : > { %v1616_v47 = vrot.slane %v1584_v41, %v1615_v39  ;;  %v1620_v48 = vrot.slane %v1584_v41, %v1619_v40 }
 0x253   : > { %v1572_v21 = vadd.f32 1e-05, %v1571_v20 }
 0x255   : > { %1890 = vrsqrt.f32 %v1572_v21 }
 0x262   : > { %v1891_v24 = vpop.eup %1890 }
 0x263   : > { %v1575_v25 = vmul.f32 %v1891_v24, %v1574_v22 }
 0x265   : > { %1577 = vst.msk [vmem:[#allocation3] sm:$0xff] %vm1576_vm9, %v1575_v25  ;;  %v1579_v28 = vmul.f32 %v1575_v25, %v1567_v17 }
 0x267   : > { %v1580_v29 = vsub.f32 %v1578_v27, %v1579_v28 }
 0x269   : > { %1581 = vst.msk [vmem:[#allocation4] sm:$0xff] %vm1576_vm9, %v1580_v29 }
 0x26c   : > { %v1582_v30 = vld [vmem:[#allocation3] sm:$0xff] }
 0x26d   : > { %1598 = vperm.xlu0 %1889, %v1582_v30  }
 0x270   : > { %v1583_v31 = vld [vmem:[#allocation4] sm:$0xff] }
 0x271   : > { %1605 = vperm.xlu0 %1889, %v1583_v31  }
 0x2e8   : > { %v1599_v38 = vpop.permute.xlu0 %1598 }
 0x2e9   : > { %v1601_v42 = vmul.f32 %v1599_v38, %v1594_v34  ;;  %v1602_v43 = vmul.f32 %v1599_v38, %v1595_v35  ;;  %v1652_v44 = vmul.f32 %v1650_v36, %v1599_v38  ;;  %v1653_v45 = vmul.f32 %v1651_v37, %v1599_v38 }
 0x2ec   : > { %v1606_v46 = vpop.permute.xlu0 %1605 }
 0x2ed   : > { %v1608_v49 = vadd.f32 %v1606_v46, %v1601_v42  ;;  %v1609_v50 = vadd.f32 %v1606_v46, %v1602_v43  ;;  %v1654_v51 = vadd.f32 %v1652_v44, %v1606_v46  ;;  %v1655_v52 = vadd.f32 %v1653_v45, %v1606_v46 }
 0x2ef   : > { %v1610_v53 = vmax.f32 %v1608_v49, 0.0  ;;  %v1611_v54 = vmax.f32 %v1609_v50, 0.0  ;;  %v1656_v55 = vmax.f32 %v1654_v51, 0.0  ;;  %v1657_v56 = vmax.f32 %v1655_v52, 0.0 }
 0x2f1   : > { %v1623_v58 = vmul.f32 %v1616_v47, %v1610_v53  ;;  %v1624_v59 = vmul.f32 %v1620_v48, %v1611_v54  ;;  %v1658_v61 = vmul.f32 %v1656_v55, %v1616_v47  ;;  %v1659_v63 = vmul.f32 %v1657_v56, %v1620_v48 }
 0x2f3   : > { %v1849_v60 = vpack.c.bf16 %v1624_v59, %v1623_v58  ;;  %v1850_v0 = vpack.c.bf16 %v1659_v63, %v1658_v61 }
 0x2f5   : > { %1632 = vrot.lane.b32.xlu1 %v1849_v60, %s1925_s29 }
 0x2f9   : > { %1667 = vrot.lane.b32.xlu1 %v1850_v0, %s1925_s29 }
 0x367   : > { %v1633_v1 = vpop.permute.xlu1 %1632 }
 0x368   : > { %v1634_v2 = vrot.slane %v1633_v1, 4 }
 0x36a   : > { %v1636_v3 = vsel %vm1635_vm12, %v1634_v2, %v1633_v1  ;;  %1644 = vst.msk [vmem:[%s2296_s6 + $0x8] sm:$0xf] %vm1643_vm13, %v1634_v2 }
 0x36b   : > { %1642 = vst.msk [vmem:[%s2296_s6] sm:$0xff] %vm1641_vm14, %v1636_v3  ;;  %v1668_v4 = vpop.permute.xlu1 %1667 }
 0x36c   : > { %v1669_v6 = vrot.slane %v1668_v4, 4 }
 0x36e   : > { %v1670_v5 = vsel %vm1635_vm12, %v1669_v6, %v1668_v4  ;;  %1841 = vst.msk [vmem:[%s2296_s6 + $0x14] sm:$0xf] %vm1643_vm13, %v1669_v6 }
 0x36f   : > { %1840 = vst.msk [vmem:[%s2296_s6 + $0xc] sm:$0xff] %vm1641_vm14, %v1670_v5 }
 0x370 PF: > { %s16_s23 = sadd.s32 1, %s1914_s23   ;;  %s2297_s21 = smov %s1910_s22 }
 0x371   : > { %p13_p7 = scmp.ge.s32.totalorder %s16_s23, 4   ;;  %s2298_s22 = smov %s2300_s24 }
 0x373   :  { %15 = sbr.rel (!%p13_p7) target bundleno = 2 (0x2), region = 108 }

// kernel: conv2x_forward.3
= control target key start
LH: loop header
LB: loop body
LE: loop exit
PB: predicated region body
PF: predicated region fallthrough
CT: control target
= control target key end

     0   :  { %s3060_s21 = smov 0   ;;  %s3062_s22 = smov 0   ;;  %s3694_s0 = inlined_call_operand.vmem [shape: bf16[2,8,384], index: 0, kind: input, shape index: {}]   ;;  %s3695_s1 = inlined_call_operand.vmem [shape: bf16[2,8,384], index: 1, kind: input, shape index: {}]   ;;  %s3696_s2 = inlined_call_operand.vmem [shape: bf16[18,8,8], index: 2, kind: input, shape index: {}]   ;;  %s3697_s3 = inlined_call_operand.vmem [shape: f32[8,1], index: 3, kind: input, shape index: {}]   ;;  %s3698_s4 = inlined_call_operand.vmem [shape: f32[8,1], index: 4, kind: input, shape index: {}]   ;;  %s3699_s5 = inlined_call_operand.vmem [shape: f32[1,256], index: 5, kind: input, shape index: {}]   ;;  %s3700_s6 = inlined_call_operand.vmem [shape: f32[2,8,256], index: 6, kind: output, shape index: {}]  }
   0x1   :  { %s3064_s23 = smov 0  }
   0x2 LB: > { %s28_s24 = sadd.s32 1, %s3008_s22  ;;  %p2803_p0 = scmp.ge.s32.totalorder %s3012_s23, 1  ;;  %s3012_s23 = sphi %s3064_s23, %s16_s23   ;;  %s3008_s22 = sphi %s3062_s22, %s3702_s22   ;;  %s3004_s21 = sphi %s3060_s21, %s3701_s21  }
   0x3   : > { %p30_p1 = scmp.ge.s32.totalorder %s28_s24, 2  ;;  %p256_p2 = scmp.lt.s32.totalorder %s3012_s23, 3 }
   0x5   : > { %s3704_s24 = smov (%p30_p1, %s28_s24), 0  ;;  %p257_p3 = pnand %p2803_p0, %p256_p2 }
   0x6   : > { %p331_p4 = scmp.eq.s32.totalorder (!%p257_p3), %s3004_s21, 0 }
   0x7   : > { %260 = sbr.rel (%p257_p3) target bundleno = 859 (0x35b), region = 44 }
   0xc   : > { %336 = sbr.rel (!%p331_p4) target bundleno = 17 (0x11), region = 48  ;;  %vm337_vm0 = vcmask (%p331_p4), 7168   ;;  %v3014_v0 = vmov (%p331_p4), 0.0  }
   0xd   : > { %338 = vst.msk [vmem:[#allocation3] sm:$0xff] (%p331_p4), %vm337_vm0, %v3014_v0  ;;  %339 = vst.msk [vmem:[#allocation4] sm:$0xff] (%p331_p4), %vm337_vm0, %v3014_v0 }
  0x11 PF: > { %p2805_p5 = scmp.ne.s32.totalorder %s3004_s21, 0 }
  0x12   : > { %s3015_s7 = smov (!%p2805_p5), 127   ;;  %s3017_s14 = smov (!%p2805_p5), 126  }
  0x13   : > { %342 = sbr.rel (%p2805_p5) target bundleno = 683 (0x2ab), region = 52  ;;  %s3018_s15 = smov (!%p2805_p5), 110  }
  0x14   : > { %s3019_s16 = smov (!%p2805_p5), 109   ;;  %s3020_s17 = smov (!%p2805_p5), 108  }
  0x15   : > { %s3021_s18 = smov (!%p2805_p5), 92   ;;  %s3022_s19 = smov (!%p2805_p5), 91  }
  0x16   : > { %s3023_s20 = smov (!%p2805_p5), 90  }
  0x18   : > { %v3085_v1 = vld [vmem:[%s3694_s0 + $0x8] ss:$0 sps:$4 sm:$0xff]   ;;  %v344_v2 = vld [vmem:[%s3694_s0] sm:$0xff]  ;;  %vm360_vm1 = vcmask 1043456   ;;  %vm356_vm2 = vcmask 64512   ;;  %v3016_v12 = vmov 0  }
  0x19   : > { %v3090_v3 = vcombine.low %v344_v2, %v344_v2  ;;  %v346_v4 = vld [vmem:[%s3695_s1] sm:$0xff]  ;;  %472 = vrot.lane.b32.xlu1 %v3085_v1, %s3015_s7  ;;  %v3101_v6 = vcombine.high %v344_v2, %v344_v2  ;;  %v3118_v10 = vld [vmem:[%s3695_s1 + $0x8] ss:$0 sps:$4 sm:$0xff]   ;;  %399 = vmatprep.mubr.bf16.mxu0 %v3016_v12  ;;  %v2865_v14 = vld [vmem:[%s3694_s0 + $0xc] sm:$0xff]  ;;  %vm474_vm3 = vcmask 1039360   ;;  %vm602_vm4 = vcmask 1031168  }
  0x1a   : > { %v3097_v5 = vcombine.low %v346_v4, %v346_v4  ;;  %v3103_v7 = vcombine.high %v346_v4, %v346_v4  ;;  %v2806_v11 = vld [vmem:[%s3696_s2 + $0x4] sm:$0xf]  ;;  %454 = vmatprep.mubr.bf16.mxu1 %v3016_v12  ;;  %v348_v13 = vld [vmem:[%s3696_s2] sm:$0xf]  ;;  %v3223_v15 = vcombine.high %v2865_v14, %v2865_v14  ;;  %v3227_v16 = vcombine.low %v2865_v14, %v2865_v14  ;;  %v2867_v17 = vld [vmem:[%s3695_s1 + $0xc] sm:$0xff] }
  0x1b   : > { %468 = vrot.lane.b32.xlu0 %v3090_v3, %s3015_s7  ;;  %2813 = vmatprep.subr.msk.bf16.mxu1 %vm360_vm1, %v3101_v6  ;;  %v417_v9 = vsel %vm360_vm1, %v3090_v3, 0  ;;  %v3234_v18 = vcombine.low %v2867_v17, %v2867_v17  ;;  %v3241_v19 = vld [vmem:[%s3694_s0 + $0x14] ss:$0 sps:$4 sm:$0xff]   ;;  %v3252_v21 = vcombine.high %v2867_v17, %v2867_v17  ;;  %v2815_v31 = vld [vmem:[%s3696_s2 + $0x8] sm:$0xf]  ;;  %vm727_vm5 = vcmask 900096  }
  0x1c   : > { %2809 = vmatprep.subr.msk.bf16.mxu0 %vm360_vm1, %v3103_v7  ;;  %v362_v8 = vsel %vm360_vm1, %v3097_v5, 0  ;;  %437 = vmatpush1.bf16.msra.mxu1 %v417_v9  ;;  %v3248_v20 = vld [vmem:[%s3695_s1 + $0x14] ss:$0 sps:$4 sm:$0xff]   ;;  %v2819_v36 = vld [vmem:[%s3696_s2 + $0xc] sm:$0xf]  ;;  %vm852_vm6 = vcmask 891904  }
  0x1d   : > { %534 = vrot.lane.b32.xlu1 %v3097_v5, %s3015_s7  ;;  %382 = vmatpush1.bf16.msra.mxu0 %v362_v8  ;;  %v2823_v45 = vld [vmem:[%s3696_s2 + $0x10] sm:$0xf]  ;;  %v2826_v50 = vld [vmem:[%s3696_s2 + $0x14] sm:$0xf]  ;;  %v2829_v59 = vld [vmem:[%s3696_s2 + $0x18] sm:$0xf] }
  0x1e   : > { %v2832_v0 = vld [vmem:[%s3696_s2 + $0x1c] sm:$0xf]  ;;  %v2835_v9 = vld [vmem:[%s3696_s2 + $0x20] sm:$0xf]  ;;  %v2838_v17 = vld [vmem:[%s3696_s2 + $0x24] sm:$0xf] }
  0x1f   : > { %470 = vrot.lane.b32.xlu0 %v3101_v6, %s3015_s7  ;;  %2814 = vmatmul.mubr.msk.bf16.vlgmr.msra.gmra.mxu1 %vm356_vm2, %v348_v13  ;;  %vm977_vm7 = vcmask 883712   ;;  %vm1102_vm8 = vcmask 752640   ;;  %vm1227_vm9 = vcmask 744448   ;;  %vm1352_vm10 = vcmask 736256  }
  0x20   : > { %2810 = vmatmul.mubr.msk.bf16.vlgmr.msra.gmra.mxu0 %vm356_vm2, %v2806_v11  ;;  %583 = vmatprep.mubr.bf16.mxu1 %v3016_v12  ;;  %vm2618_vm11 = vcmask 7168  }
  0x21   : > { %538 = vrot.lane.b32.xlu1 %v3118_v10, %s3015_s7  ;;  %518 = vmatprep.mubr.bf16.mxu0 %v3016_v12 }
  0x23   : > { %536 = vrot.lane.b32.xlu0 %v3103_v7, %s3015_s7 }
  0x25   : > { %598 = vrot.lane.b32.xlu1 %v3101_v6, %s3017_s14 }
  0x27   : > { %596 = vrot.lane.b32.xlu0 %v3090_v3, %s3017_s14 }
  0x29   : > { %659 = vrot.lane.b32.xlu1 %v3097_v5, %s3017_s14 }
  0x2b   : > { %600 = vrot.lane.b32.xlu0 %v3085_v1, %s3017_s14 }
  0x2d   : > { %663 = vrot.lane.b32.xlu1 %v3118_v10, %s3017_s14 }
  0x2f   : > { %661 = vrot.lane.b32.xlu0 %v3103_v7, %s3017_s14 }
  0x31   : > { %723 = vrot.lane.b32.xlu1 %v3101_v6, %s3018_s15 }
  0x33   : > { %721 = vrot.lane.b32.xlu0 %v3090_v3, %s3018_s15 }
  0x35   : > { %784 = vrot.lane.b32.xlu1 %v3097_v5, %s3018_s15 }
  0x37   : > { %725 = vrot.lane.b32.xlu0 %v3085_v1, %s3018_s15 }
  0x39   : > { %788 = vrot.lane.b32.xlu1 %v3118_v10, %s3018_s15 }
  0x3b   : > { %786 = vrot.lane.b32.xlu0 %v3103_v7, %s3018_s15 }
  0x3d   : > { %848 = vrot.lane.b32.xlu1 %v3101_v6, %s3019_s16 }
  0x3f   : > { %846 = vrot.lane.b32.xlu0 %v3090_v3, %s3019_s16 }
  0x41   : > { %909 = vrot.lane.b32.xlu1 %v3097_v5, %s3019_s16 }
  0x43   : > { %850 = vrot.lane.b32.xlu0 %v3085_v1, %s3019_s16 }
  0x45   : > { %913 = vrot.lane.b32.xlu1 %v3118_v10, %s3019_s16 }
  0x47   : > { %911 = vrot.lane.b32.xlu0 %v3103_v7, %s3019_s16 }
  0x49   : > { %973 = vrot.lane.b32.xlu1 %v3101_v6, %s3020_s17 }
  0x4b   : > { %971 = vrot.lane.b32.xlu0 %v3090_v3, %s3020_s17 }
  0x4d   : > { %1034 = vrot.lane.b32.xlu1 %v3097_v5, %s3020_s17 }
  0x4f   : > { %975 = vrot.lane.b32.xlu0 %v3085_v1, %s3020_s17 }
  0x51   : > { %1038 = vrot.lane.b32.xlu1 %v3118_v10, %s3020_s17 }
  0x53   : > { %1036 = vrot.lane.b32.xlu0 %v3103_v7, %s3020_s17 }
  0x55   : > { %1098 = vrot.lane.b32.xlu1 %v3101_v6, %s3021_s18 }
  0x57   : > { %1096 = vrot.lane.b32.xlu0 %v3090_v3, %s3021_s18 }
  0x59   : > { %1159 = vrot.lane.b32.xlu1 %v3097_v5, %s3021_s18 }
  0x5b   : > { %1100 = vrot.lane.b32.xlu0 %v3085_v1, %s3021_s18 }
  0x5d   : > { %1163 = vrot.lane.b32.xlu1 %v3118_v10, %s3021_s18 }
  0x5f   : > { %1161 = vrot.lane.b32.xlu0 %v3103_v7, %s3021_s18 }
  0x61   : > { %1223 = vrot.lane.b32.xlu1 %v3101_v6, %s3022_s19 }
  0x63   : > { %1221 = vrot.lane.b32.xlu0 %v3090_v3, %s3022_s19 }
  0x65   : > { %1284 = vrot.lane.b32.xlu1 %v3097_v5, %s3022_s19 }
  0x67   : > { %1225 = vrot.lane.b32.xlu0 %v3085_v1, %s3022_s19 }
  0x69   : > { %1288 = vrot.lane.b32.xlu1 %v3118_v10, %s3022_s19 }
  0x6b   : > { %1286 = vrot.lane.b32.xlu0 %v3103_v7, %s3022_s19 }
  0x6d   : > { %1348 = vrot.lane.b32.xlu1 %v3101_v6, %s3023_s20 }
  0x6f   : > { %1346 = vrot.lane.b32.xlu0 %v3090_v3, %s3023_s20 }
  0x71   : > { %1409 = vrot.lane.b32.xlu1 %v3097_v5, %s3023_s20 }
  0x73   : > { %1350 = vrot.lane.b32.xlu0 %v3085_v1, %s3023_s20 }
  0x75   : > { %1413 = vrot.lane.b32.xlu1 %v3118_v10, %s3023_s20 }
  0x77   : > { %1411 = vrot.lane.b32.xlu0 %v3103_v7, %s3023_s20 }
  0x79   : > { %1622 = vrot.lane.b32.xlu1 %v3223_v15, %s3015_s7 }
  0x7b   : > { %1620 = vrot.lane.b32.xlu0 %v3227_v16, %s3015_s7 }
  0x7d   : > { %1684 = vrot.lane.b32.xlu1 %v3234_v18, %s3015_s7 }
  0x7f   : > { %1624 = vrot.lane.b32.xlu0 %v3241_v19, %s3015_s7 }
  0x81   : > { %1688 = vrot.lane.b32.xlu1 %v3248_v20, %s3015_s7 }
  0x83   : > { %1686 = vrot.lane.b32.xlu0 %v3252_v21, %s3015_s7 }
  0x85   : > { %1747 = vrot.lane.b32.xlu1 %v3223_v15, %s3017_s14 }
  0x87   : > { %1745 = vrot.lane.b32.xlu0 %v3227_v16, %s3017_s14 }
  0x89   : > { %1806 = vrot.lane.b32.xlu1 %v3234_v18, %s3017_s14 }
  0x8b   : > { %1749 = vrot.lane.b32.xlu0 %v3241_v19, %s3017_s14  ;;  %v473_v22 = vpop.permute.xlu1 %472 }
  0x8d   : > { %v469_v23 = vpop.permute.xlu0 %468  ;;  %1810 = vrot.lane.b32.xlu1 %v3248_v20, %s3017_s14 }
  0x8f   : > { %1808 = vrot.lane.b32.xlu0 %v3252_v21, %s3017_s14  ;;  %v535_v24 = vpop.permute.xlu1 %534 }
  0x91   : > { %v471_v25 = vpop.permute.xlu0 %470  ;;  %1869 = vrot.lane.b32.xlu1 %v3223_v15, %s3018_s15 }
  0x92   : > { %v475_v26 = vsel %vm474_vm3, %v469_v23, %v471_v25  ;;  %v476_v27 = vsel %vm474_vm3, %v471_v25, %v473_v22 }
  0x93   : > { %1867 = vrot.lane.b32.xlu0 %v3227_v16, %s3018_s15  ;;  %2817 = vmatprep.subr.msk.bf16.mxu0 %vm360_vm1, %v476_v27  ;;  %v481_v28 = vsel %vm360_vm1, %v475_v26, 0  ;;  %v539_v29 = vpop.permute.xlu1 %538 }
  0x94   : > { %501 = vmatpush1.bf16.msra.mxu0 %v481_v28 }
  0x95   : > { %v537_v30 = vpop.permute.xlu0 %536  ;;  %1928 = vrot.lane.b32.xlu1 %v3234_v18, %s3018_s15 }
  0x96   : > { %v540_v32 = vsel %vm474_vm3, %v535_v24, %v537_v30  ;;  %v541_v33 = vsel %vm474_vm3, %v537_v30, %v539_v29  ;;  %v2841_v30 = vld [vmem:[%s3696_s2 + $0x28] sm:$0xf] }
  0x97   : > { %v546_v34 = vsel %vm360_vm1, %v540_v32, 0  ;;  %1871 = vrot.lane.b32.xlu0 %v3241_v19, %s3018_s15  ;;  %2821 = vmatprep.subr.msk.bf16.mxu1 %vm360_vm1, %v541_v33  ;;  %v599_v35 = vpop.permute.xlu1 %598 }
  0x98   : > { %566 = vmatpush1.bf16.msra.mxu1 %v546_v34  ;;  %2818 = vmatmul.mubr.msk.bf16.vlgmr.msra.gmra.mxu0 %vm356_vm2, %v2815_v31 }
  0x99   : > { %v597_v37 = vpop.permute.xlu0 %596  ;;  %646 = vmatprep.mubr.bf16.mxu0 %v3016_v12  ;;  %1932 = vrot.lane.b32.xlu1 %v3248_v20, %s3018_s15 }
  0x9a   : > { %v603_v38 = vsel %vm602_vm4, %v597_v37, %v599_v35 }
  0x9b   : > { %1930 = vrot.lane.b32.xlu0 %v3252_v21, %s3018_s15  ;;  %2822 = vmatmul.mubr.msk.bf16.vlgmr.msra.gmra.mxu1 %vm356_vm2, %v2819_v36  ;;  %v660_v39 = vpop.permute.xlu1 %659  ;;  %v609_v42 = vsel %vm360_vm1, %v603_v38, 0 }
  0x9c   : > { %708 = vmatprep.mubr.bf16.mxu1 %v3016_v12 }
  0x9d   : > { %v601_v40 = vpop.permute.xlu0 %600  ;;  %1991 = vrot.lane.b32.xlu1 %v3223_v15, %s3019_s16 }
  0x9e   : > { %v604_v41 = vsel %vm602_vm4, %v599_v35, %v601_v40  ;;  %v2844_v35 = vld [vmem:[%s3696_s2 + $0x2c] sm:$0xf] }
  0x9f   : > { %1989 = vrot.lane.b32.xlu0 %v3227_v16, %s3019_s16  ;;  %2824 = vmatprep.subr.msk.bf16.mxu0 %vm360_vm1, %v604_v41  ;;  %v664_v43 = vpop.permute.xlu1 %663 }
  0xa0   : > { %629 = vmatpush1.bf16.msra.mxu0 %v609_v42 }
  0xa1   : > { %v662_v44 = vpop.permute.xlu0 %661  ;;  %2050 = vrot.lane.b32.xlu1 %v3234_v18, %s3019_s16 }
  0xa2   : > { %v665_v46 = vsel %vm602_vm4, %v660_v39, %v662_v44  ;;  %v666_v47 = vsel %vm602_vm4, %v662_v44, %v664_v43  ;;  %v2847_v44 = vld [vmem:[%s3696_s2 + $0x30] sm:$0xf] }
  0xa3   : > { %v671_v48 = vsel %vm360_vm1, %v665_v46, 0  ;;  %1993 = vrot.lane.b32.xlu0 %v3241_v19, %s3019_s16  ;;  %2827 = vmatprep.subr.msk.bf16.mxu1 %vm360_vm1, %v666_v47  ;;  %v724_v49 = vpop.permute.xlu1 %723 }
  0xa4   : > { %691 = vmatpush1.bf16.msra.mxu1 %v671_v48  ;;  %2825 = vmatmul.mubr.msk.bf16.vlgmr.msra.gmra.mxu0 %vm356_vm2, %v2823_v45 }
  0xa5   : > { %v722_v51 = vpop.permute.xlu0 %721  ;;  %771 = vmatprep.mubr.bf16.mxu0 %v3016_v12  ;;  %2054 = vrot.lane.b32.xlu1 %v3248_v20, %s3019_s16 }
  0xa6   : > { %v728_v52 = vsel %vm727_vm5, %v722_v51, %v724_v49 }
  0xa7   : > { %2052 = vrot.lane.b32.xlu0 %v3252_v21, %s3019_s16  ;;  %2828 = vmatmul.mubr.msk.bf16.vlgmr.msra.gmra.mxu1 %vm356_vm2, %v2826_v50  ;;  %v785_v53 = vpop.permute.xlu1 %784  ;;  %v734_v56 = vsel %vm360_vm1, %v728_v52, 0 }
  0xa8   : > { %833 = vmatprep.mubr.bf16.mxu1 %v3016_v12 }
  0xa9   : > { %v726_v54 = vpop.permute.xlu0 %725  ;;  %2113 = vrot.lane.b32.xlu1 %v3223_v15, %s3020_s17 }
  0xaa   : > { %v729_v55 = vsel %vm727_vm5, %v724_v49, %v726_v54  ;;  %v2850_v49 = vld [vmem:[%s3696_s2 + $0x34] sm:$0xf] }
  0xab   : > { %2111 = vrot.lane.b32.xlu0 %v3227_v16, %s3020_s17  ;;  %2830 = vmatprep.subr.msk.bf16.mxu0 %vm360_vm1, %v729_v55  ;;  %v789_v57 = vpop.permute.xlu1 %788 }
  0xac   : > { %754 = vmatpush1.bf16.msra.mxu0 %v734_v56 }
  0xad   : > { %v787_v58 = vpop.permute.xlu0 %786  ;;  %2172 = vrot.lane.b32.xlu1 %v3234_v18, %s3020_s17 }
  0xae   : > { %v790_v60 = vsel %vm727_vm5, %v785_v53, %v787_v58  ;;  %v791_v61 = vsel %vm727_vm5, %v787_v58, %v789_v57 }
  0xaf   : > { %v796_v62 = vsel %vm360_vm1, %v790_v60, 0  ;;  %2115 = vrot.lane.b32.xlu0 %v3241_v19, %s3020_s17  ;;  %2833 = vmatprep.subr.msk.bf16.mxu1 %vm360_vm1, %v791_v61  ;;  %v849_v63 = vpop.permute.xlu1 %848  ;;  %v2856_v61 = vld [vmem:[%s3696_s2 + $0x3c] sm:$0xf] }
  0xb0   : > { %816 = vmatpush1.bf16.msra.mxu1 %v796_v62  ;;  %2831 = vmatmul.mubr.msk.bf16.vlgmr.msra.gmra.mxu0 %vm356_vm2, %v2829_v59 }
  0xb1   : > { %v847_v1 = vpop.permute.xlu0 %846  ;;  %896 = vmatprep.mubr.bf16.mxu0 %v3016_v12  ;;  %2176 = vrot.lane.b32.xlu1 %v3248_v20, %s3020_s17 }
  0xb2   : > { %v853_v2 = vsel %vm852_vm6, %v847_v1, %v849_v63 }
  0xb3   : > { %2174 = vrot.lane.b32.xlu0 %v3252_v21, %s3020_s17  ;;  %2834 = vmatmul.mubr.msk.bf16.vlgmr.msra.gmra.mxu1 %vm356_vm2, %v2832_v0  ;;  %v910_v3 = vpop.permute.xlu1 %909  ;;  %v859_v6 = vsel %vm360_vm1, %v853_v2, 0 }
  0xb4   : > { %958 = vmatprep.mubr.bf16.mxu1 %v3016_v12 }
  0xb5   : > { %v851_v4 = vpop.permute.xlu0 %850  ;;  %2235 = vrot.lane.b32.xlu1 %v3223_v15, %s3021_s18 }
  0xb6   : > { %v854_v5 = vsel %vm852_vm6, %v849_v63, %v851_v4 }
  0xb7   : > { %2233 = vrot.lane.b32.xlu0 %v3227_v16, %s3021_s18  ;;  %2836 = vmatprep.subr.msk.bf16.mxu0 %vm360_vm1, %v854_v5  ;;  %v914_v7 = vpop.permute.xlu1 %913 }
  0xb8   : > { %879 = vmatpush1.bf16.msra.mxu0 %v859_v6 }
  0xb9   : > { %v912_v8 = vpop.permute.xlu0 %911  ;;  %2294 = vrot.lane.b32.xlu1 %v3234_v18, %s3021_s18 }
  0xba   : > { %v915_v10 = vsel %vm852_vm6, %v910_v3, %v912_v8  ;;  %v916_v11 = vsel %vm852_vm6, %v912_v8, %v914_v7 }
  0xbb   : > { %v921_v13 = vsel %vm360_vm1, %v915_v10, 0  ;;  %2237 = vrot.lane.b32.xlu0 %v3241_v19, %s3021_s18  ;;  %2839 = vmatprep.subr.msk.bf16.mxu1 %vm360_vm1, %v916_v11  ;;  %v974_v14 = vpop.permute.xlu1 %973 }
  0xbc   : > { %941 = vmatpush1.bf16.msra.mxu1 %v921_v13  ;;  %2837 = vmatmul.mubr.msk.bf16.vlgmr.msra.gmra.mxu0 %vm356_vm2, %v2835_v9 }
  0xbd   : > { %v972_v22 = vpop.permute.xlu0 %971  ;;  %1021 = vmatprep.mubr.bf16.mxu0 %v3016_v12  ;;  %2298 = vrot.lane.b32.xlu1 %v3248_v20, %s3021_s18 }
  0xbe   : > { %v978_v23 = vsel %vm977_vm7, %v972_v22, %v974_v14 }
  0xbf   : > { %2296 = vrot.lane.b32.xlu0 %v3252_v21, %s3021_s18  ;;  %2840 = vmatmul.mubr.msk.bf16.vlgmr.msra.gmra.mxu1 %vm356_vm2, %v2838_v17  ;;  %v1035_v24 = vpop.permute.xlu1 %1034  ;;  %v984_v27 = vsel %vm360_vm1, %v978_v23, 0  ;;  %v1515_v23 = vsel %vm360_vm1, %v3234_v18, 0 }
  0xc0   : > { %1083 = vmatprep.mubr.bf16.mxu1 %v3016_v12 }
  0xc1   : > { %v976_v25 = vpop.permute.xlu0 %975  ;;  %2357 = vrot.lane.b32.xlu1 %v3223_v15, %s3022_s19 }
  0xc2   : > { %v979_v26 = vsel %vm977_vm7, %v974_v14, %v976_v25  ;;  %v2859_v14 = vld [vmem:[%s3696_s2 + $0x40] sm:$0xf] }
  0xc3   : > { %2355 = vrot.lane.b32.xlu0 %v3227_v16, %s3022_s19  ;;  %2842 = vmatprep.subr.msk.bf16.mxu0 %vm360_vm1, %v979_v26  ;;  %v1039_v28 = vpop.permute.xlu1 %1038 }
  0xc4   : > { %1004 = vmatpush1.bf16.msra.mxu0 %v984_v27 }
  0xc5   : > { %v1037_v29 = vpop.permute.xlu0 %1036  ;;  %2416 = vrot.lane.b32.xlu1 %v3234_v18, %s3022_s19 }
  0xc6   : > { %v1040_v31 = vsel %vm977_vm7, %v1035_v24, %v1037_v29  ;;  %v1041_v32 = vsel %vm977_vm7, %v1037_v29, %v1039_v28 }
  0xc7   : > { %v1046_v33 = vsel %vm360_vm1, %v1040_v31, 0  ;;  %2359 = vrot.lane.b32.xlu0 %v3241_v19, %s3022_s19  ;;  %2845 = vmatprep.subr.msk.bf16.mxu1 %vm360_vm1, %v1041_v32  ;;  %v1099_v34 = vpop.permute.xlu1 %1098  ;;  %v2869_v32 = vld [vmem:[%s3696_s2 + $0x4] sm:$0xf] }
  0xc8   : > { %1066 = vmatpush1.bf16.msra.mxu1 %v1046_v33  ;;  %2843 = vmatmul.mubr.msk.bf16.vlgmr.msra.gmra.mxu0 %vm356_vm2, %v2841_v30 }
  0xc9   : > { %v1097_v36 = vpop.permute.xlu0 %1096  ;;  %1146 = vmatprep.mubr.bf16.mxu0 %v3016_v12  ;;  %2420 = vrot.lane.b32.xlu1 %v3248_v20, %s3022_s19 }
  0xca   : > { %v1103_v37 = vsel %vm1102_vm8, %v1097_v36, %v1099_v34 }
  0xcb   : > { %2418 = vrot.lane.b32.xlu0 %v3252_v21, %s3022_s19  ;;  %2846 = vmatmul.mubr.msk.bf16.vlgmr.msra.gmra.mxu1 %vm356_vm2, %v2844_v35  ;;  %v1160_v38 = vpop.permute.xlu1 %1159  ;;  %v1109_v41 = vsel %vm360_vm1, %v1103_v37, 0  ;;  %v1504_v35 = vld [vmem:[%s3696_s2] sm:$0xf] }
  0xcc   : > { %1208 = vmatprep.mubr.bf16.mxu1 %v3016_v12 }
  0xcd   : > { %v1101_v39 = vpop.permute.xlu0 %1100  ;;  %2479 = vrot.lane.b32.xlu1 %v3223_v15, %s3023_s20 }
  0xce   : > { %v1104_v40 = vsel %vm1102_vm8, %v1099_v34, %v1101_v39 }
  0xcf   : > { %2477 = vrot.lane.b32.xlu0 %v3227_v16, %s3023_s20  ;;  %2848 = vmatprep.subr.msk.bf16.mxu0 %vm360_vm1, %v1104_v40  ;;  %v1164_v42 = vpop.permute.xlu1 %1163 }
  0xd0   : > { %1129 = vmatpush1.bf16.msra.mxu0 %v1109_v41  ;;  %v2878_v41 = vld [vmem:[%s3696_s2 + $0x8] sm:$0xf] }
  0xd1   : > { %v1162_v43 = vpop.permute.xlu0 %1161  ;;  %2538 = vrot.lane.b32.xlu1 %v3234_v18, %s3023_s20  ;;  %v1570_v18 = vsel %vm360_vm1, %v3227_v16, 0 }
  0xd2   : > { %v1165_v45 = vsel %vm1102_vm8, %v1160_v38, %v1162_v43  ;;  %v1166_v46 = vsel %vm1102_vm8, %v1162_v43, %v1164_v42 }
  0xd3   : > { %v1171_v47 = vsel %vm360_vm1, %v1165_v45, 0  ;;  %2481 = vrot.lane.b32.xlu0 %v3241_v19, %s3023_s20  ;;  %2851 = vmatprep.subr.msk.bf16.mxu1 %vm360_vm1, %v1166_v46  ;;  %v1224_v48 = vpop.permute.xlu1 %1223  ;;  %v2882_v45 = vld [vmem:[%s3696_s2 + $0xc] sm:$0xf] }
  0xd4   : > { %1191 = vmatpush1.bf16.msra.mxu1 %v1171_v47  ;;  %2849 = vmatmul.mubr.msk.bf16.vlgmr.msra.gmra.mxu0 %vm356_vm2, %v2847_v44 }
  0xd5   : > { %v1222_v50 = vpop.permute.xlu0 %1221  ;;  %1271 = vmatprep.mubr.bf16.mxu0 %v3016_v12  ;;  %2542 = vrot.lane.b32.xlu1 %v3248_v20, %s3023_s20  ;;  %v2853_v20 = vld [vmem:[%s3696_s2 + $0x38] sm:$0xf] }
  0xd6   : > { %v1228_v19 = vsel %vm1227_vm9, %v1222_v50, %v1224_v48  ;;  %v2886_v50 = vld [vmem:[%s3696_s2 + $0x10] sm:$0xf] }
  0xd7   : > { %2540 = vrot.lane.b32.xlu0 %v3252_v21, %s3023_s20  ;;  %2852 = vmatmul.mubr.msk.bf16.vlgmr.msra.gmra.mxu1 %vm356_vm2, %v2850_v49  ;;  %v1285_v51 = vpop.permute.xlu1 %1284  ;;  %v1234_v54 = vsel %vm360_vm1, %v1228_v19, 0 }
  0xd8   : > { %1333 = vmatprep.mubr.bf16.mxu1 %v3016_v12 }
  0xd9   : > { %v1226_v52 = vpop.permute.xlu0 %1225 }
  0xda   : > { %v1229_v53 = vsel %vm1227_vm9, %v1224_v48, %v1226_v52 }
  0xdb   : > { %2854 = vmatprep.subr.msk.bf16.mxu0 %vm360_vm1, %v1229_v53  ;;  %v1289_v55 = vpop.permute.xlu1 %1288 }
  0xdc   : > { %1254 = vmatpush1.bf16.msra.mxu0 %v1234_v54 }
  0xdd   : > { %v1287_v56 = vpop.permute.xlu0 %1286 }
  0xde   : > { %v1290_v57 = vsel %vm1227_vm9, %v1285_v51, %v1287_v56  ;;  %v1291_v58 = vsel %vm1227_vm9, %v1287_v56, %v1289_v55  ;;  %v2889_v55 = vld [vmem:[%s3696_s2 + $0x14] sm:$0xf] }
  0xdf   : > { %v1296_v59 = vsel %vm360_vm1, %v1290_v57, 0  ;;  %2857 = vmatprep.subr.msk.bf16.mxu1 %vm360_vm1, %v1291_v58  ;;  %2855 = vmatmul.mubr.msk.bf16.vlgmr.msra.gmra.mxu0 %vm356_vm2, %v2853_v20  ;;  %v1349_v60 = vpop.permute.xlu1 %1348  ;;  %v456_v1 = vpop.f32.mrf.mxu1 }
  0xe0   : > { %1316 = vmatpush1.bf16.msra.mxu1 %v1296_v59  ;;  %1396 = vmatprep.mubr.bf16.mxu0 %v3016_v12  ;;  %v401_v63 = vpop.f32.mrf.mxu0 }
  0xe1   : > { %v1347_v62 = vpop.permute.xlu0 %1346  ;;  %v3469_v4 = vadd.f32 %v456_v1, %v401_v63  ;;  %v458_v8 = vpop.f32.mrf.mxu1 }
  0xe2   : > { %v403_v0 = vpop.f32.mrf.mxu0  ;;  %v1353_v2 = vsel %vm1352_vm10, %v1347_v62, %v1349_v60  ;;  %v2892_v62 = vld [vmem:[%s3696_s2 + $0x18] sm:$0xf] }
  0xe3   : > { %2858 = vmatmul.mubr.msk.bf16.vlgmr.msra.gmra.mxu1 %vm356_vm2, %v2856_v61  ;;  %v1410_v3 = vpop.permute.xlu1 %1409  ;;  %v1359_v9 = vsel %vm360_vm1, %v1353_v2, 0  ;;  %v3474_v10 = vadd.f32 %v458_v8, %v403_v0  ;;  %v460_v17 = vpop.f32.mrf.mxu1 }
  0xe4   : > { %1458 = vmatprep.mubr.bf16.mxu1 %v3016_v12  ;;  %v405_v6 = vpop.f32.mrf.mxu0  ;;  %v2898_v17 = vld [vmem:[%s3696_s2 + $0x20] sm:$0xf] }
  0xe5   : > { %v1351_v5 = vpop.permute.xlu0 %1350  ;;  %v461_v26 = vpop.f32.mrf.mxu1 }
  0xe6   : > { %v1354_v7 = vsel %vm1352_vm10, %v1349_v60, %v1351_v5  ;;  %v406_v11 = vpop.f32.mrf.mxu0  ;;  %v2895_v5 = vld [vmem:[%s3696_s2 + $0x1c] sm:$0xf] }
  0xe7   : > { %2860 = vmatprep.subr.msk.bf16.mxu0 %vm360_vm1, %v1354_v7  ;;  %v1414_v13 = vpop.permute.xlu1 %1413 }
  0xe8   : > { %1379 = vmatpush1.bf16.msra.mxu0 %v1359_v9 }
  0xe9   : > { %v1412_v22 = vpop.permute.xlu0 %1411  ;;  %2872 = vmatprep.subr.msk.bf16.mxu0 %vm360_vm1, %v3252_v21  ;;  %v2862_v21 = vld [vmem:[%s3696_s2 + $0x44] sm:$0xf] }
  0xea   : > { %v1415_v24 = vsel %vm1352_vm10, %v1410_v3, %v1412_v22  ;;  %v1416_v25 = vsel %vm1352_vm10, %v1412_v22, %v1414_v13 }
  0xeb   : > { %v1421_v27 = vsel %vm360_vm1, %v1415_v24, 0  ;;  %2861 = vmatmul.mubr.msk.bf16.vlgmr.msra.gmra.mxu0 %vm356_vm2, %v2859_v14  ;;  %2863 = vmatprep.subr.msk.bf16.mxu1 %vm360_vm1, %v1416_v25  ;;  %v1623_v28 = vpop.permute.xlu1 %1622 }
  0xec   : > { %1441 = vmatpush1.bf16.msra.mxu1 %v1421_v27  ;;  %1535 = vmatpush1.bf16.msra.mxu0 %v1515_v23  ;;  %v2901_v27 = vld [vmem:[%s3696_s2 + $0x24] sm:$0xf] }
  0xed   : > { %v1621_v29 = vpop.permute.xlu0 %1620  ;;  %1552 = vmatprep.mubr.bf16.mxu0 %v3016_v12  ;;  %2876 = vmatprep.subr.msk.bf16.mxu1 %vm360_vm1, %v3223_v15 }
  0xee   : > { %v1626_v30 = vsel %vm474_vm3, %v1621_v29, %v1623_v28 }
  0xef   : > { %2864 = vmatmul.mubr.msk.bf16.vlgmr.msra.gmra.mxu1 %vm356_vm2, %v2862_v21  ;;  %v1685_v31 = vpop.permute.xlu1 %1684  ;;  %v1632_v15 = vsel %vm360_vm1, %v1626_v30, 0 }
  0xf0   : > { %1590 = vmatpush1.bf16.msra.mxu1 %v1570_v18  ;;  %1607 = vmatprep.mubr.bf16.mxu1 %v3016_v12 }
  0xf1   : > { %v1625_v33 = vpop.permute.xlu0 %1624 }
  0xf2   : > { %v1627_v34 = vsel %vm474_vm3, %v1623_v28, %v1625_v33  ;;  %v2904_v33 = vld [vmem:[%s3696_s2 + $0x28] sm:$0xf] }
  0xf3   : > { %2880 = vmatprep.subr.msk.bf16.mxu0 %vm360_vm1, %v1627_v34  ;;  %2873 = vmatmul.mubr.msk.bf16.vlgmr.msra.gmra.mxu0 %vm356_vm2, %v2869_v32  ;;  %v1689_v16 = vpop.permute.xlu1 %1688 }
  0xf4   : > { %1652 = vmatpush1.bf16.msra.mxu0 %v1632_v15  ;;  %1669 = vmatprep.mubr.bf16.mxu0 %v3016_v12 }
  0xf5   : > { %v1687_v36 = vpop.permute.xlu0 %1686 }
  0xf6   : > { %v1690_v37 = vsel %vm474_vm3, %v1685_v31, %v1687_v36  ;;  %v1691_v38 = vsel %vm474_vm3, %v1687_v36, %v1689_v16 }
  0xf7   : > { %v1696_v39 = vsel %vm360_vm1, %v1690_v37, 0  ;;  %2884 = vmatprep.subr.msk.bf16.mxu1 %vm360_vm1, %v1691_v38  ;;  %2877 = vmatmul.mubr.msk.bf16.vlgmr.msra.gmra.mxu1 %vm356_vm2, %v1504_v35  ;;  %v1748_v40 = vpop.permute.xlu1 %1747  ;;  %v2907_v37 = vld [vmem:[%s3696_s2 + $0x2c] sm:$0xf] }
  0xf8   : > { %1716 = vmatpush1.bf16.msra.mxu1 %v1696_v39  ;;  %1733 = vmatprep.mubr.bf16.mxu1 %v3016_v12 }
  0xf9   : > { %v1746_v42 = vpop.permute.xlu0 %1745 }
  0xfa   : > { %v1751_v43 = vsel %vm602_vm4, %v1746_v42, %v1748_v40 }
  0xfb   : > { %2881 = vmatmul.mubr.msk.bf16.vlgmr.msra.gmra.mxu0 %vm356_vm2, %v2878_v41  ;;  %v1807_v44 = vpop.permute.xlu1 %1806  ;;  %v1757_v48 = vsel %vm360_vm1, %v1751_v43, 0 }
  0xfc   : > { %1794 = vmatprep.mubr.bf16.mxu0 %v3016_v12 }
  0xfd   : > { %v1750_v46 = vpop.permute.xlu0 %1749 }
  0xfe   : > { %v1752_v47 = vsel %vm602_vm4, %v1748_v40, %v1750_v46 }
  0xff   : > { %2887 = vmatprep.subr.msk.bf16.mxu0 %vm360_vm1, %v1752_v47  ;;  %2885 = vmatmul.mubr.msk.bf16.vlgmr.msra.gmra.mxu1 %vm356_vm2, %v2882_v45  ;;  %v1811_v49 = vpop.permute.xlu1 %1810  ;;  %v2910_v45 = vld [vmem:[%s3696_s2 + $0x30] sm:$0xf] }
 0x100   : > { %1777 = vmatpush1.bf16.msra.mxu0 %v1757_v48  ;;  %1855 = vmatprep.mubr.bf16.mxu1 %v3016_v12 }
 0x101   : > { %v1809_v19 = vpop.permute.xlu0 %1808 }
 0x102   : > { %v1812_v51 = vsel %vm602_vm4, %v1807_v44, %v1809_v19  ;;  %v1813_v52 = vsel %vm602_vm4, %v1809_v19, %v1811_v49  ;;  %v2913_v19 = vld [vmem:[%s3696_s2 + $0x34] sm:$0xf] }
 0x103   : > { %v1818_v53 = vsel %vm360_vm1, %v1812_v51, 0  ;;  %2890 = vmatprep.subr.msk.bf16.mxu1 %vm360_vm1, %v1813_v52  ;;  %2888 = vmatmul.mubr.msk.bf16.vlgmr.msra.gmra.mxu0 %vm356_vm2, %v2886_v50  ;;  %v1870_v54 = vpop.permute.xlu1 %1869 }
 0x104   : > { %1838 = vmatpush1.bf16.msra.mxu1 %v1818_v53  ;;  %1916 = vmatprep.mubr.bf16.mxu0 %v3016_v12 }
 0x105   : > { %v1868_v20 = vpop.permute.xlu0 %1867 }
 0x106   : > { %v1873_v56 = vsel %vm727_vm5, %v1868_v20, %v1870_v54 }
 0x107   : > { %2891 = vmatmul.mubr.msk.bf16.vlgmr.msra.gmra.mxu1 %vm356_vm2, %v2889_v55  ;;  %v1929_v57 = vpop.permute.xlu1 %1928  ;;  %v1879_v60 = vsel %vm360_vm1, %v1873_v56, 0 }
 0x108   : > { %1977 = vmatprep.mubr.bf16.mxu1 %v3016_v12 }
 0x109   : > { %v1872_v58 = vpop.permute.xlu0 %1871 }
 0x10a   : > { %v1874_v59 = vsel %vm727_vm5, %v1870_v54, %v1872_v58 }
 0x10b   : > { %2893 = vmatprep.subr.msk.bf16.mxu0 %vm360_vm1, %v1874_v59  ;;  %v1933_v61 = vpop.permute.xlu1 %1932 }
 0x10c   : > { %1899 = vmatpush1.bf16.msra.mxu0 %v1879_v60 }
 0x10d   : > { %v1931_v63 = vpop.permute.xlu0 %1930 }
 0x10e   : > { %v1934_v0 = vsel %vm727_vm5, %v1929_v57, %v1931_v63  ;;  %v1935_v1 = vsel %vm727_vm5, %v1931_v63, %v1933_v61  ;;  %v2916_v57 = vld [vmem:[%s3696_s2 + $0x38] sm:$0xf]  ;;  %v2919_v63 = vld [vmem:[%s3696_s2 + $0x3c] sm:$0xf] }
 0x10f   : > { %v1940_v2 = vsel %vm360_vm1, %v1934_v0, 0  ;;  %2896 = vmatprep.subr.msk.bf16.mxu1 %vm360_vm1, %v1935_v1  ;;  %2894 = vmatmul.mubr.msk.bf16.vlgmr.msra.gmra.mxu0 %vm356_vm2, %v2892_v62  ;;  %v1992_v3 = vpop.permute.xlu1 %1991 }
 0x110   : > { %1960 = vmatpush1.bf16.msra.mxu1 %v1940_v2  ;;  %2038 = vmatprep.mubr.bf16.mxu0 %v3016_v12 }
 0x111   : > { %v1990_v6 = vpop.permute.xlu0 %1989 }
 0x112   : > { %v1995_v7 = vsel %vm852_vm6, %v1990_v6, %v1992_v3 }
 0x113   : > { %2897 = vmatmul.mubr.msk.bf16.vlgmr.msra.gmra.mxu1 %vm356_vm2, %v2895_v5  ;;  %v2051_v8 = vpop.permute.xlu1 %2050  ;;  %v2001_v13 = vsel %vm360_vm1, %v1995_v7, 0 }
 0x114   : > { %2099 = vmatprep.mubr.bf16.mxu1 %v3016_v12 }
 0x115   : > { %v1994_v9 = vpop.permute.xlu0 %1993 }
 0x116   : > { %v1996_v11 = vsel %vm852_vm6, %v1992_v3, %v1994_v9 }
 0x117   : > { %2899 = vmatprep.subr.msk.bf16.mxu0 %vm360_vm1, %v1996_v11  ;;  %v2055_v14 = vpop.permute.xlu1 %2054 }
 0x118   : > { %2021 = vmatpush1.bf16.msra.mxu0 %v2001_v13 }
 0x119   : > { %v2053_v22 = vpop.permute.xlu0 %2052 }
 0x11a   : > { %v2056_v23 = vsel %vm852_vm6, %v2051_v8, %v2053_v22  ;;  %v2057_v24 = vsel %vm852_vm6, %v2053_v22, %v2055_v14  ;;  %v2922_v8 = vld [vmem:[%s3696_s2 + $0x40] sm:$0xf]  ;;  %v2925_v14 = vld [vmem:[%s3696_s2 + $0x44] sm:$0xf] }
 0x11b   : > { %v2062_v25 = vsel %vm360_vm1, %v2056_v23, 0  ;;  %2902 = vmatprep.subr.msk.bf16.mxu1 %vm360_vm1, %v2057_v24  ;;  %2900 = vmatmul.mubr.msk.bf16.vlgmr.msra.gmra.mxu0 %vm356_vm2, %v2898_v17  ;;  %v2114_v26 = vpop.permute.xlu1 %2113 }
 0x11c   : > { %2082 = vmatpush1.bf16.msra.mxu1 %v2062_v25  ;;  %2160 = vmatprep.mubr.bf16.mxu0 %v3016_v12 }
 0x11d   : > { %v2112_v28 = vpop.permute.xlu0 %2111 }
 0x11e   : > { %v2117_v21 = vsel %vm977_vm7, %v2112_v28, %v2114_v26 }
 0x11f   : > { %2903 = vmatmul.mubr.msk.bf16.vlgmr.msra.gmra.mxu1 %vm356_vm2, %v2901_v27  ;;  %v2173_v29 = vpop.permute.xlu1 %2172  ;;  %v2123_v31 = vsel %vm360_vm1, %v2117_v21, 0 }
 0x120   : > { %2221 = vmatprep.mubr.bf16.mxu1 %v3016_v12 }
 0x121   : > { %v2116_v18 = vpop.permute.xlu0 %2115 }
 0x122   : > { %v2118_v30 = vsel %vm977_vm7, %v2114_v26, %v2116_v18 }
 0x123   : > { %2905 = vmatprep.subr.msk.bf16.mxu0 %vm360_vm1, %v2118_v30  ;;  %v2177_v32 = vpop.permute.xlu1 %2176 }
 0x124   : > { %2143 = vmatpush1.bf16.msra.mxu0 %v2123_v31 }
 0x125   : > { %v2175_v34 = vpop.permute.xlu0 %2174 }
 0x126   : > { %v2178_v15 = vsel %vm977_vm7, %v2173_v29, %v2175_v34  ;;  %v2179_v16 = vsel %vm977_vm7, %v2175_v34, %v2177_v32 }
 0x127   : > { %v2184_v35 = vsel %vm360_vm1, %v2178_v15, 0  ;;  %2906 = vmatmul.mubr.msk.bf16.vlgmr.msra.gmra.mxu0 %vm356_vm2, %v2904_v33  ;;  %2908 = vmatprep.subr.msk.bf16.mxu1 %vm360_vm1, %v2179_v16  ;;  %v2236_v36 = vpop.permute.xlu1 %2235 }
 0x128   : > { %2204 = vmatpush1.bf16.msra.mxu1 %v2184_v35  ;;  %2282 = vmatprep.mubr.bf16.mxu0 %v3016_v12 }
 0x129   : > { %v2234_v38 = vpop.permute.xlu0 %2233 }
 0x12a   : > { %v2239_v39 = vsel %vm1102_vm8, %v2234_v38, %v2236_v36 }
 0x12b   : > { %2909 = vmatmul.mubr.msk.bf16.vlgmr.msra.gmra.mxu1 %vm356_vm2, %v2907_v37  ;;  %v2295_v40 = vpop.permute.xlu1 %2294  ;;  %v2245_v43 = vsel %vm360_vm1, %v2239_v39, 0 }
 0x12c   : > { %2343 = vmatprep.mubr.bf16.mxu1 %v3016_v12 }
 0x12d   : > { %v2238_v41 = vpop.permute.xlu0 %2237 }
 0x12e   : > { %v2240_v42 = vsel %vm1102_vm8, %v2236_v36, %v2238_v41 }
 0x12f   : > { %2911 = vmatprep.subr.msk.bf16.mxu0 %vm360_vm1, %v2240_v42  ;;  %v2299_v44 = vpop.permute.xlu1 %2298 }
 0x130   : > { %2265 = vmatpush1.bf16.msra.mxu0 %v2245_v43 }
 0x131   : > { %v2297_v46 = vpop.permute.xlu0 %2296 }
 0x132   : > { %v2300_v47 = vsel %vm1102_vm8, %v2295_v40, %v2297_v46  ;;  %v2301_v48 = vsel %vm1102_vm8, %v2297_v46, %v2299_v44 }
 0x133   : > { %v2306_v49 = vsel %vm360_vm1, %v2300_v47, 0  ;;  %2912 = vmatmul.mubr.msk.bf16.vlgmr.msra.gmra.mxu0 %vm356_vm2, %v2910_v45  ;;  %2914 = vmatprep.subr.msk.bf16.mxu1 %vm360_vm1, %v2301_v48  ;;  %v2358_v50 = vpop.permute.xlu1 %2357 }
 0x134   : > { %2326 = vmatpush1.bf16.msra.mxu1 %v2306_v49  ;;  %2404 = vmatprep.mubr.bf16.mxu0 %v3016_v12 }
 0x135   : > { %v2356_v51 = vpop.permute.xlu0 %2355 }
 0x136   : > { %v2361_v52 = vsel %vm1227_vm9, %v2356_v51, %v2358_v50 }
 0x137   : > { %2915 = vmatmul.mubr.msk.bf16.vlgmr.msra.gmra.mxu1 %vm356_vm2, %v2913_v19  ;;  %v2417_v53 = vpop.permute.xlu1 %2416  ;;  %v2367_v20 = vsel %vm360_vm1, %v2361_v52, 0 }
 0x138   : > { %2465 = vmatprep.mubr.bf16.mxu1 %v3016_v12 }
 0x139   : > { %v2360_v54 = vpop.permute.xlu0 %2359 }
 0x13a   : > { %v2362_v55 = vsel %vm1227_vm9, %v2358_v50, %v2360_v54 }
 0x13b   : > { %2917 = vmatprep.subr.msk.bf16.mxu0 %vm360_vm1, %v2362_v55  ;;  %v2421_v56 = vpop.permute.xlu1 %2420 }
 0x13c   : > { %2387 = vmatpush1.bf16.msra.mxu0 %v2367_v20 }
 0x13d   : > { %v2419_v58 = vpop.permute.xlu0 %2418 }
 0x13e   : > { %v2422_v59 = vsel %vm1227_vm9, %v2417_v53, %v2419_v58  ;;  %v2423_v60 = vsel %vm1227_vm9, %v2419_v58, %v2421_v56 }
 0x13f   : > { %v2428_v61 = vsel %vm360_vm1, %v2422_v59, 0  ;;  %2918 = vmatmul.mubr.msk.bf16.vlgmr.msra.gmra.mxu0 %vm356_vm2, %v2916_v57  ;;  %2920 = vmatprep.subr.msk.bf16.mxu1 %vm360_vm1, %v2423_v60  ;;  %v2480_v62 = vpop.permute.xlu1 %2479 }
 0x140   : > { %2448 = vmatpush1.bf16.msra.mxu1 %v2428_v61  ;;  %2526 = vmatprep.mubr.bf16.mxu0 %v3016_v12 }
 0x141   : > { %v2478_v0 = vpop.permute.xlu0 %2477 }
 0x142   : > { %v2483_v1 = vsel %vm1352_vm10, %v2478_v0, %v2480_v62 }
 0x143   : > { %2921 = vmatmul.mubr.msk.bf16.vlgmr.msra.gmra.mxu1 %vm356_vm2, %v2919_v63  ;;  %v2539_v2 = vpop.permute.xlu1 %2538  ;;  %v2489_v6 = vsel %vm360_vm1, %v2483_v1, 0 }
 0x144   : > { %2587 = vmatprep.mubr.bf16.mxu1 %v3016_v12 }
 0x145   : > { %v2482_v3 = vpop.permute.xlu0 %2481 }
 0x146   : > { %v2484_v5 = vsel %vm1352_vm10, %v2480_v62, %v2482_v3 }
 0x147   : > { %2923 = vmatprep.subr.msk.bf16.mxu0 %vm360_vm1, %v2484_v5  ;;  %v2543_v7 = vpop.permute.xlu1 %2542 }
 0x148   : > { %2509 = vmatpush1.bf16.msra.mxu0 %v2489_v6 }
 0x149   : > { %v2541_v9 = vpop.permute.xlu0 %2540 }
 0x14a   : > { %v2544_v11 = vsel %vm1352_vm10, %v2539_v2, %v2541_v9  ;;  %v2545_v13 = vsel %vm1352_vm10, %v2541_v9, %v2543_v7 }
 0x14b   : > { %v2550_v12 = vsel %vm360_vm1, %v2544_v11, 0  ;;  %2924 = vmatmul.mubr.msk.bf16.vlgmr.msra.gmra.mxu0 %vm356_vm2, %v2922_v8  ;;  %2926 = vmatprep.subr.msk.bf16.mxu1 %vm360_vm1, %v2545_v13 }
 0x14c   : > { %2570 = vmatpush1.bf16.msra.mxu1 %v2550_v12 }
 0x14f   : > { %2927 = vmatmul.mubr.msk.bf16.vlgmr.msra.gmra.mxu1 %vm356_vm2, %v2925_v14 }
 0x158   : > { %v520_v17 = vpop.f32.mrf.mxu0 }
 0x159   : > { %v527_v41 = vadd.f32 %v520_v17, %v3469_v4 }
 0x15a   : > { %v522_v22 = vpop.f32.mrf.mxu0 }
 0x15b   : > { %v585_v23 = vpop.f32.mrf.mxu1  ;;  %v528_v43 = vadd.f32 %v522_v22, %v3474_v10 }
 0x15c   : > { %v524_v24 = vpop.f32.mrf.mxu0  ;;  %v592_v44 = vadd.f32 %v585_v23, %v527_v41 }
 0x15d   : > { %v587_v25 = vpop.f32.mrf.mxu1 }
 0x15e   : > { %v525_v26 = vpop.f32.mrf.mxu0  ;;  %v593_v49 = vadd.f32 %v587_v25, %v528_v43 }
 0x15f   : > { %v589_v27 = vpop.f32.mrf.mxu1 }
 0x161   : > { %v590_v28 = vpop.f32.mrf.mxu1 }
 0x162   : > { %v1470_v28 = vlaneseq }
 0x164   : > { %v648_v21 = vpop.f32.mrf.mxu0 }
 0x165   : > { %v655_v50 = vadd.f32 %v648_v21, %v592_v44 }
 0x166   : > { %v650_v29 = vpop.f32.mrf.mxu0 }
 0x167   : > { %v710_v18 = vpop.f32.mrf.mxu1  ;;  %v656_v53 = vadd.f32 %v650_v29, %v593_v49 }
 0x168   : > { %v652_v30 = vpop.f32.mrf.mxu0  ;;  %v717_v54 = vadd.f32 %v710_v18, %v655_v50 }
 0x169   : > { %v712_v31 = vpop.f32.mrf.mxu1 }
 0x16a   : > { %v653_v32 = vpop.f32.mrf.mxu0  ;;  %v718_v20 = vadd.f32 %v712_v31, %v656_v53 }
 0x16b   : > { %v714_v33 = vpop.f32.mrf.mxu1 }
 0x16c   : > { %v1471_v33 = vshrl.u32 %v1470_v28, 7 }
 0x16d   : > { %v715_v34 = vpop.f32.mrf.mxu1 }
 0x16e   : > { %v1476_v41 = vsub.s32 1, %v1471_v33 }
 0x170   : > { %v773_v15 = vpop.f32.mrf.mxu0 }
 0x171   : > { %v780_v56 = vadd.f32 %v773_v15, %v717_v54 }
 0x172   : > { %v775_v16 = vpop.f32.mrf.mxu0 }
 0x173   : > { %v835_v35 = vpop.f32.mrf.mxu1  ;;  %v781_v10 = vadd.f32 %v775_v16, %v718_v20 }
 0x174   : > { %v777_v36 = vpop.f32.mrf.mxu0  ;;  %v842_v60 = vadd.f32 %v835_v35, %v780_v56 }
 0x175   : > { %v837_v37 = vpop.f32.mrf.mxu1  ;;  %v1472_v36 = vsub.s32 0, %v1471_v33 }
 0x176   : > { %v778_v38 = vpop.f32.mrf.mxu0  ;;  %v843_v0 = vadd.f32 %v837_v37, %v781_v10 }
 0x177   : > { %v839_v39 = vpop.f32.mrf.mxu1  ;;  %v343_v38 = vld [vmem:[%s3699_s5] sm:$0x3] }
 0x178   : > { %v3657_v50 = vrot.slane %v343_v38, %v1476_v41 }
 0x179   : > { %v840_v40 = vpop.f32.mrf.mxu1 }
 0x17c   : > { %v898_v42 = vpop.f32.mrf.mxu0 }
 0x17d   : > { %v905_v1 = vadd.f32 %v898_v42, %v842_v60 }
 0x17e   : > { %v900_v45 = vpop.f32.mrf.mxu0 }
 0x17f   : > { %v960_v46 = vpop.f32.mrf.mxu1  ;;  %v906_v3 = vadd.f32 %v900_v45, %v843_v0  ;;  %v3655_v45 = vrot.slane %v343_v38, %v1472_v36 }
 0x180   : > { %v902_v47 = vpop.f32.mrf.mxu0  ;;  %v967_v5 = vadd.f32 %v960_v46, %v905_v1 }
 0x181   : > { %v962_v48 = vpop.f32.mrf.mxu1 }
 0x182   : > { %v903_v19 = vpop.f32.mrf.mxu0  ;;  %v968_v11 = vadd.f32 %v962_v48, %v906_v3 }
 0x183   : > { %v964_v51 = vpop.f32.mrf.mxu1 }
 0x185   : > { %v965_v52 = vpop.f32.mrf.mxu1 }
 0x188   : > { %v1023_v55 = vpop.f32.mrf.mxu0 }
 0x189   : > { %v1030_v13 = vadd.f32 %v1023_v55, %v967_v5 }
 0x18a   : > { %v1025_v57 = vpop.f32.mrf.mxu0 }
 0x18b   : > { %v1085_v4 = vpop.f32.mrf.mxu1  ;;  %v1031_v22 = vadd.f32 %v1025_v57, %v968_v11 }
 0x18c   : > { %v1027_v58 = vpop.f32.mrf.mxu0  ;;  %v1092_v23 = vadd.f32 %v1085_v4, %v1030_v13 }
 0x18d   : > { %v1087_v59 = vpop.f32.mrf.mxu1 }
 0x18e   : > { %v1028_v61 = vpop.f32.mrf.mxu0  ;;  %v1093_v26 = vadd.f32 %v1087_v59, %v1031_v22 }
 0x18f   : > { %v1089_v62 = vpop.f32.mrf.mxu1 }
 0x191   : > { %v1090_v63 = vpop.f32.mrf.mxu1 }
 0x194   : > { %v1148_v2 = vpop.f32.mrf.mxu0 }
 0x195   : > { %v1155_v27 = vadd.f32 %v1148_v2, %v1092_v23 }
 0x196   : > { %v1150_v6 = vpop.f32.mrf.mxu0 }
 0x197   : > { %v1210_v7 = vpop.f32.mrf.mxu1  ;;  %v1156_v31 = vadd.f32 %v1150_v6, %v1093_v26 }
 0x198   : > { %v1152_v8 = vpop.f32.mrf.mxu0  ;;  %v1217_v32 = vadd.f32 %v1210_v7, %v1155_v27 }
 0x199   : > { %v1212_v9 = vpop.f32.mrf.mxu1 }
 0x19a   : > { %v1153_v12 = vpop.f32.mrf.mxu0  ;;  %v1218_v16 = vadd.f32 %v1212_v9, %v1156_v31 }
 0x19b   : > { %v1214_v14 = vpop.f32.mrf.mxu1 }
 0x19d   : > { %v1215_v17 = vpop.f32.mrf.mxu1 }
 0x19f   : > { %v1273_v24 = vpop.f32.mrf.mxu0 }
 0x1a0   : > { %v1280_v35 = vadd.f32 %v1273_v24, %v1217_v32 }
 0x1a1   : > { %v1275_v25 = vpop.f32.mrf.mxu0 }
 0x1a2   : > { %v1281_v39 = vadd.f32 %v1275_v25, %v1218_v16 }
 0x1a3   : > { %v1335_v21 = vpop.f32.mrf.mxu1  ;;  %v1277_v29 = vpop.f32.mrf.mxu0 }
 0x1a4   : > { %v1342_v40 = vadd.f32 %v1335_v21, %v1280_v35 }
 0x1a5   : > { %v1337_v18 = vpop.f32.mrf.mxu1  ;;  %v1278_v30 = vpop.f32.mrf.mxu0 }
 0x1a6   : > { %v1343_v43 = vadd.f32 %v1337_v18, %v1281_v39 }
 0x1a7   : > { %v1339_v34 = vpop.f32.mrf.mxu1 }
 0x1a9   : > { %v1340_v15 = vpop.f32.mrf.mxu1 }
 0x1ab   : > { %v1398_v37 = vpop.f32.mrf.mxu0 }
 0x1ac   : > { %v1405_v44 = vadd.f32 %v1398_v37, %v1342_v40 }
 0x1ad   : > { %v1400_v42 = vpop.f32.mrf.mxu0 }
 0x1ae   : > { %v1406_v48 = vadd.f32 %v1400_v42, %v1343_v43 }
 0x1af   : > { %v1460_v46 = vpop.f32.mrf.mxu1  ;;  %v1402_v47 = vpop.f32.mrf.mxu0 }
 0x1b0   : > { %v1467_v49 = vadd.f32 %v1460_v46, %v1405_v44 }
 0x1b1   : > { %v1462_v19 = vpop.f32.mrf.mxu1  ;;  %v1403_v51 = vpop.f32.mrf.mxu0 }
 0x1b2   : > { %1496 = vst [vmem:[#allocation2 + $0x10] sm:$0xff] %v1467_v49  ;;  %v1468_v52 = vadd.f32 %v1462_v19, %v1406_v48  ;;  %v1480_v53 = vmul.f32 %v3655_v45, %v1467_v49 }
 0x1b3   : > { %v1464_v54 = vpop.f32.mrf.mxu1  ;;  %v1554_v55 = vpop.f32.mrf.mxu0 }
 0x1b4   : > { %1497 = vst [vmem:[#allocation2] sm:$0xff] %v1468_v52  ;;  %v1481_v20 = vmul.f32 %v3657_v50, %v1468_v52  ;;  %v1486_v58 = vmul.f32 %v1480_v53, %v1467_v49 }
 0x1b5   : > { %v1465_v56 = vpop.f32.mrf.mxu1  ;;  %v1556_v57 = vpop.f32.mrf.mxu0 }
 0x1b6   : > { %v1482_v4 = vadd.f32 %v1481_v20, %v1480_v53  ;;  %v1487_v59 = vmul.f32 %v1481_v20, %v1468_v52 }
 0x1b7   : > { %v1609_v10 = vpop.f32.mrf.mxu1  ;;  %v1558_v60 = vpop.f32.mrf.mxu0 }
 0x1b8   : > { %1483 = vadd.xlane.f32.xlu0 %v1482_v4  ;;  %v1488_v61 = vadd.f32 %v1487_v59, %v1486_v58  ;;  %v1610_v36 = vadd.f32 %v1609_v10, %v1554_v55 }
 0x1b9   : > { %v1611_v62 = vpop.f32.mrf.mxu1  ;;  %v1559_v63 = vpop.f32.mrf.mxu0 }
 0x1ba   : > { %1489 = vadd.xlane.f32.xlu1 %v1488_v61  ;;  %v1612_v39 = vadd.f32 %v1611_v62, %v1556_v57 }
 0x1bb   : > { %v1613_v0 = vpop.f32.mrf.mxu1  ;;  %v1671_v1 = vpop.f32.mrf.mxu0 }
 0x1bc   : > { %v1678_v40 = vadd.f32 %v1671_v1, %v1610_v36 }
 0x1bd   : > { %v1614_v2 = vpop.f32.mrf.mxu1  ;;  %v1673_v3 = vpop.f32.mrf.mxu0 }
 0x1be   : > { %v1679_v43 = vadd.f32 %v1673_v3, %v1612_v39 }
 0x1bf   : > { %v1735_v5 = vpop.f32.mrf.mxu1  ;;  %v1675_v6 = vpop.f32.mrf.mxu0 }
 0x1c0   : > { %v1742_v44 = vadd.f32 %v1735_v5, %v1678_v40 }
 0x1c1   : > { %v1737_v7 = vpop.f32.mrf.mxu1  ;;  %v1676_v8 = vpop.f32.mrf.mxu0 }
 0x1c2   : > { %v1743_v19 = vadd.f32 %v1737_v7, %v1679_v43 }
 0x1c3   : > { %v1739_v9 = vpop.f32.mrf.mxu1  ;;  %v1796_v11 = vpop.f32.mrf.mxu0 }
 0x1c4   : > { %v1803_v51 = vadd.f32 %v1796_v11, %v1742_v44 }
 0x1c5   : > { %v1740_v13 = vpop.f32.mrf.mxu1  ;;  %v1798_v12 = vpop.f32.mrf.mxu0 }
 0x1c6   : > { %v1804_v54 = vadd.f32 %v1798_v12, %v1743_v19  ;;  %v2616_v19 = vld [vmem:[#allocation3] sm:$0xff] }
 0x1c7   : > { %v1857_v14 = vpop.f32.mrf.mxu1  ;;  %v1800_v17 = vpop.f32.mrf.mxu0 }
 0x1c8   : > { %v1864_v20 = vadd.f32 %v1857_v14, %v1803_v51 }
 0x1c9   : > { %v1859_v22 = vpop.f32.mrf.mxu1  ;;  %v1801_v23 = vpop.f32.mrf.mxu0 }
 0x1ca   : > { %v1865_v4 = vadd.f32 %v1859_v22, %v1804_v54 }
 0x1cb   : > { %v1861_v24 = vpop.f32.mrf.mxu1 }
 0x1cd   : > { %v1862_v25 = vpop.f32.mrf.mxu1 }
 0x1cf   : > { %v1918_v26 = vpop.f32.mrf.mxu0 }
 0x1d0   : > { %v1925_v58 = vadd.f32 %v1918_v26, %v1864_v20  ;;  %v2620_v20 = vld [vmem:[#allocation4] sm:$0xff] }
 0x1d1   : > { %v1920_v27 = vpop.f32.mrf.mxu0 }
 0x1d2   : > { %v1926_v61 = vadd.f32 %v1920_v27, %v1865_v4 }
 0x1d3   : > { %v1979_v28 = vpop.f32.mrf.mxu1  ;;  %v1922_v21 = vpop.f32.mrf.mxu0 }
 0x1d4   : > { %v1986_v62 = vadd.f32 %v1979_v28, %v1925_v58 }
 0x1d5   : > { %v1981_v29 = vpop.f32.mrf.mxu1  ;;  %v1923_v18 = vpop.f32.mrf.mxu0 }
 0x1d6   : > { %v1987_v1 = vadd.f32 %v1981_v29, %v1926_v61 }
 0x1d7   : > { %v1983_v30 = vpop.f32.mrf.mxu1 }
 0x1d9   : > { %v1984_v31 = vpop.f32.mrf.mxu1 }
 0x1db   : > { %v2040_v32 = vpop.f32.mrf.mxu0 }
 0x1dc   : > { %v2047_v2 = vadd.f32 %v2040_v32, %v1986_v62 }
 0x1dd   : > { %v2042_v33 = vpop.f32.mrf.mxu0 }
 0x1de   : > { %v2048_v5 = vadd.f32 %v2042_v33, %v1987_v1 }
 0x1df   : > { %v2101_v34 = vpop.f32.mrf.mxu1  ;;  %v2044_v15 = vpop.f32.mrf.mxu0 }
 0x1e0   : > { %v2108_v6 = vadd.f32 %v2101_v34, %v2047_v2 }
 0x1e1   : > { %v2103_v16 = vpop.f32.mrf.mxu1  ;;  %v2045_v35 = vpop.f32.mrf.mxu0 }
 0x1e2   : > { %v2109_v8 = vadd.f32 %v2103_v16, %v2048_v5 }
 0x1e3   : > { %v2105_v37 = vpop.f32.mrf.mxu1 }
 0x1e5   : > { %v2106_v38 = vpop.f32.mrf.mxu1 }
 0x1e7   : > { %v2162_v41 = vpop.f32.mrf.mxu0 }
 0x1e8   : > { %v2169_v9 = vadd.f32 %v2162_v41, %v2108_v6 }
 0x1e9   : > { %v2164_v42 = vpop.f32.mrf.mxu0 }
 0x1ea   : > { %v2170_v12 = vadd.f32 %v2164_v42, %v2109_v8 }
 0x1eb   : > { %v2223_v46 = vpop.f32.mrf.mxu1  ;;  %v2166_v47 = vpop.f32.mrf.mxu0 }
 0x1ec   : > { %v2230_v14 = vadd.f32 %v2223_v46, %v2169_v9 }
 0x1ed   : > { %v2225_v48 = vpop.f32.mrf.mxu1  ;;  %v2167_v49 = vpop.f32.mrf.mxu0 }
 0x1ee   : > { %v2231_v23 = vadd.f32 %v2225_v48, %v2170_v12 }
 0x1ef   : > { %v2227_v52 = vpop.f32.mrf.mxu1 }
 0x1f1   : > { %v2228_v53 = vpop.f32.mrf.mxu1 }
 0x1f3   : > { %v2284_v56 = vpop.f32.mrf.mxu0 }
 0x1f4   : > { %v2291_v24 = vadd.f32 %v2284_v56, %v2230_v14 }
 0x1f5   : > { %v2286_v55 = vpop.f32.mrf.mxu0 }
 0x1f6   : > { %v2292_v26 = vadd.f32 %v2286_v55, %v2231_v23 }
 0x1f7   : > { %v2345_v57 = vpop.f32.mrf.mxu1  ;;  %v2288_v59 = vpop.f32.mrf.mxu0 }
 0x1f8   : > { %v2352_v27 = vadd.f32 %v2345_v57, %v2291_v24 }
 0x1f9   : > { %v2347_v10 = vpop.f32.mrf.mxu1  ;;  %v2289_v60 = vpop.f32.mrf.mxu0 }
 0x1fa   : > { %v2353_v21 = vadd.f32 %v2347_v10, %v2292_v26 }
 0x1fb   : > { %v2349_v63 = vpop.f32.mrf.mxu1 }
 0x1fd   : > { %v2350_v0 = vpop.f32.mrf.mxu1 }
 0x1ff   : > { %v2406_v3 = vpop.f32.mrf.mxu0 }
 0x200   : > { %v2413_v29 = vadd.f32 %v2406_v3, %v2352_v27 }
 0x201   : > { %v2408_v7 = vpop.f32.mrf.mxu0 }
 0x202   : > { %v2414_v30 = vadd.f32 %v2408_v7, %v2353_v21 }
 0x203   : > { %v2467_v11 = vpop.f32.mrf.mxu1  ;;  %v2410_v13 = vpop.f32.mrf.mxu0 }
 0x204   : > { %v2474_v31 = vadd.f32 %v2467_v11, %v2413_v29 }
 0x205   : > { %v2469_v17 = vpop.f32.mrf.mxu1  ;;  %v2411_v22 = vpop.f32.mrf.mxu0 }
 0x206   : > { %v2475_v33 = vadd.f32 %v2469_v17, %v2414_v30 }
 0x207   : > { %v2471_v25 = vpop.f32.mrf.mxu1 }
 0x209   : > { %v2472_v28 = vpop.f32.mrf.mxu1 }
 0x20b   : > { %v2528_v18 = vpop.f32.mrf.mxu0 }
 0x20c   : > { %v2535_v34 = vadd.f32 %v2528_v18, %v2474_v31 }
 0x20d   : > { %v2530_v32 = vpop.f32.mrf.mxu0 }
 0x20e   : > { %v2536_v35 = vadd.f32 %v2530_v32, %v2475_v33 }
 0x20f   : > { %v2589_v15 = vpop.f32.mrf.mxu1  ;;  %v2532_v16 = vpop.f32.mrf.mxu0 }
 0x210   : > { %v2596_v36 = vadd.f32 %v2589_v15, %v2535_v34 }
 0x211   : > { %v2591_v37 = vpop.f32.mrf.mxu1  ;;  %v2533_v38 = vpop.f32.mrf.mxu0 }
 0x212   : > { %2928 = vst [vmem:[#allocation2 + $0x18] sm:$0xff] %v2596_v36  ;;  %v2597_v39 = vadd.f32 %v2591_v37, %v2536_v35  ;;  %v2598_v41 = vmul.f32 %v2596_v36, %v3655_v45 }
 0x213   : > { %v2593_v40 = vpop.f32.mrf.mxu1 }
 0x214   : > { %v2599_v42 = vmul.f32 %v2597_v39, %v3657_v50  ;;  %2929 = vst [vmem:[#allocation2 + $0x8] sm:$0xff] %v2597_v39  ;;  %v2604_v47 = vmul.f32 %v2598_v41, %v2596_v36 }
 0x215   : > { %v2594_v43 = vpop.f32.mrf.mxu1 }
 0x216   : > { %v2605_v44 = vmul.f32 %v2599_v42, %v2597_v39  ;;  %v2600_v46 = vadd.f32 %v2599_v42, %v2598_v41 }
 0x218   : > { %2601 = vadd.xlane.f32.xlu0 %v2600_v46  ;;  %v2606_v48 = vadd.f32 %v2605_v44, %v2604_v47 }
 0x21c   : > { %2607 = vadd.xlane.f32.xlu0 %v2606_v48 }
 0x241   : > { %v1484_v49 = vpop.xlane.xlu0 %1483 }
 0x243   : > { %v1490_v54 = vpop.xlane.xlu1 %1489 }
 0x2a1   : > { %v2602_v51 = vpop.xlane.xlu0 %2601 }
 0x2a2   : > { %v2603_v52 = vadd.f32 %v2602_v51, %v1484_v49 }
 0x2a4   : > { %v2617_v53 = vadd.f32 %v2616_v19, %v2603_v52 }
 0x2a5   : > { %v2608_v56 = vpop.xlane.xlu0 %2607 }
 0x2a6   : > { %2619 = vst.msk [vmem:[#allocation3] sm:$0xff] %vm2618_vm11, %v2617_v53  ;;  %v2609_v45 = vadd.f32 %v2608_v56, %v1490_v54 }
 0x2a8   : > { %v2621_v50 = vadd.f32 %v2620_v20, %v2609_v45 }
 0x2aa   : > { %2622 = vst.msk [vmem:[#allocation4] sm:$0xff] %vm2618_vm11, %v2621_v50 }
 0x2ab PF: > { %p2930_p6 = scmp.ne.s32.totalorder %s3004_s21, 1 }
 0x2ad   : > { %2626 = sbr.rel (%p2930_p6) target bundleno = 859 (0x35b), region = 56 }
 0x2b2   : > { %v2630_v55 = vld [vmem:[#allocation3] sm:$0xff]  ;;  %v2632_v4 = vld [vmem:[#allocation4] sm:$0xff]  ;;  %v3024_v58 = vmov 0   ;;  %vm2640_vm12 = vcmask 7168   ;;  %v2672_v7 = vlaneseq  ;;  %v2653_v9 = vld [vmem:[#allocation2 + $0x10] sm:$0xff] }
 0x2b3   : > { %2987 = vset.pattern.permute.xlu0 %v3024_v58  ;;  %v2631_v57 = vmul.f32 0.0078125, %v2630_v55  ;;  %v2633_v59 = vmul.f32 0.0078125, %v2632_v4  ;;  %v2638_v62 = vld [vmem:[%s3697_s3] sm:$0xff]  ;;  %v2931_v17 = vld [vmem:[#allocation2 + $0x18] sm:$0xff]  ;;  %v2932_v22 = vld [vmem:[#allocation2 + $0x8] sm:$0xff] }
 0x2b4   : > { %v2642_v1 = vld [vmem:[%s3698_s4] sm:$0xff]  ;;  %v2673_v8 = vshrl.u32 %v2672_v7, 7 }
 0x2b5   : > { %v2634_v10 = vmul.f32 %v2631_v57, %v2631_v57  ;;  %v2654_v13 = vld [vmem:[#allocation2] sm:$0xff] }
 0x2b6   : > { %v2674_v12 = vsub.s32 0, %v2673_v8  ;;  %v2678_v14 = vsub.s32 1, %v2673_v8  ;;  %v2648_v23 = vld [vmem:[%s3699_s5] sm:$0x3] }
 0x2b7   : > { %v2635_v60 = vsub.f32 %v2633_v59, %v2634_v10 }
 0x2b8   : > { %v2675_v28 = vrot.slane %v2648_v23, %v2674_v12  ;;  %v2679_v21 = vrot.slane %v2648_v23, %v2678_v14 }
 0x2b9   : > { %v2636_v61 = vadd.f32 1e-05, %v2635_v60 }
 0x2bb   : > { %2988 = vrsqrt.f32 %v2636_v61 }
 0x2c8   : > { %v2989_v63 = vpop.eup %2988 }
 0x2c9   : > { %v2639_v0 = vmul.f32 %v2989_v63, %v2638_v62 }
 0x2cb   : > { %2641 = vst.msk [vmem:[#allocation3] sm:$0xff] %vm2640_vm12, %v2639_v0  ;;  %v2643_v2 = vmul.f32 %v2639_v0, %v2631_v57 }
 0x2cd   : > { %v2644_v3 = vsub.f32 %v2642_v1, %v2643_v2 }
 0x2cf   : > { %2645 = vst.msk [vmem:[#allocation4] sm:$0xff] %vm2640_vm12, %v2644_v3 }
 0x2d2   : > { %v2646_v5 = vld [vmem:[#allocation3] sm:$0xff] }
 0x2d3   : > { %2657 = vperm.xlu0 %2987, %v2646_v5  }
 0x2d6   : > { %v2647_v6 = vld [vmem:[#allocation4] sm:$0xff] }
 0x2d7   : > { %2664 = vperm.xlu0 %2987, %v2647_v6  }
 0x34e   : > { %v2658_v11 = vpop.permute.xlu0 %2657 }
 0x34f   : > { %v2660_v24 = vmul.f32 %v2658_v11, %v2653_v9  ;;  %v2661_v25 = vmul.f32 %v2658_v11, %v2654_v13  ;;  %v2692_v26 = vmul.f32 %v2931_v17, %v2658_v11  ;;  %v2693_v27 = vmul.f32 %v2932_v22, %v2658_v11 }
 0x352   : > { %v2665_v29 = vpop.permute.xlu0 %2664 }
 0x353   : > { %v2667_v18 = vadd.f32 %v2665_v29, %v2660_v24  ;;  %v2668_v30 = vadd.f32 %v2665_v29, %v2661_v25  ;;  %v2694_v31 = vadd.f32 %v2692_v26, %v2665_v29  ;;  %v2695_v32 = vadd.f32 %v2693_v27, %v2665_v29 }
 0x355   : > { %v2669_v33 = vmax.f32 %v2667_v18, 0.0  ;;  %v2670_v34 = vmax.f32 %v2668_v30, 0.0  ;;  %v2696_v15 = vmax.f32 %v2694_v31, 0.0  ;;  %v2697_v16 = vmax.f32 %v2695_v32, 0.0 }
 0x357   : > { %v2682_v35 = vmul.f32 %v2675_v28, %v2669_v33  ;;  %v2683_v36 = vmul.f32 %v2679_v21, %v2670_v34  ;;  %v2698_v37 = vmul.f32 %v2696_v15, %v2675_v28  ;;  %v2699_v38 = vmul.f32 %v2697_v16, %v2679_v21 }
 0x359   : > { %2684 = vst [vmem:[%s3700_s6] sm:$0xff] %v2682_v35  ;;  %2685 = vst [vmem:[%s3700_s6 + $0x8] sm:$0xff] %v2683_v36 }
 0x35a   : > { %2933 = vst [vmem:[%s3700_s6 + $0x10] sm:$0xff] %v2698_v37  ;;  %2934 = vst [vmem:[%s3700_s6 + $0x18] sm:$0xff] %v2699_v38 }
 0x35b PF: > { %s16_s23 = sadd.s32 1, %s3012_s23   ;;  %s3701_s21 = smov %s3008_s22 }
 0x35c   : > { %p13_p7 = scmp.ge.s32.totalorder %s16_s23, 4   ;;  %s3702_s22 = smov %s3704_s24 }
 0x35e   :  { %15 = sbr.rel (!%p13_p7) target bundleno = 2 (0x2), region = 117 }

</bundles_post_ra>
